<compile_context>
chip_gen: v7x
topology: tpu7x:2x2x1
jax: 0.10.0
libtpu: 0.0.40
codegen_flags: <defaults>
</compile_context>

<pallas_src>
import jax
import jax.numpy as jnp
from jax.experimental import pallas as pl
from jax.experimental.pallas import tpu as pltpu

NEG_SLOPE = 0.01  # torch nn.LeakyReLU default negative_slope


def _leaky_relu(x):
    return jnp.where(x > 0, x, NEG_SLOPE * x)


# --------------------- weight-resident kernel (default) ----------------------

def boom_kernel_resident(x_ref,              # (TM, D)  f32 row tile
                         w1_ref, b1_ref,     # (D, F) bf16, (1, F) f32 (resident)
                         w2_ref, b2_ref,     # (F, D) bf16, (1, D) f32 (resident)
                         o_ref):             # (TM, D)  f32 output tile
    """One row tile: LeakyReLU(x @ W1 + b1) @ W2 + b2, weights fully resident."""
    xb = x_ref[...].astype(jnp.bfloat16)     # single in-kernel downcast for the MXU
    h = jnp.dot(xb, w1_ref[...], preferred_element_type=jnp.float32)
    h = _leaky_relu(h + b1_ref[...])
    # TODO(synk): nn.Dropout(p=0.1) is identity in eval(); training-mode
    # stochastic dropout (pltpu.prng_seed / prng_random_bits) not implemented.
    y = jnp.dot(h.astype(jnp.bfloat16), w2_ref[...],
                preferred_element_type=jnp.float32)
    o_ref[...] = (y + b2_ref[...]).astype(o_ref.dtype)


# ------------------ streamed-weight fallback (very large F) ------------------

def boom_kernel_streamed(x_ref,              # (TM, D)  f32, resident across j
                         w1_ref, b1_ref,     # (D, TF) bf16, (1, TF) f32 slabs
                         w2_ref, b2_ref,     # (TF, D) bf16, (1, D)  f32
                         o_ref):             # (TM, D)  f32, resident across j
    """(row tile, boom tile) step; accumulates directly into resident f32 o_ref."""
    j = pl.program_id(1)
    xb = x_ref[...].astype(jnp.bfloat16)
    h = jnp.dot(xb, w1_ref[...], preferred_element_type=jnp.float32)
    h = _leaky_relu(h + b1_ref[...])
    part = jnp.dot(h.astype(jnp.bfloat16), w2_ref[...],
                   preferred_element_type=jnp.float32)

    @pl.when(j == 0)
    def _():
        o_ref[...] = part + b2_ref[...]

    @pl.when(j > 0)
    def _():
        o_ref[...] += part


# ----------------------------------- wrapper ---------------------------------

def boom_forward(x, params, *, tm=256, tf=512,
                 resident_weight_budget=20 * 1024 * 1024):
    """Fused BOOMLayer forward. x: (..., inout_dim) f32 -> (..., inout_dim) f32."""
    w1, b1, w2, b2 = params["w1"], params["b1"], params["w2"], params["b2"]
    d_in, f_dim = w1.shape
    assert d_in % 128 == 0, "inout_dim must be lane-aligned (multiple of 128)"

    lead_shape = x.shape[:-1]
    xm = x.reshape(-1, d_in)                 # f32; cast to bf16 happens in-kernel
    m = xm.shape[0]
    num_row_tiles = pl.cdiv(m, tm)           # ragged last tile -> Pallas masking

    weight_bytes = (w1.size * w1.dtype.itemsize + w2.size * w2.dtype.itemsize)
    tile_bytes = 2 * 2 * (tm * d_in * 4)     # x + out f32 tiles, double-buffered
    bias_bytes = 2 * (b1.size * 4 + b2.size * 4)

    if weight_bytes <= resident_weight_budget:
        # Weight-resident path: single "parallel" row-tile grid axis.
        vmem_est = tile_bytes + 2 * weight_bytes + bias_bytes
        vmem_limit = int(min(48 << 20, max(16 << 20, 2 * vmem_est)))
        out = pl.pallas_call(
            boom_kernel_resident,
            out_shape=jax.ShapeDtypeStruct((m, d_in), jnp.float32),
            grid_spec=pltpu.PrefetchScalarGridSpec(
                num_scalar_prefetch=0,
                grid=(num_row_tiles,),
                in_specs=[
                    pl.BlockSpec((tm, d_in),   lambda i: (i, 0)),  # x row tile
                    pl.BlockSpec((d_in, f_dim), lambda i: (0, 0)),  # W1 resident
                    pl.BlockSpec((1, f_dim),   lambda i: (0, 0)),  # b1 resident
                    pl.BlockSpec((f_dim, d_in), lambda i: (0, 0)),  # W2 resident
                    pl.BlockSpec((1, d_in),    lambda i: (0, 0)),  # b2 resident
                ],
                out_specs=pl.BlockSpec((tm, d_in), lambda i: (i, 0)),
            ),
            compiler_params=pltpu.CompilerParams(
                dimension_semantics=("parallel",),
                vmem_limit_bytes=vmem_limit),
        )(xm, w1, b1, w2, b2)
    else:
        # Streamed-weight fallback: boom dim is the trailing reduction axis.
        assert f_dim % tf == 0 and tf % 128 == 0
        slab_bytes = 2 * (d_in * tf + tf * d_in) * w1.dtype.itemsize
        vmem_est = tile_bytes + slab_bytes + bias_bytes
        vmem_limit = int(min(48 << 20, max(16 << 20, 2 * vmem_est)))
        out = pl.pallas_call(
            boom_kernel_streamed,
            out_shape=jax.ShapeDtypeStruct((m, d_in), jnp.float32),
            grid_spec=pltpu.PrefetchScalarGridSpec(
                num_scalar_prefetch=0,
                grid=(num_row_tiles, f_dim // tf),
                in_specs=[
                    pl.BlockSpec((tm, d_in), lambda i, j: (i, 0)),  # x (resident over j)
                    pl.BlockSpec((d_in, tf), lambda i, j: (0, j)),  # W1 column slab
                    pl.BlockSpec((1, tf),    lambda i, j: (0, j)),  # b1 slab
                    pl.BlockSpec((tf, d_in), lambda i, j: (j, 0)),  # W2 row slab
                    pl.BlockSpec((1, d_in),  lambda i, j: (0, 0)),  # b2
                ],
                out_specs=pl.BlockSpec((tm, d_in), lambda i, j: (i, 0)),
            ),
            compiler_params=pltpu.CompilerParams(
                dimension_semantics=("parallel", "arbitrary"),
                vmem_limit_bytes=vmem_limit),
        )(xm, w1, b1, w2, b2)

    return out.reshape(lead_shape + (d_in,))


def make_params(key, inout_dim, intermediate_dim):
    """Deterministic synthetic params. Weights (in, out) bf16; biases f32."""
    ks = jax.random.split(key, 4)
    s1 = 1.0 / jnp.sqrt(inout_dim)
    s2 = 1.0 / jnp.sqrt(intermediate_dim)
    return {
        "w1": (s1 * jax.random.normal(ks[0], (inout_dim, intermediate_dim),
                                      jnp.float32)).astype(jnp.bfloat16),
        "b1": s1 * jax.random.normal(ks[1], (1, intermediate_dim), jnp.float32),
        "w2": (s2 * jax.random.normal(ks[2], (intermediate_dim, inout_dim),
                                      jnp.float32)).astype(jnp.bfloat16),
        "b2": s2 * jax.random.normal(ks[3], (1, inout_dim), jnp.float32),
    }


def reference_forward(x, params):
    """Pure-JAX mirror of BOOMLayer.forward (eval mode) at the kernel's precision."""
    d_in = params["w1"].shape[0]
    xm = x.reshape(-1, d_in).astype(jnp.bfloat16)
    h = jnp.dot(xm, params["w1"], preferred_element_type=jnp.float32) + params["b1"]
    h = _leaky_relu(h)
    y = (jnp.dot(h.astype(jnp.bfloat16), params["w2"],
                 preferred_element_type=jnp.float32) + params["b2"])
    return y.reshape(x.shape[:-1] + (d_in,))


if __name__ == "__main__":
    # BOOM shapes: tokens of dim 256 blown up to 1024 and back.
    # M = BATCH*SEQ = 400 rows (not a multiple of the 256 row tile -> exercises
    # the ragged last tile; cdiv(400,256)=2 row tiles -> both v7x TCs used).
    BATCH, SEQ, INOUT_DIM, INTER_DIM = 4, 100, 256, 1024

    key = jax.random.PRNGKey(0)
    k_x, k_p = jax.random.split(key)
    x = jax.random.normal(k_x, (BATCH, SEQ, INOUT_DIM), jnp.float32)
    params = make_params(k_p, INOUT_DIM, INTER_DIM)

    ref = reference_forward(x, params)

    # Default (weight-resident) path.
    out = jax.block_until_ready(boom_forward(x, params))
    assert out.shape == (BATCH, SEQ, INOUT_DIM)
    assert jnp.allclose(out, ref, atol=1e-3, rtol=1e-3), (
        f"resident path max abs err = {jnp.max(jnp.abs(out - ref))}")

    # Streamed-weight fallback path (forced via a zero residency budget).
    out_s = jax.block_until_ready(
        boom_forward(x, params, resident_weight_budget=0))
    assert jnp.allclose(out_s, ref, atol=1e-3, rtol=1e-3), (
        f"streamed path max abs err = {jnp.max(jnp.abs(out_s - ref))}")

    print("KERNEL_OK")
</pallas_src>

<mosaic_0001>
module attributes {stable_mosaic.version = 11 : i64} {
  func.func @boom_kernel_resident(%arg0: i32, %arg1: memref<256x256xf32, #tpu.memory_space<vmem>>, %arg2: memref<256x1024xbf16, #tpu.memory_space<vmem>>, %arg3: memref<1x1024xf32, #tpu.memory_space<vmem>>, %arg4: memref<1024x256xbf16, #tpu.memory_space<vmem>>, %arg5: memref<1x256xf32, #tpu.memory_space<vmem>>, %arg6: memref<256x256xf32, #tpu.memory_space<vmem>>) attributes {dimension_semantics = [#tpu.dimension_semantics<parallel>], iteration_bounds = array<i64: 2>, scalar_prefetch = 0 : i64, scratch_operands = 0 : i64, tpu.core_type = #tpu.core_type<tc>, window_params = [{transform_indices = @transform_0, window_bounds = array<i64: 256, 256>}, {pipeline_mode = #tpu.pipeline_mode<synchronous>, transform_indices = @transform_1, window_bounds = array<i64: 256, 1024>}, {pipeline_mode = #tpu.pipeline_mode<synchronous>, transform_indices = @transform_2, window_bounds = array<i64: 1, 1024>}, {pipeline_mode = #tpu.pipeline_mode<synchronous>, transform_indices = @transform_3, window_bounds = array<i64: 1024, 256>}, {pipeline_mode = #tpu.pipeline_mode<synchronous>, transform_indices = @transform_4, window_bounds = array<i64: 1, 256>}, {transform_indices = @transform_5, window_bounds = array<i64: 256, 256>}]} {
    %c0 = arith.constant 0 : index
    %c0_0 = arith.constant 0 : index
    %0 = vector.load %arg1[%c0, %c0_0] : memref<256x256xf32, #tpu.memory_space<vmem>>, vector<256x256xf32>
    %1 = arith.truncf %0 : vector<256x256xf32> to vector<256x256xbf16>
    %c0_1 = arith.constant 0 : index
    %c0_2 = arith.constant 0 : index
    %2 = vector.load %arg2[%c0_1, %c0_2] : memref<256x1024xbf16, #tpu.memory_space<vmem>>, vector<256x1024xbf16>
    %cst = arith.constant dense<0.000000e+00> : vector<256x1024xf32>
    %3 = tpu.matmul %1, %2, %cst {dimension_numbers = #tpu.dot_dimension_numbers<[1], [0], [0], [1], [0, 0, 1, 1], [], []>} : vector<256x256xbf16>, vector<256x1024xbf16>, vector<256x1024xf32> -> vector<256x1024xf32>
    %c0_3 = arith.constant 0 : index
    %c0_4 = arith.constant 0 : index
    %4 = vector.load %arg3[%c0_3, %c0_4] : memref<1x1024xf32, #tpu.memory_space<vmem>>, vector<1x1024xf32>
    %5 = vector.broadcast %4 : vector<1x1024xf32> to vector<256x1024xf32>
    %6 = arith.addf %3, %5 : vector<256x1024xf32>
    %cst_5 = arith.constant 0.000000e+00 : f32
    %7 = vector.broadcast %cst_5 : f32 to vector<256x1024xf32>
    %8 = arith.cmpf ogt, %6, %7 : vector<256x1024xf32>
    %cst_6 = arith.constant 0.00999999977 : f32
    %9 = vector.broadcast %cst_6 : f32 to vector<256x1024xf32>
    %10 = arith.mulf %9, %6 : vector<256x1024xf32>
    %11 = arith.select %8, %6, %10 : vector<256x1024xi1>, vector<256x1024xf32>
    %12 = arith.truncf %11 : vector<256x1024xf32> to vector<256x1024xbf16>
    %c0_7 = arith.constant 0 : index
    %c0_8 = arith.constant 0 : index
    %13 = vector.load %arg4[%c0_7, %c0_8] : memref<1024x256xbf16, #tpu.memory_space<vmem>>, vector<1024x256xbf16>
    %cst_9 = arith.constant dense<0.000000e+00> : vector<256x256xf32>
    %14 = tpu.matmul %12, %13, %cst_9 {dimension_numbers = #tpu.dot_dimension_numbers<[1], [0], [0], [1], [0, 0, 1, 1], [], []>} : vector<256x1024xbf16>, vector<1024x256xbf16>, vector<256x256xf32> -> vector<256x256xf32>
    %c0_10 = arith.constant 0 : index
    %c0_11 = arith.constant 0 : index
    %15 = vector.load %arg5[%c0_10, %c0_11] : memref<1x256xf32, #tpu.memory_space<vmem>>, vector<1x256xf32>
    %16 = vector.broadcast %15 : vector<1x256xf32> to vector<256x256xf32>
    %17 = arith.addf %14, %16 : vector<256x256xf32>
    %c0_12 = arith.constant 0 : index
    %c0_13 = arith.constant 0 : index
    %18 = vector.load %arg6[%c0_12, %c0_13] : memref<256x256xf32, #tpu.memory_space<vmem>>, vector<256x256xf32>
    tpu.vector_store %arg6[%c0_12, %c0_13], %17 {strides = array<i32>} : memref<256x256xf32, #tpu.memory_space<vmem>>, vector<256x256xf32>,
    return
  }
  func.func @transform_0(%arg0: i32) -> (i32, i32) {
    %c0_i32 = arith.constant 0 : i32
    %c0_i32_0 = arith.constant 0 : i32
    return %arg0, %c0_i32 : i32, i32
  }
  func.func @transform_1(%arg0: i32) -> (i32, i32) {
    %c0_i32 = arith.constant 0 : i32
    %c0_i32_0 = arith.constant 0 : i32
    %c0_i32_1 = arith.constant 0 : i32
    return %c0_i32, %c0_i32_0 : i32, i32
  }
  func.func @transform_2(%arg0: i32) -> (i32, i32) {
    %c0_i32 = arith.constant 0 : i32
    %c0_i32_0 = arith.constant 0 : i32
    %c0_i32_1 = arith.constant 0 : i32
    return %c0_i32, %c0_i32_0 : i32, i32
  }
  func.func @transform_3(%arg0: i32) -> (i32, i32) {
    %c0_i32 = arith.constant 0 : i32
    %c0_i32_0 = arith.constant 0 : i32
    %c0_i32_1 = arith.constant 0 : i32
    return %c0_i32, %c0_i32_0 : i32, i32
  }
  func.func @transform_4(%arg0: i32) -> (i32, i32) {
    %c0_i32 = arith.constant 0 : i32
    %c0_i32_0 = arith.constant 0 : i32
    %c0_i32_1 = arith.constant 0 : i32
    return %c0_i32, %c0_i32_0 : i32, i32
  }
  func.func @transform_5(%arg0: i32) -> (i32, i32) {
    %c0_i32 = arith.constant 0 : i32
    %c0_i32_0 = arith.constant 0 : i32
    return %arg0, %c0_i32 : i32, i32
  }
}

</mosaic_0001>

<bundles_post_ra>
// kernel: tpu_custom_call.1
= control target key start
LH: loop header
LB: loop body
LE: loop exit
PB: predicated region body
PF: predicated region fallthrough
CT: control target
= control target key end

     0   :  { %10 = vsyncpa [#allocation3], 0  ;;  %s6665_s0 = inlined_call_operand.hbm [shape: f32[400,256], index: 0, kind: input, shape index: {}]   ;;  %s6666_s1 = inlined_call_operand.hbm [shape: bf16[256,1024], index: 1, kind: input, shape index: {}]   ;;  %s6667_s2 = inlined_call_operand.hbm [shape: f32[1,1024], index: 2, kind: input, shape index: {}]   ;;  %s6668_s3 = inlined_call_operand.hbm [shape: bf16[1024,256], index: 3, kind: input, shape index: {}]   ;;  %s6669_s4 = inlined_call_operand.vmem [shape: f32[1,256], index: 4, kind: input, shape index: {}]   ;;  %s6670_s5 = inlined_call_operand.hbm [shape: f32[400,256], index: 5, kind: output, shape index: {}]  }
   0x1   :  { %12 = vsyncpa [#allocation3 + $0x1], 0 }
   0x2   :  { %13 = vsyncpa [#allocation6], 0 }
   0x3   :  { %14 = vsyncpa [#allocation9], 0 }
   0x4   :  { %15 = vsyncpa [#allocation4], 0 }
   0x5   :  { %17 = vsyncpa [#allocation4 + $0x1], 0  ;;  %s5672_s18 = smov 0   ;;  %s5674_s19 = smov 0  }
   0x6   :  { %s5676_s20 = smov 0   ;;  %s5678_s21 = smov 0  }
   0x7 LB: > { %s5693_s22 = sadd.s32 4294967295, %s5627_s21   ;;  %s4619_s23 = sadd.s32 4294967294, %s5627_s21   ;;  %s5627_s21 = sphi %s5678_s21, %s6701_s21   ;;  %s5623_s20 = sphi %s5676_s20, %s6705_s20   ;;  %s5619_s19 = sphi %s5674_s19, %s6704_s19   ;;  %s5615_s18 = sphi %s5672_s18, %s6703_s18  }
   0x8   : > { %s5697_s24 = sadd.s32 1, %s5627_s21   ;;  %s30_s25 = sadd.s32 1, %s5623_s20 }
   0x9   : > { %6679 = sst [smem:[#allocation15_spill]] %s5697_s24  ;;  %s27_s26 = ssub.s32 %s5627_s21, %s5697_s24 }
   0xa   : > { %p37_p0 = scmp.ne.s32.totalorder %s5623_s20, %s5619_s19  ;;  %p28_p1 = scmp.eq.s32.totalorder %s27_s26, 0 }
   0xb   : > { %p38_p2 = scmp.eq.s32.totalorder %s5627_s21, 0  ;;  %p43_p3 = scmp.ne.s32.totalorder %s5619_s19, %s5615_s18 }
   0xc   : > { %p6671_p4 = scmp.eq.s32.totalorder %s5693_s22, 0  ;;  %p151_p7 = scmp.eq.s32.totalorder %s5693_s22, 1 }
   0xd   : > { %s5709_s27 = scalar_select %p28_p1, %s5623_s20, %s30_s25  }
   0xe   : > { %p5711_p5 = por %p38_p2, %p37_p0  ;;  %p5717_p6 = por %p6671_p4, %p43_p3 }
   0xf   : > { %6680 = sst [smem:[#allocation16_spill]] %s5709_s27  ;;  %p157_p8 = scmp.eq.s32.totalorder %s4619_s23, 1 }
  0x10   : > { %s6681_s28 = scalar_select %p5711_p5, 1, 0 }
  0x11   : > { %s6682_s29 = scalar_select %p5717_p6, 1, 0 }
  0x12   : > { %p4620_p9 = scmp.ge.s32.totalorder %s5627_s21, 1  ;;  %p164_p10 = scmp.lt.s32.totalorder %s5627_s21, 3 }
  0x13   : > { %p5724_p11 = por %p151_p7, %p37_p0  ;;  %p5728_p12 = por %p157_p8, %p43_p3 }
  0x14   : > { %p5732_p13 = pnand %p4620_p9, %p164_p10  ;;  %s5629_s8 = smov [#allocation5]  }
  0x15   : > { %s6683_s30 = scalar_select %p5724_p11, 1, 0 }
  0x16   : > { %s6684_s6 = scalar_select %p5728_p12, 1, 0 }
  0x17   : > { %s6685_s7 = scalar_select %p5732_p13, 1, 0 }
  0x18   : > { %p5183_p1 = pneg %p5732_p13  ;;  %s176_s9 = sshll.u32 %s5629_s8, 4  ;;  %s177_s9 = int_to_ptr.vmem [resolvable:$true] %s176_s9 }
  0x19   : > { %s5630_s11 = smov [#allocation7]   ;;  %s5441_s15 = scalar_lea.hbm %s6666_s1, 16384 }
  0x1a   : > { %p5740_p2 = pnand %p5183_p1, %p6671_p4  ;;  %s190_s12 = sshll.u32 %s5630_s11, 4  ;;  %s5744_s12 = int_to_ptr.vmem [resolvable:$true] %s190_s12 }
  0x1b   : > { %p5442_p0 = scmp.ne.s32.totalorder %s6666_s1, %s5441_s15  ;;  %p5448_p9 = scmp.lt.u32.totalorder %s5441_s15, %s6666_s1 }
  0x1c   : > { %p5754_p3 = pneg %p5740_p2 }
  0x1e   : > { %p5444_p7 = pnand %p5754_p3, %p5442_p0 }
  0x20   : > { %p5445_p8 = pneg %p5444_p7 }
  0x22   : > { %p5450_p10 = pnand %p5448_p9, %p5445_p8 }
  0x24   : > { %5453 = shalt.err (!%p5450_p10)
}
  0x25   : > { %s5454_s8 = scalar_lea.vmem %s177_s9, 16384  ;;  %p5462_p11 = scmp.lt.s32.totalorder %s177_s9, %s177_s9 }
  0x26   : > { %p5455_p1 = scmp.ne.s32.totalorder %s177_s9, %s5454_s8  ;;  %p5463_p6 = scmp.lt.s32.totalorder %s5454_s8, %s5454_s8 }
  0x28   : > { %p5457_p4 = pnand %p5455_p1, %p5754_p3  ;;  %p5464_p13 = por %p5463_p6, %p5462_p11 }
  0x2a   : > { %p5458_p12 = pneg %p5457_p4 }
  0x2c   : > { %p5465_p5 = pnand %p5464_p13, %p5458_p12 }
  0x2e   : > { %5468 = shalt.err (!%p5465_p5)
}
  0x2f   : > { %s5631_s11 = smov 512   ;;  %s5632_s13 = smov 32  }
  0x30   : > { %5186 = dma.hbm_to_vmem [thread:$0]  (!%p5740_p2), %s6666_s1, 16384, %s177_s9, [#allocation6], %s5631_s11, %s5631_s11, %s5632_s13  }
  0x31   : > { %s5469_s25 = scalar_lea.hbm %s6667_s2, 128 }
  0x32   : > { %p5470_p4 = scmp.ne.s32.totalorder %s6667_s2, %s5469_s25  ;;  %p5476_p11 = scmp.lt.u32.totalorder %s5469_s25, %s6667_s2 }
  0x34   : > { %p5472_p6 = pnand %p5470_p4, %p5754_p3 }
  0x36   : > { %p5473_p5 = pneg %p5472_p6 }
  0x38   : > { %p5478_p12 = pnand %p5476_p11, %p5473_p5 }
  0x3a   : > { %5481 = shalt.err (!%p5478_p12)
}
  0x3b   : > { %s5482_s9 = scalar_lea.vmem %s5744_s12, 128  ;;  %p5490_p8 = scmp.lt.s32.totalorder %s5744_s12, %s5744_s12 }
  0x3c   : > { %p5483_p13 = scmp.ne.s32.totalorder %s5744_s12, %s5482_s9  ;;  %p5491_p9 = scmp.lt.s32.totalorder %s5482_s9, %s5482_s9 }
  0x3e   : > { %p5485_p0 = pnand %p5483_p13, %p5754_p3  ;;  %p5492_p10 = por %p5491_p9, %p5490_p8 }
  0x40   : > { %p5486_p7 = pneg %p5485_p0 }
  0x42   : > { %p5493_p1 = pnand %p5492_p10, %p5486_p7 }
  0x44   : > { %5496 = shalt.err (!%p5493_p1)
}
  0x45   : > { %5189 = dma.hbm_to_vmem [thread:$0]  (!%p5740_p2), %s6667_s2, 128, %s5744_s12, [#allocation6]  }
  0x46   : > { %s5633_s11 = smov [#allocation8]   ;;  %s5497_s16 = scalar_lea.hbm %s6668_s3, 16384 }
  0x47   : > { %s200_s13 = sshll.u32 %s5633_s11, 4  ;;  %p5498_p4 = scmp.ne.s32.totalorder %s6668_s3, %s5497_s16  ;;  %s201_s13 = int_to_ptr.vmem [resolvable:$true] %s200_s13 }
  0x48   : > { %p5504_p11 = scmp.lt.u32.totalorder %s5497_s16, %s6668_s3 }
  0x49   : > { %p5500_p6 = pnand %p5498_p4, %p5754_p3 }
  0x4b   : > { %p5501_p5 = pneg %p5500_p6 }
  0x4d   : > { %p5506_p12 = pnand %p5504_p11, %p5501_p5 }
  0x4f   : > { %5509 = shalt.err (!%p5506_p12)
}
  0x50   : > { %s5510_s12 = scalar_lea.vmem %s201_s13, 16384  ;;  %p5518_p8 = scmp.lt.s32.totalorder %s201_s13, %s201_s13 }
  0x51   : > { %p5511_p13 = scmp.ne.s32.totalorder %s201_s13, %s5510_s12  ;;  %p5519_p9 = scmp.lt.s32.totalorder %s5510_s12, %s5510_s12 }
  0x53   : > { %p5513_p0 = pnand %p5511_p13, %p5754_p3  ;;  %p5520_p10 = por %p5519_p9, %p5518_p8 }
  0x55   : > { %p5514_p7 = pneg %p5513_p0 }
  0x57   : > { %p5521_p1 = pnand %p5520_p10, %p5514_p7 }
  0x59   : > { %5524 = shalt.err (!%p5521_p1)
}
  0x5a   : > { %s5634_s9 = smov 128   ;;  %s5635_s24 = smov 8  }
  0x5b   : > { %5192 = dma.hbm_to_vmem [thread:$0]  (!%p5740_p2), %s6668_s3, 16384, %s201_s13, [#allocation9], %s5634_s9, %s5634_s9, %s5635_s24  }
  0x5c   : > { %p4624_p4 = scmp.ge.s32.totalorder %s5627_s21, 2 }
  0x5d   : > { %p6688_p3 = scmp.ne.s32.totalorder (!%p4624_p4), %s6681_s28, 0 }
  0x5e   : > { %213 = sbr.rel (%p4624_p4) target bundleno = 136 (0x88), region = 32 }
  0x65   : > { %216 = sbr.rel (!%p6688_p3) target bundleno = 136 (0x88), region = 36  ;;  %s217_s23 = sand.u32 (%p6688_p3), 1, %s5623_s20  }
  0x66   : > { %s4626_s14 = sshll.u32 (%p6688_p3), %s5627_s21, 5  ;;  %s4625_s15 = sshll.u32 (%p6688_p3), %s217_s23, 9 }
  0x67   : > { %s223_s16 = ssub.s32 (%p6688_p3), 50, %s4626_s14  ;;  %s5821_s17 = scalar_lea.sflag (%p6688_p3), [#allocation3], %s217_s23 }
  0x68   : > { %p224_p6 = scmp.lt.s32.totalorder (%p6688_p3), %s223_s16, 32  ;;  %s221_s25 = scalar_lea.vmem (%p6688_p3), [#allocation2], %s4625_s15 }
  0x6c   : > { %s6707_s16 = smov (!%p224_p6, %s223_s16), 32 }
  0x6d   : > { %s5818_s10 = sshll.u32 %s6707_s16, 8 }
  0x6e   : > { %s229_s13 = ssub.s32 8192, %s5818_s10 }
  0x6f   : > { %230 = vsyncadd %s5821_s17, %s229_s13  ;;  %p4629_p2 = scmp.ne.s32.totalorder %s5818_s10, 0  ;;  %s4909_s28 = sshll.u32 %s5627_s21, 13 }
  0x70   : > { %s5829_s12 = scalar_lea.hbm %s6665_s0, %s4909_s28  ;;  %s236_s9 = sshll.u32 %s221_s25, 4  ;;  %s5831_s9 = int_to_ptr.vmem [resolvable:$true] %s236_s9 }
  0x71   : > { %s5525_s24 = scalar_lea.hbm %s5829_s12, %s5818_s10  ;;  %s5529_s23 = scalar_lea.hbm %s6665_s0, 12800 }
  0x72   : > { %p5526_p5 = scmp.ne.s32.totalorder %s5829_s12, %s5525_s24  ;;  %p5530_p13 = scmp.lt.u32.totalorder %s5829_s12, %s6665_s0 }
  0x73   : > { %p5531_p0 = scmp.lt.u32.totalorder %s5529_s23, %s5525_s24  ;;  %p5533_p8 = scmp.lt.u32.totalorder %s5525_s24, %s5829_s12 }
  0x74   : > { %p5527_p11 = pnand %p5526_p5, %p4629_p2 }
  0x75   : > { %p5532_p7 = por %p5531_p0, %p5530_p13 }
  0x76   : > { %p5528_p12 = pneg %p5527_p11 }
  0x77   : > { %p5534_p9 = por %p5533_p8, %p5532_p7 }
  0x79   : > { %p5535_p10 = pnand %p5534_p9, %p5528_p12 }
  0x7b   : > { %5538 = shalt.err (!%p5535_p10)
}
  0x7c   : > { %s5539_s16 = scalar_lea.vmem %s5831_s9, %s5818_s10  ;;  %s5636_s13 = smov [#allocation2]  }
  0x7d   : > { %p5540_p1 = scmp.ne.s32.totalorder %s5831_s9, %s5539_s16  ;;  %s5543_s25 = sshll.u32 %s5636_s13, 4  ;;  %s5544_s25 = int_to_ptr.vmem [resolvable:$false] %s5543_s25 }
  0x7e   : > { %s5545_s28 = scalar_lea.vmem %s5544_s25, 16384  ;;  %p5546_p5 = scmp.lt.s32.totalorder %s5831_s9, %s5544_s25 }
  0x7f   : > { %p5541_p3 = pnand %p5540_p1, %p4629_p2  ;;  %p5547_p11 = scmp.lt.s32.totalorder %s5545_s28, %s5539_s16 }
  0x81   : > { %p5542_p6 = pneg %p5541_p3  ;;  %p5548_p13 = por %p5547_p11, %p5546_p5 }
  0x83   : > { %p5549_p0 = pnand %p5548_p13, %p5542_p6 }
  0x85   : > { %5552 = shalt.err (!%p5549_p0)
}
  0x86   : > { %s5637_s26 = smov 256   ;;  %s5638_s8 = smov 16  }
  0x87   : > { %242 = dma.hbm_to_vmem [thread:$0]  (%p4629_p2), %s5829_s12, %s5818_s10, %s5831_s9, %s5821_s17, %s5637_s26, %s5637_s26, %s5638_s8  }
  0x88 PF: > { %p6689_p12 = scmp.ne.s32.totalorder %s6685_s7, 0 }
  0x8a   : > { %248 = sbr.rel (%p6689_p12) target bundleno = 1196 (0x4ac), region = 40 }
  0x91   : > { %s5861_s24 = sand.u32 1, %s5619_s19   ;;  %p6690_p7 = scmp.ne.s32.totalorder %s6682_s29, 0 }
  0x92   : > { %s4635_s27 = sshll.u32 %s5861_s24, 9  ;;  %s251_s11 = scalar_lea.sflag [#allocation3], %s5861_s24 }
  0x93   : > { %s5867_s23 = scalar_lea.vmem [#allocation2], %s4635_s27 }
  0x94   : > { %5598 = dma.done.wait (%p6690_p7), %s251_s11, 8192  }
  0x95   : > { %5600 = vsyncadd (%p6690_p7), %s251_s11, 4294959104  ;;  %p6691_p2 = scmp.eq.s32.totalorder %s5693_s22, 0 }
  0x97   : > { %5602 = dma.done.wait (%p6691_p2), [#allocation6], 16512   ;;  %p6692_p8 = pmov %p6691_p2 }
  0x98   : > { %p6693_p9 = pmov %p6691_p2 }
  0x99   : > { %5604 = vsyncadd (%p6692_p8), [#allocation6], 4294950784 }
  0x9a   : > { %5606 = dma.done.wait (%p6693_p9), [#allocation9], 16384   ;;  %p6694_p10 = pmov %p6691_p2 }
  0x9b   : > { %v401_v0 = vld [vmem:[#allocation5] sm:$0xff]  ;;  %v306_v17 = vld [vmem:[%s5867_s23 + $0x8] sm:$0xff]  ;;  %v308_v18 = vld [vmem:[%s5867_s23 + $0x18] sm:$0xff]  ;;  %s6474_s10 = scalar_lea.vmem [#allocation10], %s4635_s27  ;;  %s4496_s17 = scalar_lea.sflag [#allocation4], %s5861_s24 }
  0x9c   : > { %5608 = vsyncadd (%p6694_p10), [#allocation9], 4294950912  ;;  %v405_v1 = vld [vmem:[#allocation5 + $0x20] sm:$0xff]  ;;  %v5883_v20 = vpack.c.bf16 %v308_v18, %v306_v17  ;;  %p6699_p1 = scmp.ne.s32.totalorder %s6683_s30, 0 }
  0x9d   : > { %v409_v2 = vld [vmem:[#allocation5 + $0x40] sm:$0xff]  ;;  %v4641_v3 = vcombine.high %v401_v0, %v405_v1  ;;  %v4640_v4 = vcombine.low %v401_v0, %v405_v1  ;;  %v402_v1 = vld [vmem:[#allocation5 + $0x8] sm:$0xff]  ;;  %s4897_s12 = sshll.u32 (%p6699_p1), %s5693_s22, 5 }
  0x9e   : > { %v413_v5 = vld [vmem:[#allocation5 + $0x60] sm:$0xff]  ;;  %1243 = vmatprep.mubr.bf16.mxu1 %v5883_v20  ;;  %s4504_s9 = ssub.s32 (%p6699_p1), 50, %s4897_s12 }
  0x9f   : > { %v4649_v6 = vcombine.high %v409_v2, %v413_v5  ;;  %v417_v7 = vld [vmem:[#allocation5 + $0x80] sm:$0xff]  ;;  %1211 = vmatprep.subr.bf16.mxu1 %v4641_v3  ;;  %v4648_v9 = vcombine.low %v409_v2, %v413_v5  ;;  %v406_v2 = vld [vmem:[#allocation5 + $0x28] sm:$0xff]  ;;  %v307_v5 = vld [vmem:[%s5867_s23 + $0x10] sm:$0xff]  ;;  %p4505_p3 = scmp.lt.s32.totalorder (%p6699_p1), %s4504_s9, 32 }
  0xa0   : > { %v421_v8 = vld [vmem:[#allocation5 + $0xa0] sm:$0xff]  ;;  %1212 = vmatpush1.bf16.msra.mxu1 %v4640_v4 }
  0xa1   : > { %1213 = vmatprep.subr.bf16.mxu1 %v4649_v6  ;;  %v4657_v10 = vcombine.high %v417_v7, %v421_v8  ;;  %v425_v11 = vld [vmem:[#allocation5 + $0xc0] sm:$0xff]  ;;  %v4656_v13 = vcombine.low %v417_v7, %v421_v8  ;;  %v310_v6 = vld [vmem:[%s5867_s23 + $0x28] sm:$0xff]  ;;  %v312_v7 = vld [vmem:[%s5867_s23 + $0x38] sm:$0xff] }
  0xa2   : > { %v429_v12 = vld [vmem:[#allocation5 + $0xe0] sm:$0xff] }
  0xa3   : > { %v4665_v14 = vcombine.high %v425_v11, %v429_v12  ;;  %v433_v15 = vld [vmem:[#allocation5 + $0x100] sm:$0xff]  ;;  %v4664_v19 = vcombine.low %v425_v11, %v429_v12  ;;  %v4643_v11 = vcombine.high %v402_v1, %v406_v2 }
  0xa4   : > { %1214 = vmatpush1.bf16.msra.mxu1 %v4648_v9  ;;  %v437_v16 = vld [vmem:[#allocation5 + $0x120] sm:$0xff]  ;;  %v410_v9 = vld [vmem:[#allocation5 + $0x48] sm:$0xff] }
  0xa5   : > { %1215 = vmatprep.subr.bf16.mxu1 %v4657_v10  ;;  %v4673_v21 = vcombine.high %v433_v15, %v437_v16  ;;  %v441_v22 = vld [vmem:[#allocation5 + $0x140] sm:$0xff]  ;;  %v4672_v24 = vcombine.low %v433_v15, %v437_v16  ;;  %v414_v10 = vld [vmem:[#allocation5 + $0x68] sm:$0xff] }
  0xa6   : > { %v445_v23 = vld [vmem:[#allocation5 + $0x160] sm:$0xff]  ;;  %v418_v15 = vld [vmem:[#allocation5 + $0x88] sm:$0xff]  ;;  %v4651_v17 = vcombine.high %v410_v9, %v414_v10 }
  0xa7   : > { %v4681_v25 = vcombine.high %v441_v22, %v445_v23  ;;  %v449_v26 = vld [vmem:[#allocation5 + $0x180] sm:$0xff]  ;;  %v4680_v28 = vcombine.low %v441_v22, %v445_v23  ;;  %v422_v16 = vld [vmem:[#allocation5 + $0xa8] sm:$0xff]  ;;  %v316_v22 = vld [vmem:[%s5867_s23 + $0x58] sm:$0xff] }
  0xa8   : > { %1216 = vmatpush1.bf16.msra.mxu1 %v4656_v13  ;;  %v453_v27 = vld [vmem:[#allocation5 + $0x1a0] sm:$0xff]  ;;  %v4642_v13 = vcombine.low %v402_v1, %v406_v2  ;;  %v5899_v23 = vld [vmem:[#allocation5 + $0x10] sm:$0xff] }
  0xa9   : > { %1217 = vmatprep.subr.bf16.mxu1 %v4665_v14  ;;  %v4689_v29 = vcombine.high %v449_v26, %v453_v27  ;;  %v457_v30 = vld [vmem:[#allocation5 + $0x1c0] sm:$0xff]  ;;  %v4688_v32 = vcombine.low %v449_v26, %v453_v27  ;;  %v5892_v14 = vpack.c.bf16 %v312_v7, %v310_v6  ;;  %v426_v26 = vld [vmem:[#allocation5 + $0xc8] sm:$0xff]  ;;  %v323_v1 = vld [vmem:[%s5867_s23 + $0x90] sm:$0xff] }
  0xaa   : > { %v461_v31 = vld [vmem:[#allocation5 + $0x1e0] sm:$0xff]  ;;  %v430_v27 = vld [vmem:[#allocation5 + $0xe8] sm:$0xff] }
  0xab   : > { %v4697_v33 = vcombine.high %v457_v30, %v461_v31  ;;  %v465_v34 = vld [vmem:[#allocation5 + $0x200] sm:$0xff]  ;;  %v4696_v36 = vcombine.low %v457_v30, %v461_v31  ;;  %v474_v7 = vld [vmem:[#allocation5 + $0x248] sm:$0xff] }
  0xac   : > { %1218 = vmatpush1.bf16.msra.mxu1 %v4664_v19  ;;  %v469_v35 = vld [vmem:[#allocation5 + $0x220] sm:$0xff]  ;;  %v311_v19 = vld [vmem:[%s5867_s23 + $0x30] sm:$0xff] }
  0xad   : > { %1219 = vmatprep.subr.bf16.mxu1 %v4673_v21  ;;  %v4705_v37 = vcombine.high %v465_v34, %v469_v35  ;;  %v473_v38 = vld [vmem:[#allocation5 + $0x240] sm:$0xff]  ;;  %v4704_v40 = vcombine.low %v465_v34, %v469_v35  ;;  %v314_v21 = vld [vmem:[%s5867_s23 + $0x48] sm:$0xff]  ;;  %v4667_v35 = vcombine.high %v426_v26, %v430_v27 }
  0xae   : > { %v477_v39 = vld [vmem:[#allocation5 + $0x260] sm:$0xff]  ;;  %v5908_v31 = vpack.c.bf16 %v316_v22, %v314_v21  ;;  %v438_v34 = vld [vmem:[#allocation5 + $0x128] sm:$0xff]  ;;  %v327_v21 = vld [vmem:[%s5867_s23 + $0xb0] sm:$0xff] }
  0xaf   : > { %v4713_v41 = vcombine.high %v473_v38, %v477_v39  ;;  %v481_v42 = vld [vmem:[#allocation5 + $0x280] sm:$0xff]  ;;  %v4712_v44 = vcombine.low %v473_v38, %v477_v39  ;;  %v318_v38 = vld [vmem:[%s5867_s23 + $0x68] sm:$0xff]  ;;  %v320_v39 = vld [vmem:[%s5867_s23 + $0x78] sm:$0xff] }
  0xb0   : > { %1220 = vmatpush1.bf16.msra.mxu1 %v4672_v24  ;;  %v485_v43 = vld [vmem:[#allocation5 + $0x2a0] sm:$0xff]  ;;  %v5901_v24 = vld [vmem:[#allocation5 + $0x30] sm:$0xff]  ;;  %6695 = vst [vmem:[#allocation17_spill] sm:$0xff] %v5908_v31 }
  0xb1   : > { %1221 = vmatprep.subr.bf16.mxu1 %v4681_v25  ;;  %v4721_v45 = vcombine.high %v481_v42, %v485_v43  ;;  %v489_v46 = vld [vmem:[#allocation5 + $0x2c0] sm:$0xff]  ;;  %v4720_v48 = vcombine.low %v481_v42, %v485_v43  ;;  %v4650_v25 = vcombine.low %v410_v9, %v414_v10  ;;  %v446_v42 = vld [vmem:[#allocation5 + $0x168] sm:$0xff] }
  0xb2   : > { %v493_v47 = vld [vmem:[#allocation5 + $0x2e0] sm:$0xff] }
  0xb3   : > { %v497_v49 = vld [vmem:[#allocation5 + $0x300] sm:$0xff]  ;;  %v4729_v51 = vcombine.high %v489_v46, %v493_v47  ;;  %v4728_v52 = vcombine.low %v489_v46, %v493_v47  ;;  %v450_v47 = vld [vmem:[#allocation5 + $0x188] sm:$0xff] }
  0xb4   : > { %1222 = vmatpush1.bf16.msra.mxu1 %v4680_v28  ;;  %v501_v50 = vld [vmem:[#allocation5 + $0x320] sm:$0xff]  ;;  %v4644_v28 = vcombine.low %v5899_v23, %v5901_v24 }
  0xb5   : > { %1223 = vmatprep.subr.bf16.mxu1 %v4689_v29  ;;  %v505_v53 = vld [vmem:[#allocation5 + $0x340] sm:$0xff]  ;;  %v4737_v55 = vcombine.high %v497_v49, %v501_v50  ;;  %v4736_v56 = vcombine.low %v497_v49, %v501_v50  ;;  %v4659_v29 = vcombine.high %v418_v15, %v422_v16 }
  0xb6   : > { %v509_v54 = vld [vmem:[#allocation5 + $0x360] sm:$0xff] }
  0xb7   : > { %v513_v57 = vld [vmem:[#allocation5 + $0x380] sm:$0xff]  ;;  %v4745_v59 = vcombine.high %v505_v53, %v509_v54  ;;  %v4744_v60 = vcombine.low %v505_v53, %v509_v54  ;;  %v324_v53 = vld [vmem:[%s5867_s23 + $0x98] sm:$0xff] }
  0xb8   : > { %1224 = vmatpush1.bf16.msra.mxu1 %v4688_v32  ;;  %v517_v58 = vld [vmem:[#allocation5 + $0x3a0] sm:$0xff]  ;;  %v4658_v32 = vcombine.low %v418_v15, %v422_v16  ;;  %v5249_v15 = vld [vmem:[#allocation8] ss:$8 sps:$4 sm:$0xff]  }
  0xb9   : > { %1225 = vmatprep.subr.bf16.mxu1 %v4697_v33  ;;  %v521_v61 = vld [vmem:[#allocation5 + $0x3c0] sm:$0xff]  ;;  %v4753_v63 = vcombine.high %v513_v57, %v517_v58  ;;  %v4752_v0 = vcombine.low %v513_v57, %v517_v58  ;;  %v434_v33 = vld [vmem:[#allocation5 + $0x108] sm:$0xff] }
  0xba   : > { %v525_v62 = vld [vmem:[#allocation5 + $0x3e0] sm:$0xff]  ;;  %v4675_v43 = vcombine.high %v434_v33, %v438_v34  ;;  %v4674_v46 = vcombine.low %v434_v33, %v438_v34  ;;  %v482_v16 = vld [vmem:[#allocation5 + $0x288] sm:$0xff] }
  0xbb   : > { %v4761_v3 = vcombine.high %v521_v61, %v525_v62  ;;  %v305_v4 = vld [vmem:[%s5867_s23] sm:$0xff]  ;;  %v4760_v8 = vcombine.low %v521_v61, %v525_v62  ;;  %v466_v62 = vld [vmem:[#allocation5 + $0x208] sm:$0xff] }
  0xbc   : > { %1226 = vmatpush1.bf16.msra.mxu1 %v4696_v36  ;;  %v5890_v12 = vpack.c.bf16 %v307_v5, %v305_v4  ;;  %v309_v18 = vld [vmem:[%s5867_s23 + $0x20] sm:$0xff]  ;;  %v326_v4 = vld [vmem:[%s5867_s23 + $0xa8] sm:$0xff]  ;;  %v328_v5 = vld [vmem:[%s5867_s23 + $0xb8] sm:$0xff] }
  0xbd   : > { %1227 = vmatprep.subr.bf16.mxu1 %v4705_v37  ;;  %v5906_v30 = vpack.c.bf16 %v311_v19, %v309_v18  ;;  %v313_v36 = vld [vmem:[%s5867_s23 + $0x40] sm:$0xff]  ;;  %v315_v37 = vld [vmem:[%s5867_s23 + $0x50] sm:$0xff]  ;;  %v5938_v10 = vpack.c.bf16 %v328_v5, %v326_v4  ;;  %v490_v33 = vld [vmem:[#allocation5 + $0x2c8] sm:$0xff] }
  0xbe   : > { %v317_v50 = vld [vmem:[%s5867_s23 + $0x60] sm:$0xff]  ;;  %v494_v34 = vld [vmem:[#allocation5 + $0x2e8] sm:$0xff] }
  0xbf   : > { %v325_v18 = vld [vmem:[%s5867_s23 + $0xa0] sm:$0xff]  ;;  %v5265_v5 = vld [vmem:[#allocation8 + $0x64] ss:$8 sps:$4 sm:$0xff]  }
  0xc0   : > { %1228 = vmatpush1.bf16.msra.mxu1 %v4704_v40  ;;  %v4666_v40 = vcombine.low %v426_v26, %v430_v27  ;;  %v5250_v19 = vld [vmem:[#allocation8 + $0x14] ss:$8 sps:$4 sm:$0xff]   ;;  %v5253_v26 = vld [vmem:[#allocation8 + $0x24] ss:$8 sps:$4 sm:$0xff]   ;;  %v5264_v4 = vld [vmem:[#allocation8 + $0x50] ss:$8 sps:$4 sm:$0xff]  }
  0xc1   : > { %1229 = vmatprep.subr.bf16.mxu1 %v4713_v41  ;;  %v442_v41 = vld [vmem:[#allocation5 + $0x148] sm:$0xff] }
  0xc2   : > { %v4683_v49 = vcombine.high %v442_v41, %v446_v42  ;;  %v4682_v54 = vcombine.low %v442_v41, %v446_v42  ;;  %v330_v27 = vld [vmem:[%s5867_s23 + $0xc8] sm:$0xff]  ;;  %v329_v42 = vld [vmem:[%s5867_s23 + $0xc0] sm:$0xff] }
  0xc3   : > { %v502_v41 = vld [vmem:[#allocation5 + $0x328] sm:$0xff] }
  0xc4   : > { %1230 = vmatpush1.bf16.msra.mxu1 %v4712_v44  ;;  %v5916_v44 = vpack.c.bf16 %v315_v37, %v313_v36 }
  0xc5   : > { %1231 = vmatprep.subr.bf16.mxu1 %v4721_v45  ;;  %v5918_v45 = vpack.c.bf16 %v320_v39, %v318_v38  ;;  %v4731_v38 = vcombine.high %v490_v33, %v494_v34  ;;  %v5255_v39 = vld [vmem:[#allocation8 + $0x20] ss:$8 sps:$4 sm:$0xff]  }
  0xc8   : > { %1232 = vmatpush1.bf16.msra.mxu1 %v4720_v48  ;;  %v454_v48 = vld [vmem:[#allocation5 + $0x1a8] sm:$0xff] }
  0xc9   : > { %1233 = vmatprep.subr.bf16.mxu1 %v4729_v51  ;;  %v319_v51 = vld [vmem:[%s5867_s23 + $0x70] sm:$0xff]  ;;  %v4691_v57 = vcombine.high %v450_v47, %v454_v48 }
  0xca   : > { %v5926_v58 = vpack.c.bf16 %v319_v51, %v317_v50  ;;  %v334_v50 = vld [vmem:[%s5867_s23 + $0xe8] sm:$0xff]  ;;  %v336_v51 = vld [vmem:[%s5867_s23 + $0xf8] sm:$0xff] }
  0xcc   : > { %1234 = vmatpush1.bf16.msra.mxu1 %v4728_v52  ;;  %v322_v52 = vld [vmem:[%s5867_s23 + $0x88] sm:$0xff] }
  0xcd   : > { %1235 = vmatprep.subr.bf16.mxu1 %v4737_v55  ;;  %v458_v55 = vld [vmem:[#allocation5 + $0x1c8] sm:$0xff] }
  0xd0   : > { %1236 = vmatpush1.bf16.msra.mxu1 %v4736_v56  ;;  %v462_v56 = vld [vmem:[#allocation5 + $0x1e8] sm:$0xff] }
  0xd1   : > { %1237 = vmatprep.subr.bf16.mxu1 %v4745_v59  ;;  %v5928_v59 = vpack.c.bf16 %v324_v53, %v322_v52  ;;  %v4699_v61 = vcombine.high %v458_v55, %v462_v56  ;;  %v4698_v2 = vcombine.low %v458_v55, %v462_v56  ;;  %v506_v53 = vld [vmem:[#allocation5 + $0x348] sm:$0xff]  ;;  %v5958_v56 = vpack.c.bf16 %v336_v51, %v334_v50 }
  0xd2   : > { %v5279_v51 = vld [vmem:[#allocation8 + $0xa0] ss:$8 sps:$4 sm:$0xff]  }
  0xd4   : > { %1238 = vmatpush1.bf16.msra.mxu1 %v4744_v60  ;;  %v4690_v60 = vcombine.low %v450_v47, %v454_v48  ;;  %v4730_v47 = vcombine.low %v490_v33, %v494_v34  ;;  %v5258_v48 = vld [vmem:[#allocation8 + $0x30] ss:$8 sps:$4 sm:$0xff]   ;;  %v4645_v34 = vcombine.high %v5899_v23, %v5901_v24  ;;  %v435_v23 = vld [vmem:[#allocation5 + $0x110] sm:$0xff] }
  0xd5   : > { %1239 = vmatprep.subr.bf16.mxu1 %v4753_v63  ;;  %v470_v63 = vld [vmem:[#allocation5 + $0x228] sm:$0xff]  ;;  %v344_v33 = vld [vmem:[%s5867_s23 + $0x138] sm:$0xff]  ;;  %v439_v24 = vld [vmem:[#allocation5 + $0x130] sm:$0xff] }
  0xd6   : > { %v4707_v6 = vcombine.high %v466_v62, %v470_v63 }
  0xd8   : > { %1240 = vmatpush1.bf16.msra.mxu1 %v4752_v0  ;;  %v321_v0 = vld [vmem:[%s5867_s23 + $0x80] sm:$0xff] }
  0xd9   : > { %1241 = vmatprep.subr.bf16.mxu1 %v4761_v3  ;;  %v5247_v3 = vld [vmem:[#allocation8 + $0x4] ss:$8 sps:$4 sm:$0xff]   ;;  %v5936_v9 = vpack.c.bf16 %v323_v1, %v321_v0  ;;  %v333_v0 = vld [vmem:[%s5867_s23 + $0xe0] sm:$0xff] }
  0xda   : > { %3659 = vmatprep.subr.bf16.mxu0 %v5247_v3  ;;  %v5262_v1 = vld [vmem:[#allocation8 + $0x54] ss:$8 sps:$4 sm:$0xff]  }
  0xdb   : > { %3660 = vmatpush1.bf16.msra.mxu0 %v5249_v15 }
  0xdc   : > { %1242 = vmatpush1.bf16.msra.mxu1 %v4760_v8  ;;  %v478_v8 = vld [vmem:[#allocation5 + $0x268] sm:$0xff]  ;;  %3661 = vmatprep.subr.bf16.mxu0 %v5250_v19 }
  0xdd   : > { %1404 = vmatprep.subr.bf16.mxu1 %v4643_v11  ;;  %v4706_v11 = vcombine.low %v466_v62, %v470_v63  ;;  %v4714_v22 = vcombine.low %v474_v7, %v478_v8  ;;  %v514_v62 = vld [vmem:[#allocation5 + $0x388] sm:$0xff] }
  0xde   : > { %v518_v63 = vld [vmem:[#allocation5 + $0x3a8] sm:$0xff] }
  0xdf   : > { %1244 = vmatmul.mubr.bf16.vlgmr.msra.gmra.mrb[0].mxu1 %v5890_v12  ;;  %v5267_v19 = vld [vmem:[#allocation8 + $0x60] ss:$8 sps:$4 sm:$0xff]  }
  0xe0   : > { %1405 = vmatpush1.bf16.msra.mxu1 %v4642_v13  ;;  %1253 = vmatprep.mubr.bf16.mxu1 %v5892_v14  ;;  %v4715_v13 = vcombine.high %v474_v7, %v478_v8  ;;  %v340_v7 = vld [vmem:[%s5867_s23 + $0x118] sm:$0xff]  ;;  %v4755_v8 = vcombine.high %v514_v62, %v518_v63 }
  0xe1   : > { %1406 = vmatprep.subr.bf16.mxu1 %v4651_v17  ;;  %v486_v17 = vld [vmem:[#allocation5 + $0x2a8] sm:$0xff] }
  0xe2   : > { %v4722_v37 = vcombine.low %v482_v16, %v486_v17 }
  0xe4   : > { %1407 = vmatpush1.bf16.msra.mxu1 %v4650_v25  ;;  %v5252_v25 = vld [vmem:[#allocation8 + $0x10] ss:$8 sps:$4 sm:$0xff]  }
  0xe5   : > { %1408 = vmatprep.subr.bf16.mxu1 %v4659_v29  ;;  %v332_v29 = vld [vmem:[%s5867_s23 + $0xd8] sm:$0xff]  ;;  %3662 = vmatpush1.bf16.msra.mxu0 %v5252_v25  ;;  %v339_v25 = vld [vmem:[%s5867_s23 + $0x110] sm:$0xff] }
  0xe6   : > { %v5948_v36 = vpack.c.bf16 %v332_v29, %v330_v27  ;;  %3663 = vmatprep.subr.bf16.mxu0 %v5253_v26  ;;  %v5270_v27 = vld [vmem:[#allocation8 + $0x70] ss:$8 sps:$4 sm:$0xff]   ;;  %v5271_v29 = vld [vmem:[#allocation8 + $0x84] ss:$8 sps:$4 sm:$0xff]  }
  0xe7   : > { %1254 = vmatmul.mubr.bf16.gmra.mrb[4].mxu1 %v5906_v30 }
  0xe8   : > { %1263 = vmatprep.mubr.bf16.mxu1 %v5908_v31  ;;  %1409 = vmatpush1.bf16.msra.mxu1 %v4658_v32  ;;  %v4723_v32 = vcombine.high %v482_v16, %v486_v17  ;;  %v4754_v17 = vcombine.low %v514_v62, %v518_v63  ;;  %v352_v62 = vld [vmem:[%s5867_s23 + $0x178] sm:$0xff] }
  0xe9   : > { %1410 = vmatprep.subr.bf16.mxu1 %v4667_v35  ;;  %v5946_v35 = vpack.c.bf16 %v327_v21, %v325_v18  ;;  %3664 = vmatpush1.bf16.msra.mxu0 %v5255_v39  ;;  %v337_v21 = vld [vmem:[%s5867_s23 + $0x100] sm:$0xff]  ;;  %v5273_v39 = vld [vmem:[#allocation8 + $0x80] ss:$8 sps:$4 sm:$0xff]  }
  0xec   : > { %1411 = vmatpush1.bf16.msra.mxu1 %v4666_v40  ;;  %v498_v40 = vld [vmem:[#allocation5 + $0x308] sm:$0xff] }
  0xed   : > { %1412 = vmatprep.subr.bf16.mxu1 %v4675_v43  ;;  %v5256_v43 = vld [vmem:[#allocation8 + $0x34] ss:$8 sps:$4 sm:$0xff]   ;;  %v4739_v52 = vcombine.high %v498_v40, %v502_v41 }
  0xee   : > { %3665 = vmatprep.subr.bf16.mxu0 %v5256_v43  ;;  %v5276_v43 = vld [vmem:[#allocation8 + $0x90] ss:$8 sps:$4 sm:$0xff]  }
  0xef   : > { %1264 = vmatmul.mubr.bf16.gmra.mrb[8].mxu1 %v5916_v44  ;;  %3666 = vmatpush1.bf16.msra.mxu0 %v5258_v48  ;;  %v348_v48 = vld [vmem:[%s5867_s23 + $0x158] sm:$0xff] }
  0xf0   : > { %1273 = vmatprep.mubr.bf16.mxu1 %v5918_v45  ;;  %1413 = vmatpush1.bf16.msra.mxu1 %v4674_v46  ;;  %v331_v46 = vld [vmem:[%s5867_s23 + $0xd0] sm:$0xff] }
  0xf1   : > { %1414 = vmatprep.subr.bf16.mxu1 %v4683_v49  ;;  %v5259_v49 = vld [vmem:[#allocation8 + $0x44] ss:$8 sps:$4 sm:$0xff]   ;;  %v5956_v55 = vpack.c.bf16 %v331_v46, %v329_v42 }
  0xf2   : > { %3667 = vmatprep.subr.bf16.mxu0 %v5259_v49  ;;  %v343_v42 = vld [vmem:[%s5867_s23 + $0x130] sm:$0xff] }
  0xf3   : > { %v5277_v46 = vld [vmem:[#allocation8 + $0xa4] ss:$8 sps:$4 sm:$0xff]  }
  0xf4   : > { %1415 = vmatpush1.bf16.msra.mxu1 %v4682_v54  ;;  %v510_v54 = vld [vmem:[#allocation5 + $0x368] sm:$0xff] }
  0xf5   : > { %1416 = vmatprep.subr.bf16.mxu1 %v4691_v57  ;;  %v4738_v57 = vcombine.low %v498_v40, %v502_v41  ;;  %v4746_v3 = vcombine.low %v506_v53, %v510_v54  ;;  %v341_v40 = vld [vmem:[%s5867_s23 + $0x120] sm:$0xff] }
  0xf6   : > { %v5274_v41 = vld [vmem:[#allocation8 + $0x94] ss:$8 sps:$4 sm:$0xff]   ;;  %v5988_v49 = vpack.c.bf16 %v343_v42, %v341_v40 }
  0xf7   : > { %1274 = vmatmul.mubr.bf16.gmra.mrb[12].mxu1 %v5926_v58  ;;  %v364_v40 = vld [vmem:[%s5867_s23 + $0x1d8] sm:$0xff] }
  0xf8   : > { %1283 = vmatprep.mubr.bf16.mxu1 %v5928_v59  ;;  %1417 = vmatpush1.bf16.msra.mxu1 %v4690_v60  ;;  %v4747_v60 = vcombine.high %v506_v53, %v510_v54  ;;  %v5280_v53 = vld [vmem:[#allocation8 + $0xb4] ss:$8 sps:$4 sm:$0xff]   ;;  %v347_v54 = vld [vmem:[%s5867_s23 + $0x150] sm:$0xff] }
  0xf9   : > { %1418 = vmatprep.subr.bf16.mxu1 %v4699_v61  ;;  %v5261_v61 = vld [vmem:[#allocation8 + $0x40] ss:$8 sps:$4 sm:$0xff]  }
  0xfa   : > { %3668 = vmatpush1.bf16.msra.mxu0 %v5261_v61  ;;  %v350_v61 = vld [vmem:[%s5867_s23 + $0x168] sm:$0xff] }
  0xfb   : > { %3669 = vmatprep.subr.bf16.mxu0 %v5262_v1  ;;  %v5285_v1 = vld [vmem:[#allocation8 + $0xc0] ss:$8 sps:$4 sm:$0xff]  }
  0xfc   : > { %1419 = vmatpush1.bf16.msra.mxu1 %v4698_v2  ;;  %v335_v2 = vld [vmem:[%s5867_s23 + $0xf0] sm:$0xff] }
  0xfd   : > { %1420 = vmatprep.subr.bf16.mxu1 %v4707_v6  ;;  %v338_v6 = vld [vmem:[%s5867_s23 + $0x108] sm:$0xff]  ;;  %v5966_v15 = vpack.c.bf16 %v335_v2, %v333_v0  ;;  %v6000_v0 = vpack.c.bf16 %v352_v62, %v350_v61  ;;  %v349_v2 = vld [vmem:[%s5867_s23 + $0x160] sm:$0xff]  ;;  %v415_v61 = vld [vmem:[#allocation5 + $0x70] sm:$0xff] }
  0xfe   : > { %3670 = vmatpush1.bf16.msra.mxu0 %v5264_v4  ;;  %v5968_v16 = vpack.c.bf16 %v340_v7, %v338_v6  ;;  %v5286_v4 = vld [vmem:[#allocation8 + $0xd4] ss:$8 sps:$4 sm:$0xff]   ;;  %v5288_v7 = vld [vmem:[#allocation8 + $0xd0] ss:$8 sps:$4 sm:$0xff]  }
  0xff   : > { %1284 = vmatmul.mubr.bf16.gmra.mrb[16].mxu1 %v5936_v9  ;;  %3671 = vmatprep.subr.bf16.mxu0 %v5265_v5  ;;  %v354_v5 = vld [vmem:[%s5867_s23 + $0x188] sm:$0xff]  ;;  %v356_v6 = vld [vmem:[%s5867_s23 + $0x198] sm:$0xff] }
 0x100   : > { %1293 = vmatprep.mubr.bf16.mxu1 %v5938_v10  ;;  %1421 = vmatpush1.bf16.msra.mxu1 %v4706_v11  ;;  %v522_v11 = vld [vmem:[#allocation5 + $0x3c8] sm:$0xff] }
 0x101   : > { %1422 = vmatprep.subr.bf16.mxu1 %v4715_v13  ;;  %v526_v13 = vld [vmem:[#allocation5 + $0x3e8] sm:$0xff] }
 0x102   : > { %v4763_v18 = vcombine.high %v522_v11, %v526_v13  ;;  %3672 = vmatpush1.bf16.msra.mxu0 %v5267_v19  ;;  %v4762_v26 = vcombine.low %v522_v11, %v526_v13  ;;  %v6010_v11 = vpack.c.bf16 %v356_v6, %v354_v5  ;;  %v5289_v13 = vld [vmem:[#allocation8 + $0xe4] ss:$8 sps:$4 sm:$0xff]   ;;  %v6057_v6 = vld [vmem:[#allocation5 + $0x38] sm:$0xff] }
 0x103   : > { %v355_v19 = vld [vmem:[%s5867_s23 + $0x190] sm:$0xff] }
 0x104   : > { %1423 = vmatpush1.bf16.msra.mxu1 %v4714_v22  ;;  %v5268_v22 = vld [vmem:[#allocation8 + $0x74] ss:$8 sps:$4 sm:$0xff]  }
 0x105   : > { %1424 = vmatprep.subr.bf16.mxu1 %v4723_v32  ;;  %v342_v32 = vld [vmem:[%s5867_s23 + $0x128] sm:$0xff]  ;;  %3673 = vmatprep.subr.bf16.mxu0 %v5268_v22 }
 0x106   : > { %3674 = vmatpush1.bf16.msra.mxu0 %v5270_v27  ;;  %v358_v22 = vld [vmem:[%s5867_s23 + $0x1a8] sm:$0xff] }
 0x107   : > { %1294 = vmatmul.mubr.bf16.gmra.mrb[20].mxu1 %v5946_v35  ;;  %3675 = vmatprep.subr.bf16.mxu0 %v5271_v29 }
 0x108   : > { %1303 = vmatprep.mubr.bf16.mxu1 %v5948_v36  ;;  %1425 = vmatpush1.bf16.msra.mxu1 %v4722_v37  ;;  %v5978_v37 = vpack.c.bf16 %v339_v25, %v337_v21  ;;  %v5292_v21 = vld [vmem:[#allocation8 + $0xf4] ss:$8 sps:$4 sm:$0xff]  }
 0x109   : > { %1426 = vmatprep.subr.bf16.mxu1 %v4731_v38  ;;  %v5980_v38 = vpack.c.bf16 %v344_v33, %v342_v32  ;;  %v360_v25 = vld [vmem:[%s5867_s23 + $0x1b8] sm:$0xff]  ;;  %v357_v32 = vld [vmem:[%s5867_s23 + $0x1a0] sm:$0xff]  ;;  %v359_v33 = vld [vmem:[%s5867_s23 + $0x1b0] sm:$0xff] }
 0x10a   : > { %3676 = vmatpush1.bf16.msra.mxu0 %v5273_v39  ;;  %v6020_v29 = vpack.c.bf16 %v360_v25, %v358_v22  ;;  %v362_v39 = vld [vmem:[%s5867_s23 + $0x1c8] sm:$0xff]  ;;  %v443_v22 = vld [vmem:[#allocation5 + $0x150] sm:$0xff] }
 0x10b   : > { %3677 = vmatprep.subr.bf16.mxu0 %v5274_v41  ;;  %v6028_v41 = vpack.c.bf16 %v359_v33, %v357_v32  ;;  %v6030_v42 = vpack.c.bf16 %v364_v40, %v362_v39  ;;  %v447_v25 = vld [vmem:[#allocation5 + $0x170] sm:$0xff] }
 0x10c   : > { %1427 = vmatpush1.bf16.msra.mxu1 %v4730_v47  ;;  %v346_v47 = vld [vmem:[%s5867_s23 + $0x148] sm:$0xff]  ;;  %v4685_v32 = vcombine.high %v443_v22, %v447_v25  ;;  %v451_v33 = vld [vmem:[#allocation5 + $0x190] sm:$0xff]  ;;  %v4684_v39 = vcombine.low %v443_v22, %v447_v25 }
 0x10d   : > { %1428 = vmatprep.subr.bf16.mxu1 %v4739_v52  ;;  %v5990_v50 = vpack.c.bf16 %v348_v48, %v346_v47  ;;  %v345_v52 = vld [vmem:[%s5867_s23 + $0x140] sm:$0xff]  ;;  %v366_v47 = vld [vmem:[%s5867_s23 + $0x1e8] sm:$0xff]  ;;  %v368_v48 = vld [vmem:[%s5867_s23 + $0x1f8] sm:$0xff] }
 0x10e   : > { %3678 = vmatpush1.bf16.msra.mxu0 %v5276_v43  ;;  %v5998_v63 = vpack.c.bf16 %v347_v54, %v345_v52  ;;  %v361_v43 = vld [vmem:[%s5867_s23 + $0x1c0] sm:$0xff]  ;;  %v6040_v52 = vpack.c.bf16 %v368_v48, %v366_v47  ;;  %v367_v54 = vld [vmem:[%s5867_s23 + $0x1f0] sm:$0xff] }
 0x10f   : > { %1304 = vmatmul.mubr.bf16.gmra.mrb[24].mxu1 %v5956_v55  ;;  %3679 = vmatprep.subr.bf16.mxu0 %v5277_v46  ;;  %v363_v46 = vld [vmem:[%s5867_s23 + $0x1d0] sm:$0xff] }
 0x110   : > { %1313 = vmatprep.mubr.bf16.mxu1 %v5958_v56  ;;  %1429 = vmatpush1.bf16.msra.mxu1 %v4738_v57  ;;  %v5282_v57 = vld [vmem:[#allocation8 + $0xb0] ss:$8 sps:$4 sm:$0xff]   ;;  %v503_v22 = vld [vmem:[#allocation5 + $0x330] sm:$0xff] }
 0x111   : > { %1430 = vmatprep.subr.bf16.mxu1 %v4747_v60  ;;  %v5283_v60 = vld [vmem:[#allocation8 + $0xc4] ss:$8 sps:$4 sm:$0xff]  }
 0x112   : > { %3680 = vmatpush1.bf16.msra.mxu0 %v5279_v51  ;;  %v6038_v51 = vpack.c.bf16 %v363_v46, %v361_v43  ;;  %v459_v43 = vld [vmem:[#allocation5 + $0x1d0] sm:$0xff] }
 0x113   : > { %3681 = vmatprep.subr.bf16.mxu0 %v5280_v53  ;;  %v365_v53 = vld [vmem:[%s5867_s23 + $0x1e0] sm:$0xff]  ;;  %v463_v46 = vld [vmem:[#allocation5 + $0x1f0] sm:$0xff] }
 0x114   : > { %1431 = vmatpush1.bf16.msra.mxu1 %v4746_v3  ;;  %v351_v3 = vld [vmem:[%s5867_s23 + $0x170] sm:$0xff]  ;;  %v4701_v48 = vcombine.high %v459_v43, %v463_v46 }
 0x115   : > { %1432 = vmatprep.subr.bf16.mxu1 %v4755_v8  ;;  %v6008_v8 = vpack.c.bf16 %v351_v3, %v349_v2  ;;  %v423_v2 = vld [vmem:[#allocation5 + $0xb0] sm:$0xff] }
 0x116   : > { %3682 = vmatpush1.bf16.msra.mxu0 %v5282_v57  ;;  %v6046_v57 = vpack.c.bf16 %v367_v54, %v365_v53  ;;  %v467_v53 = vld [vmem:[#allocation5 + $0x210] sm:$0xff] }
 0x117   : > { %1314 = vmatmul.mubr.bf16.gmra.mrb[28].mxu1 %v5966_v15  ;;  %3683 = vmatprep.subr.bf16.mxu0 %v5283_v60  ;;  %v411_v60 = vld [vmem:[#allocation5 + $0x50] sm:$0xff] }
 0x118   : > { %1323 = vmatprep.mubr.bf16.mxu1 %v5968_v16  ;;  %1433 = vmatpush1.bf16.msra.mxu1 %v4754_v17  ;;  %v5291_v17 = vld [vmem:[#allocation8 + $0xe0] ss:$8 sps:$4 sm:$0xff]   ;;  %v4653_v62 = vcombine.high %v411_v60, %v415_v61  ;;  %v4652_v3 = vcombine.low %v411_v60, %v415_v61  ;;  %v4700_v60 = vcombine.low %v459_v43, %v463_v46 }
 0x119   : > { %1434 = vmatprep.subr.bf16.mxu1 %v4763_v18  ;;  %v353_v18 = vld [vmem:[%s5867_s23 + $0x180] sm:$0xff]  ;;  %v471_v54 = vld [vmem:[#allocation5 + $0x230] sm:$0xff] }
 0x11a   : > { %3684 = vmatpush1.bf16.msra.mxu0 %v5285_v1  ;;  %v6018_v27 = vpack.c.bf16 %v355_v19, %v353_v18  ;;  %v419_v1 = vld [vmem:[#allocation5 + $0x90] sm:$0xff]  ;;  %v4709_v61 = vcombine.high %v467_v53, %v471_v54 }
 0x11b   : > { %3685 = vmatprep.subr.bf16.mxu0 %v5286_v4  ;;  %v6055_v4 = vld [vmem:[#allocation5 + $0x18] sm:$0xff]  ;;  %v4661_v5 = vcombine.high %v419_v1, %v423_v2  ;;  %v4660_v18 = vcombine.low %v419_v1, %v423_v2  ;;  %v479_v1 = vld [vmem:[#allocation5 + $0x270] sm:$0xff]  ;;  %v4708_v2 = vcombine.low %v467_v53, %v471_v54 }
 0x11c   : > { %1435 = vmatpush1.bf16.msra.mxu1 %v4762_v26  ;;  %v5294_v26 = vld [vmem:[#allocation8 + $0xf0] ss:$8 sps:$4 sm:$0xff]   ;;  %v519_v43 = vld [vmem:[#allocation5 + $0x3b0] sm:$0xff] }
 0x11d   : > { %1597 = vmatprep.subr.bf16.mxu1 %v4645_v34  ;;  %v5297_v34 = vld [vmem:[#allocation8 + $0x104] ss:$8 sps:$4 sm:$0xff]  }
 0x11e   : > { %3686 = vmatpush1.bf16.msra.mxu0 %v5288_v7  ;;  %v427_v7 = vld [vmem:[#allocation5 + $0xd0] sm:$0xff] }
 0x11f   : > { %1324 = vmatmul.mubr.bf16.gmra.mrb[32].mxu1 %v5978_v37  ;;  %3687 = vmatprep.subr.bf16.mxu0 %v5289_v13  ;;  %v431_v13 = vld [vmem:[#allocation5 + $0xf0] sm:$0xff] }
 0x120   : > { %1333 = vmatprep.mubr.bf16.mxu1 %v5980_v38  ;;  %v4669_v19 = vcombine.high %v427_v7, %v431_v13  ;;  %v527_v53 = vld [vmem:[#allocation5 + $0x3f0] sm:$0xff] }
 0x122   : > { %3688 = vmatpush1.bf16.msra.mxu0 %v5291_v17  ;;  %v4646_v17 = vcombine.low %v6055_v4, %v6057_v6 }
 0x123   : > { %3689 = vmatprep.subr.bf16.mxu0 %v5292_v21  ;;  %v4677_v21 = vcombine.high %v435_v23, %v439_v24 }
 0x126   : > { %3690 = vmatpush1.bf16.msra.mxu0 %v5294_v26  ;;  %v4676_v26 = vcombine.low %v435_v23, %v439_v24  ;;  %v495_v23 = vld [vmem:[#allocation5 + $0x2f0] sm:$0xff] }
 0x127   : > { %1334 = vmatmul.mubr.bf16.gmra.mrb[36].mxu1 %v5988_v49  ;;  %3852 = vmatprep.subr.bf16.mxu0 %v5297_v34  ;;  %v455_v34 = vld [vmem:[#allocation5 + $0x1b0] sm:$0xff] }
 0x128   : > { %1343 = vmatprep.mubr.bf16.mxu1 %v5990_v50  ;;  %v4693_v40 = vcombine.high %v451_v33, %v455_v34  ;;  %v4692_v47 = vcombine.low %v451_v33, %v455_v34  ;;  %v511_v33 = vld [vmem:[#allocation5 + $0x370] sm:$0xff] }
 0x12f   : > { %1344 = vmatmul.mubr.bf16.gmra.mrb[40].mxu1 %v5998_v63 }
 0x130   : > { %1353 = vmatprep.mubr.bf16.mxu1 %v6000_v0 }
 0x137   : > { %1354 = vmatmul.mubr.bf16.gmra.mrb[44].mxu1 %v6008_v8 }
 0x138   : > { %1363 = vmatprep.mubr.bf16.mxu1 %v6010_v11 }
 0x13f   : > { %1364 = vmatmul.mubr.bf16.gmra.mrb[48].mxu1 %v6018_v27 }
 0x140   : > { %1373 = vmatprep.mubr.bf16.mxu1 %v6020_v29 }
 0x147   : > { %1374 = vmatmul.mubr.bf16.gmra.mrb[52].mxu1 %v6028_v41 }
 0x148   : > { %1383 = vmatprep.mubr.bf16.mxu1 %v6030_v42 }
 0x14f   : > { %1384 = vmatmul.mubr.bf16.gmra.mrb[56].mxu1 %v6038_v51 }
 0x150   : > { %1393 = vmatprep.mubr.bf16.mxu1 %v6040_v52 }
 0x157   : > { %1394 = vmatmul.mubr.bf16.gmra.mrb[60].mxu1 %v6046_v57 }
 0x158   : > { %1436 = vmatprep.mubr.bf16.mxu1 %v5883_v20 }
 0x15f   : > { %1437 = vmatmul.mubr.bf16.vlgmr.msra.gmra.mrb[64].mxu1 %v5890_v12 }
 0x160   : > { %1598 = vmatpush1.bf16.msra.mxu1 %v4644_v28  ;;  %1446 = vmatprep.mubr.bf16.mxu1 %v5892_v14  ;;  %v4668_v28 = vcombine.low %v427_v7, %v431_v13  ;;  %v487_v7 = vld [vmem:[#allocation5 + $0x2b0] sm:$0xff] }
 0x161   : > { %1599 = vmatprep.subr.bf16.mxu1 %v4653_v62  ;;  %v475_v62 = vld [vmem:[#allocation5 + $0x250] sm:$0xff] }
 0x162   : > { %v4716_v13 = vcombine.low %v475_v62, %v479_v1 }
 0x164   : > { %1600 = vmatpush1.bf16.msra.mxu1 %v4652_v3  ;;  %v4717_v3 = vcombine.high %v475_v62, %v479_v1  ;;  %v4647_v62 = vcombine.high %v6055_v4, %v6057_v6  ;;  %v531_v1 = vlaneseq }
 0x165   : > { %1601 = vmatprep.subr.bf16.mxu1 %v4661_v5  ;;  %v483_v5 = vld [vmem:[#allocation5 + $0x290] sm:$0xff] }
 0x166   : > { %v4724_v24 = vcombine.low %v483_v5, %v487_v7 }
 0x167   : > { %1447 = vmatmul.mubr.bf16.gmra.mrb[68].mxu1 %v5906_v30 }
 0x168   : > { %1456 = vmatprep.mubr.bf16.mxu1 %v5908_v31  ;;  %1602 = vmatpush1.bf16.msra.mxu1 %v4660_v18  ;;  %v4725_v18 = vcombine.high %v483_v5, %v487_v7  ;;  %v529_v5 = vld [vmem:[#allocation7] sm:$0xff] }
 0x169   : > { %1603 = vmatprep.subr.bf16.mxu1 %v4669_v19  ;;  %v491_v19 = vld [vmem:[#allocation5 + $0x2d0] sm:$0xff] }
 0x16a   : > { %v4732_v25 = vcombine.low %v491_v19, %v495_v23 }
 0x16c   : > { %1604 = vmatpush1.bf16.msra.mxu1 %v4668_v28  ;;  %v4733_v28 = vcombine.high %v491_v19, %v495_v23 }
 0x16d   : > { %1605 = vmatprep.subr.bf16.mxu1 %v4677_v21  ;;  %v499_v21 = vld [vmem:[#allocation5 + $0x310] sm:$0xff] }
 0x16e   : > { %v4740_v34 = vcombine.low %v499_v21, %v503_v22 }
 0x16f   : > { %1457 = vmatmul.mubr.bf16.gmra.mrb[72].mxu1 %v5916_v44 }
 0x170   : > { %1466 = vmatprep.mubr.bf16.mxu1 %v5918_v45  ;;  %1606 = vmatpush1.bf16.msra.mxu1 %v4676_v26  ;;  %v4741_v26 = vcombine.high %v499_v21, %v503_v22 }
 0x171   : > { %1607 = vmatprep.subr.bf16.mxu1 %v4685_v32  ;;  %v507_v32 = vld [vmem:[#allocation5 + $0x350] sm:$0xff] }
 0x172   : > { %v4748_v46 = vcombine.low %v507_v32, %v511_v33 }
 0x174   : > { %1608 = vmatpush1.bf16.msra.mxu1 %v4684_v39  ;;  %v4749_v39 = vcombine.high %v507_v32, %v511_v33 }
 0x175   : > { %1609 = vmatprep.subr.bf16.mxu1 %v4693_v40  ;;  %v515_v40 = vld [vmem:[#allocation5 + $0x390] sm:$0xff] }
 0x176   : > { %v4756_v54 = vcombine.low %v515_v40, %v519_v43 }
 0x177   : > { %1467 = vmatmul.mubr.bf16.gmra.mrb[76].mxu1 %v5926_v58 }
 0x178   : > { %1476 = vmatprep.mubr.bf16.mxu1 %v5928_v59  ;;  %1610 = vmatpush1.bf16.msra.mxu1 %v4692_v47  ;;  %v4757_v47 = vcombine.high %v515_v40, %v519_v43 }
 0x179   : > { %1611 = vmatprep.subr.bf16.mxu1 %v4701_v48  ;;  %v523_v48 = vld [vmem:[#allocation5 + $0x3d0] sm:$0xff] }
 0x17c   : > { %1612 = vmatpush1.bf16.msra.mxu1 %v4700_v60  ;;  %v4765_v60 = vcombine.high %v523_v48, %v527_v53 }
 0x17d   : > { %1613 = vmatprep.subr.bf16.mxu1 %v4709_v61  ;;  %v4764_v61 = vcombine.low %v523_v48, %v527_v53 }
 0x17f   : > { %1477 = vmatmul.mubr.bf16.gmra.mrb[80].mxu1 %v5936_v9 }
 0x180   : > { %1486 = vmatprep.mubr.bf16.mxu1 %v5938_v10  ;;  %1614 = vmatpush1.bf16.msra.mxu1 %v4708_v2  ;;  %v6080_v2 = vshrl.u32 %v531_v1, 7 }
 0x181   : > { %1615 = vmatprep.subr.bf16.mxu1 %v4717_v3 }
 0x182   : > { %v6677_v3 = vsub.s32 0, %v6080_v2  ;;  %v6676_v7 = vsub.s32 1, %v6080_v2 }
 0x184   : > { %1616 = vmatpush1.bf16.msra.mxu1 %v4716_v13  ;;  %v6088_v13 = vrot.slane %v529_v5, %v6677_v3  ;;  %v432_v3 = vld [vmem:[#allocation5 + $0xf8] sm:$0xff] }
 0x185   : > { %1617 = vmatprep.subr.bf16.mxu1 %v4725_v18  ;;  %v6092_v18 = vrot.slane %v529_v5, %v6676_v7 }
 0x187   : > { %1487 = vmatmul.mubr.bf16.gmra.mrb[84].mxu1 %v5946_v35 }
 0x188   : > { %1496 = vmatprep.mubr.bf16.mxu1 %v5948_v36  ;;  %1618 = vmatpush1.bf16.msra.mxu1 %v4724_v24 }
 0x189   : > { %1619 = vmatprep.subr.bf16.mxu1 %v4733_v28 }
 0x18c   : > { %1620 = vmatpush1.bf16.msra.mxu1 %v4732_v25 }
 0x18d   : > { %1621 = vmatprep.subr.bf16.mxu1 %v4741_v26 }
 0x18f   : > { %1497 = vmatmul.mubr.bf16.gmra.mrb[88].mxu1 %v5956_v55 }
 0x190   : > { %1506 = vmatprep.mubr.bf16.mxu1 %v5958_v56  ;;  %1622 = vmatpush1.bf16.msra.mxu1 %v4740_v34 }
 0x191   : > { %1623 = vmatprep.subr.bf16.mxu1 %v4749_v39 }
 0x194   : > { %1624 = vmatpush1.bf16.msra.mxu1 %v4748_v46 }
 0x195   : > { %1625 = vmatprep.subr.bf16.mxu1 %v4757_v47 }
 0x197   : > { %1507 = vmatmul.mubr.bf16.gmra.mrb[92].mxu1 %v5966_v15 }
 0x198   : > { %1516 = vmatprep.mubr.bf16.mxu1 %v5968_v16  ;;  %1626 = vmatpush1.bf16.msra.mxu1 %v4756_v54 }
 0x199   : > { %1627 = vmatprep.subr.bf16.mxu1 %v4765_v60 }
 0x19c   : > { %1628 = vmatpush1.bf16.msra.mxu1 %v4764_v61 }
 0x19d   : > { %1790 = vmatprep.subr.bf16.mxu1 %v4647_v62  ;;  %v5295_v62 = vld [vmem:[#allocation8 + $0x100] ss:$8 sps:$4 sm:$0xff]  }
 0x19f   : > { %1517 = vmatmul.mubr.bf16.gmra.mrb[96].mxu1 %v5978_v37 }
 0x1a0   : > { %1526 = vmatprep.mubr.bf16.mxu1 %v5980_v38 }
 0x1a7   : > { %1527 = vmatmul.mubr.bf16.gmra.mrb[100].mxu1 %v5988_v49 }
 0x1a8   : > { %1536 = vmatprep.mubr.bf16.mxu1 %v5990_v50 }
 0x1af   : > { %1537 = vmatmul.mubr.bf16.gmra.mrb[104].mxu1 %v5998_v63 }
 0x1b0   : > { %1546 = vmatprep.mubr.bf16.mxu1 %v6000_v0 }
 0x1b2   : > { %v1245_v19 = vpop.f32.mrb[0].mxu1 }
 0x1b3   : > { %v1246_v23 = vadd.f32 %v1245_v19, %v6088_v13  ;;  %v1247_v24 = vpop.f32.mrb[1].mxu1  ;;  %v5300_v19 = vld [vmem:[#allocation8 + $0x114] ss:$8 sps:$4 sm:$0xff]  }
 0x1b4   : > { %v1248_v28 = vadd.f32 %v1247_v24, %v6092_v18  ;;  %v1249_v21 = vpop.f32.mrb[2].mxu1 }
 0x1b5   : > { %v2239_v22 = vmul.f32 0.01, %v1246_v23  ;;  %v1250_v25 = vadd.f32 %v1249_v21, %v6088_v13  ;;  %v1251_v26 = vpop.f32.mrb[3].mxu1  ;;  %vm1983_vm0 = vcmp.gt.f32.partialorder %v1246_v23, 0.0 }
 0x1b6   : > { %v2240_v32 = vmul.f32 0.01, %v1248_v28  ;;  %v1252_v33 = vadd.f32 %v1251_v26, %v6092_v18  ;;  %vm1984_vm2 = vcmp.gt.f32.partialorder %v1248_v28, 0.0 }
 0x1b7   : > { %vm1991_vm1 = vcmp.gt.f32.partialorder %v1250_v25, 0.0  ;;  %v2247_v34 = vmul.f32 0.01, %v1250_v25  ;;  %1547 = vmatmul.mubr.bf16.gmra.mrb[108].mxu1 %v6008_v8  ;;  %v2495_v40 = vsel %vm1983_vm0, %v1246_v23, %v2239_v22 }
 0x1b8   : > { %v2248_v39 = vmul.f32 0.01, %v1252_v33  ;;  %vm1992_vm3 = vcmp.gt.f32.partialorder %v1252_v33, 0.0  ;;  %1556 = vmatprep.mubr.bf16.mxu1 %v6010_v11  ;;  %v2496_v47 = vsel %vm1984_vm2, %v1248_v28, %v2240_v32 }
 0x1b9   : > { %v2503_v43 = vsel %vm1991_vm1, %v1250_v25, %v2247_v34  ;;  %v5298_v25 = vld [vmem:[#allocation8 + $0x110] ss:$8 sps:$4 sm:$0xff]  }
 0x1ba   : > { %v1255_v46 = vpop.f32.mrb[4].mxu1  ;;  %v2504_v48 = vsel %vm1992_vm3, %v1252_v33, %v2248_v39  ;;  %v2751_v53 = vpack.c.bf16 %v2503_v43, %v2495_v40  ;;  %v5303_v33 = vld [vmem:[#allocation8 + $0x124] ss:$8 sps:$4 sm:$0xff]  }
 0x1bb   : > { %v1256_v54 = vadd.f32 %v1255_v46, %v6088_v13  ;;  %v1257_v60 = vpop.f32.mrb[5].mxu1  ;;  %v2752_v61 = vpack.c.bf16 %v2504_v48, %v2496_v47 }
 0x1bc   : > { %v1258_v1 = vadd.f32 %v1257_v60, %v6092_v18  ;;  %v1259_v5 = vpop.f32.mrb[6].mxu1 }
 0x1bd   : > { %v2255_v24 = vmul.f32 0.01, %v1256_v54  ;;  %v1260_v21 = vadd.f32 %v1259_v5, %v6088_v13  ;;  %v1261_v26 = vpop.f32.mrb[7].mxu1  ;;  %3691 = vmatprep.mubr.bf16.mxu0 %v2752_v61  ;;  %vm1999_vm4 = vcmp.gt.f32.partialorder %v1256_v54, 0.0  ;;  %v5301_v61 = vld [vmem:[#allocation8 + $0x120] ss:$8 sps:$4 sm:$0xff]  }
 0x1be   : > { %v2256_v23 = vmul.f32 0.01, %v1258_v1  ;;  %v1262_v28 = vadd.f32 %v1261_v26, %v6092_v18  ;;  %3692 = vmatmul.mubr.bf16.vlgmr.msra.gmra.mrb[0].mxu0 %v2751_v53  ;;  %vm2000_vm5 = vcmp.gt.f32.partialorder %v1258_v1, 0.0  ;;  %v5306_v26 = vld [vmem:[#allocation8 + $0x134] ss:$8 sps:$4 sm:$0xff]  }
 0x1bf   : > { %vm2007_vm6 = vcmp.gt.f32.partialorder %v1260_v21, 0.0  ;;  %v2263_v22 = vmul.f32 0.01, %v1260_v21  ;;  %1557 = vmatmul.mubr.bf16.gmra.mrb[112].mxu1 %v6018_v27  ;;  %3853 = vmatpush1.bf16.msra.mxu0 %v5295_v62  ;;  %v2511_v34 = vsel %vm1999_vm4, %v1256_v54, %v2255_v24 }
 0x1c0   : > { %vm2008_vm7 = vcmp.gt.f32.partialorder %v1262_v28, 0.0  ;;  %v2264_v32 = vmul.f32 0.01, %v1262_v28  ;;  %1566 = vmatprep.mubr.bf16.mxu1 %v6020_v29  ;;  %3854 = vmatprep.subr.bf16.mxu0 %v5300_v19  ;;  %v2512_v43 = vsel %vm2000_vm5, %v1258_v1, %v2256_v23  ;;  %v5304_v23 = vld [vmem:[#allocation8 + $0x130] ss:$8 sps:$4 sm:$0xff]  }
 0x1c1   : > { %v2519_v39 = vsel %vm2007_vm6, %v1260_v21, %v2263_v22  ;;  %v5309_v22 = vld [vmem:[#allocation8 + $0x144] ss:$8 sps:$4 sm:$0xff]  }
 0x1c2   : > { %v1265_v40 = vpop.f32.mrb[8].mxu1  ;;  %v2520_v46 = vsel %vm2008_vm7, %v1262_v28, %v2264_v32  ;;  %v2759_v47 = vpack.c.bf16 %v2519_v39, %v2511_v34 }
 0x1c3   : > { %v1266_v48 = vadd.f32 %v1265_v40, %v6088_v13  ;;  %v1267_v53 = vpop.f32.mrb[9].mxu1  ;;  %v2760_v60 = vpack.c.bf16 %v2520_v46, %v2512_v43  ;;  %3855 = vmatpush1.bf16.msra.mxu0 %v5298_v25 }
 0x1c4   : > { %v1268_v62 = vadd.f32 %v1267_v53, %v6092_v18  ;;  %v1269_v5 = vpop.f32.mrb[10].mxu1  ;;  %3856 = vmatprep.subr.bf16.mxu0 %v5303_v33  ;;  %v5307_v53 = vld [vmem:[#allocation8 + $0x140] ss:$8 sps:$4 sm:$0xff]  }
 0x1c5   : > { %v2271_v7 = vmul.f32 0.01, %v1266_v48  ;;  %v1270_v19 = vadd.f32 %v1269_v5, %v6088_v13  ;;  %v1271_v54 = vpop.f32.mrb[11].mxu1  ;;  %3701 = vmatprep.mubr.bf16.mxu0 %v2760_v60  ;;  %vm2015_vm8 = vcmp.gt.f32.partialorder %v1266_v48, 0.0  ;;  %v5312_v5 = vld [vmem:[#allocation8 + $0x154] ss:$8 sps:$4 sm:$0xff]  }
 0x1c6   : > { %v2272_v1 = vmul.f32 0.01, %v1268_v62  ;;  %v1272_v24 = vadd.f32 %v1271_v54, %v6092_v18  ;;  %3702 = vmatmul.mubr.bf16.gmra.mrb[4].mxu0 %v2759_v47  ;;  %vm2016_vm9 = vcmp.gt.f32.partialorder %v1268_v62, 0.0 }
 0x1c7   : > { %vm2023_vm10 = vcmp.gt.f32.partialorder %v1270_v19, 0.0  ;;  %v2279_v21 = vmul.f32 0.01, %v1270_v19  ;;  %1567 = vmatmul.mubr.bf16.gmra.mrb[116].mxu1 %v6028_v41  ;;  %3857 = vmatpush1.bf16.msra.mxu0 %v5301_v61  ;;  %v2527_v25 = vsel %vm2015_vm8, %v1266_v48, %v2271_v7 }
 0x1c8   : > { %vm2024_vm11 = vcmp.gt.f32.partialorder %v1272_v24, 0.0  ;;  %v2280_v28 = vmul.f32 0.01, %v1272_v24  ;;  %1576 = vmatprep.mubr.bf16.mxu1 %v6030_v42  ;;  %3858 = vmatprep.subr.bf16.mxu0 %v5306_v26  ;;  %v2528_v34 = vsel %vm2016_vm9, %v1268_v62, %v2272_v1  ;;  %v5310_v1 = vld [vmem:[#allocation8 + $0x150] ss:$8 sps:$4 sm:$0xff]  }
 0x1c9   : > { %v2535_v32 = vsel %vm2023_vm10, %v1270_v19, %v2279_v21  ;;  %v5315_v21 = vld [vmem:[#allocation8 + $0x164] ss:$8 sps:$4 sm:$0xff]  }
 0x1ca   : > { %v1275_v33 = vpop.f32.mrb[12].mxu1  ;;  %v2536_v39 = vsel %vm2024_vm11, %v1272_v24, %v2280_v28  ;;  %v2767_v40 = vpack.c.bf16 %v2535_v32, %v2527_v25 }
 0x1cb   : > { %v1276_v43 = vadd.f32 %v1275_v33, %v6088_v13  ;;  %v1277_v46 = vpop.f32.mrb[13].mxu1  ;;  %v2768_v47 = vpack.c.bf16 %v2536_v39, %v2528_v34  ;;  %3859 = vmatpush1.bf16.msra.mxu0 %v5304_v23 }
 0x1cc   : > { %v1278_v60 = vadd.f32 %v1277_v46, %v6092_v18  ;;  %v1279_v61 = vpop.f32.mrb[14].mxu1  ;;  %3860 = vmatprep.subr.bf16.mxu0 %v5309_v22  ;;  %v5313_v46 = vld [vmem:[#allocation8 + $0x160] ss:$8 sps:$4 sm:$0xff]  }
 0x1cd   : > { %v2287_v54 = vmul.f32 0.01, %v1276_v43  ;;  %v1280_v26 = vadd.f32 %v1279_v61, %v6088_v13  ;;  %v1281_v7 = vpop.f32.mrb[15].mxu1  ;;  %3711 = vmatprep.mubr.bf16.mxu0 %v2768_v47  ;;  %vm2031_vm12 = vcmp.gt.f32.partialorder %v1276_v43, 0.0  ;;  %v5318_v61 = vld [vmem:[#allocation8 + $0x174] ss:$8 sps:$4 sm:$0xff]  }
 0x1ce   : > { %v2288_v48 = vmul.f32 0.01, %v1278_v60  ;;  %v1282_v62 = vadd.f32 %v1281_v7, %v6092_v18  ;;  %3712 = vmatmul.mubr.bf16.gmra.mrb[8].mxu0 %v2767_v40  ;;  %vm2032_vm13 = vcmp.gt.f32.partialorder %v1278_v60, 0.0 }
 0x1cf   : > { %vm2039_vm14 = vcmp.gt.f32.partialorder %v1280_v26, 0.0  ;;  %v2295_v19 = vmul.f32 0.01, %v1280_v26  ;;  %1577 = vmatmul.mubr.bf16.gmra.mrb[120].mxu1 %v6038_v51  ;;  %3861 = vmatpush1.bf16.msra.mxu0 %v5307_v53  ;;  %v2543_v23 = vsel %vm2031_vm12, %v1276_v43, %v2287_v54 }
 0x1d0   : > { %vm2040_vm15 = vcmp.gt.f32.partialorder %v1282_v62, 0.0  ;;  %v2296_v24 = vmul.f32 0.01, %v1282_v62  ;;  %1586 = vmatprep.mubr.bf16.mxu1 %v6040_v52  ;;  %3862 = vmatprep.subr.bf16.mxu0 %v5312_v5  ;;  %v2544_v25 = vsel %vm2032_vm13, %v1278_v60, %v2288_v48  ;;  %v5316_v48 = vld [vmem:[#allocation8 + $0x170] ss:$8 sps:$4 sm:$0xff]  }
 0x1d1   : > { %v2551_v28 = vsel %vm2039_vm14, %v1280_v26, %v2295_v19  ;;  %v5321_v19 = vld [vmem:[#allocation8 + $0x184] ss:$8 sps:$4 sm:$0xff]  }
 0x1d2   : > { %v1285_v22 = vpop.f32.mrb[16].mxu1  ;;  %v2552_v32 = vsel %vm2040_vm15, %v1282_v62, %v2296_v24  ;;  %v2775_v33 = vpack.c.bf16 %v2551_v28, %v2543_v23 }
 0x1d3   : > { %v1286_v34 = vadd.f32 %v1285_v22, %v6088_v13  ;;  %v1287_v39 = vpop.f32.mrb[17].mxu1  ;;  %v2776_v40 = vpack.c.bf16 %v2552_v32, %v2544_v25  ;;  %3863 = vmatpush1.bf16.msra.mxu0 %v5310_v1  ;;  %v412_v25 = vld [vmem:[#allocation5 + $0x58] sm:$0xff] }
 0x1d4   : > { %v1288_v47 = vadd.f32 %v1287_v39, %v6092_v18  ;;  %v1289_v53 = vpop.f32.mrb[18].mxu1  ;;  %3864 = vmatprep.subr.bf16.mxu0 %v5315_v21  ;;  %v416_v32 = vld [vmem:[#allocation5 + $0x78] sm:$0xff] }
 0x1d5   : > { %v2303_v7 = vmul.f32 0.01, %v1286_v34  ;;  %v1290_v5 = vadd.f32 %v1289_v53, %v6088_v13  ;;  %v1291_v43 = vpop.f32.mrb[19].mxu1  ;;  %3721 = vmatprep.mubr.bf16.mxu0 %v2776_v40  ;;  %vm2047_vm0 = vcmp.gt.f32.partialorder %v1286_v34, 0.0 }
 0x1d6   : > { %v2304_v60 = vmul.f32 0.01, %v1288_v47  ;;  %v1292_v54 = vadd.f32 %v1291_v43, %v6092_v18  ;;  %3722 = vmatmul.mubr.bf16.gmra.mrb[12].mxu0 %v2775_v33  ;;  %vm2048_vm1 = vcmp.gt.f32.partialorder %v1288_v47, 0.0 }
 0x1d7   : > { %vm2055_vm2 = vcmp.gt.f32.partialorder %v1290_v5, 0.0  ;;  %v2311_v26 = vmul.f32 0.01, %v1290_v5  ;;  %1587 = vmatmul.mubr.bf16.gmra.mrb[124].mxu1 %v6046_v57  ;;  %3865 = vmatpush1.bf16.msra.mxu0 %v5313_v46  ;;  %v2559_v1 = vsel %vm2047_vm0, %v1286_v34, %v2303_v7  ;;  %v5319_v46 = vld [vmem:[#allocation8 + $0x180] ss:$8 sps:$4 sm:$0xff]  }
 0x1d8   : > { %vm2056_vm3 = vcmp.gt.f32.partialorder %v1292_v54, 0.0  ;;  %v2312_v62 = vmul.f32 0.01, %v1292_v54  ;;  %1629 = vmatprep.mubr.bf16.mxu1 %v5883_v20  ;;  %3866 = vmatprep.subr.bf16.mxu0 %v5318_v61  ;;  %v2560_v23 = vsel %vm2048_vm1, %v1288_v47, %v2304_v60  ;;  %v4655_v47 = vcombine.high %v412_v25, %v416_v32 }
 0x1d9   : > { %v2567_v24 = vsel %vm2055_vm2, %v1290_v5, %v2311_v26  ;;  %v5324_v5 = vld [vmem:[#allocation8 + $0x194] ss:$8 sps:$4 sm:$0xff]  }
 0x1da   : > { %v1295_v21 = vpop.f32.mrb[20].mxu1  ;;  %v2568_v28 = vsel %vm2056_vm3, %v1292_v54, %v2312_v62  ;;  %v2783_v22 = vpack.c.bf16 %v2567_v24, %v2559_v1  ;;  %v420_v26 = vld [vmem:[#allocation5 + $0x98] sm:$0xff]  ;;  %v4654_v24 = vcombine.low %v412_v25, %v416_v32  ;;  %v5325_v25 = vld [vmem:[#allocation8 + $0x1a0] ss:$8 sps:$4 sm:$0xff]  }
 0x1db   : > { %v1296_v33 = vadd.f32 %v1295_v21, %v6088_v13  ;;  %v1297_v39 = vpop.f32.mrb[21].mxu1  ;;  %v2784_v40 = vpack.c.bf16 %v2568_v28, %v2560_v23  ;;  %3867 = vmatpush1.bf16.msra.mxu0 %v5316_v48  ;;  %v424_v62 = vld [vmem:[#allocation5 + $0xb8] sm:$0xff]  ;;  %v5327_v21 = vld [vmem:[#allocation8 + $0x1a4] ss:$8 sps:$4 sm:$0xff]  }
 0x1dc   : > { %v1298_v53 = vadd.f32 %v1297_v39, %v6092_v18  ;;  %v1299_v43 = vpop.f32.mrb[22].mxu1  ;;  %3868 = vmatprep.subr.bf16.mxu0 %v5321_v19  ;;  %v5322_v19 = vld [vmem:[#allocation8 + $0x190] ss:$8 sps:$4 sm:$0xff]  }
 0x1dd   : > { %v2319_v61 = vmul.f32 0.01, %v1296_v33  ;;  %v1300_v34 = vadd.f32 %v1299_v43, %v6088_v13  ;;  %v1301_v7 = vpop.f32.mrb[23].mxu1  ;;  %3731 = vmatprep.mubr.bf16.mxu0 %v2784_v40  ;;  %vm2063_vm4 = vcmp.gt.f32.partialorder %v1296_v33, 0.0 }
 0x1de   : > { %v2320_v60 = vmul.f32 0.01, %v1298_v53  ;;  %v1302_v54 = vadd.f32 %v1301_v7, %v6092_v18  ;;  %3732 = vmatmul.mubr.bf16.gmra.mrb[16].mxu0 %v2783_v22  ;;  %vm2064_vm5 = vcmp.gt.f32.partialorder %v1298_v53, 0.0  ;;  %v4663_v22 = vcombine.high %v420_v26, %v424_v62  ;;  %v428_v7 = vld [vmem:[#allocation5 + $0xd8] sm:$0xff] }
 0x1df   : > { %vm2071_vm6 = vcmp.gt.f32.partialorder %v1300_v34, 0.0  ;;  %v2327_v48 = vmul.f32 0.01, %v1300_v34  ;;  %1630 = vmatmul.mubr.bf16.vlgmr.msra.gmra.mrb[128].mxu1 %v5890_v12  ;;  %3869 = vmatpush1.bf16.msra.mxu0 %v5319_v46  ;;  %v2575_v23 = vsel %vm2063_vm4, %v1296_v33, %v2319_v61  ;;  %v4662_v61 = vcombine.low %v420_v26, %v424_v62  ;;  %v5328_v26 = vld [vmem:[#allocation8 + $0x1b0] ss:$8 sps:$4 sm:$0xff]  }
 0x1e0   : > { %vm2072_vm7 = vcmp.gt.f32.partialorder %v1302_v54, 0.0  ;;  %v2328_v1 = vmul.f32 0.01, %v1302_v54  ;;  %1791 = vmatpush1.bf16.msra.mxu1 %v4646_v17  ;;  %1639 = vmatprep.mubr.bf16.mxu1 %v5892_v14  ;;  %v2576_v40 = vsel %vm2064_vm5, %v1298_v53, %v2320_v60  ;;  %v5330_v60 = vld [vmem:[#allocation8 + $0x1b4] ss:$8 sps:$4 sm:$0xff]  }
 0x1e1   : > { %v2583_v28 = vsel %vm2071_vm6, %v1300_v34, %v2327_v48  ;;  %1792 = vmatprep.subr.bf16.mxu1 %v4655_v47  ;;  %3870 = vmatprep.subr.bf16.mxu0 %v5324_v5  ;;  %v4671_v5 = vcombine.high %v428_v7, %v432_v3 }
 0x1e2   : > { %v1305_v39 = vpop.f32.mrb[24].mxu1  ;;  %v2584_v46 = vsel %vm2072_vm7, %v1302_v54, %v2328_v1  ;;  %v2791_v43 = vpack.c.bf16 %v2583_v28, %v2575_v23  ;;  %v440_v1 = vld [vmem:[#allocation5 + $0x138] sm:$0xff]  ;;  %v5333_v23 = vld [vmem:[#allocation8 + $0x1c4] ss:$8 sps:$4 sm:$0xff]  }
 0x1e3   : > { %v1306_v4 = vadd.f32 %v1305_v39, %v6088_v13  ;;  %v1307_v6 = vpop.f32.mrb[25].mxu1  ;;  %v2792_v17 = vpack.c.bf16 %v2584_v46, %v2576_v40  ;;  %3871 = vmatpush1.bf16.msra.mxu0 %v5322_v19  ;;  %v436_v19 = vld [vmem:[#allocation5 + $0x118] sm:$0xff] }
 0x1e4   : > { %v1308_v32 = vadd.f32 %v1307_v6, %v6092_v18  ;;  %v1309_v33 = vpop.f32.mrb[26].mxu1  ;;  %1793 = vmatpush1.bf16.msra.mxu1 %v4654_v24  ;;  %3872 = vmatprep.subr.bf16.mxu0 %v5327_v21  ;;  %v4670_v21 = vcombine.low %v428_v7, %v432_v3  ;;  %v4679_v39 = vcombine.high %v436_v19, %v440_v1  ;;  %v5331_v3 = vld [vmem:[#allocation8 + $0x1c0] ss:$8 sps:$4 sm:$0xff]  }
 0x1e5   : > { %v2335_v34 = vmul.f32 0.01, %v1306_v4  ;;  %v1310_v47 = vadd.f32 %v1309_v33, %v6088_v13  ;;  %v1311_v53 = vpop.f32.mrb[27].mxu1  ;;  %3741 = vmatprep.mubr.bf16.mxu0 %v2792_v17  ;;  %1794 = vmatprep.subr.bf16.mxu1 %v4663_v22  ;;  %vm2079_vm8 = vcmp.gt.f32.partialorder %v1306_v4, 0.0  ;;  %v444_v17 = vld [vmem:[#allocation5 + $0x158] sm:$0xff] }
 0x1e6   : > { %v2336_v54 = vmul.f32 0.01, %v1308_v32  ;;  %v1312_v48 = vadd.f32 %v1311_v53, %v6092_v18  ;;  %3742 = vmatmul.mubr.bf16.gmra.mrb[20].mxu0 %v2791_v43  ;;  %vm2080_vm9 = vcmp.gt.f32.partialorder %v1308_v32, 0.0 }
 0x1e7   : > { %vm2087_vm10 = vcmp.gt.f32.partialorder %v1310_v47, 0.0  ;;  %v2343_v24 = vmul.f32 0.01, %v1310_v47  ;;  %1640 = vmatmul.mubr.bf16.gmra.mrb[132].mxu1 %v5906_v30  ;;  %3873 = vmatpush1.bf16.msra.mxu0 %v5325_v25  ;;  %v2591_v28 = vsel %vm2079_vm8, %v1306_v4, %v2335_v34  ;;  %v448_v25 = vld [vmem:[#allocation5 + $0x178] sm:$0xff] }
 0x1e8   : > { %vm2088_vm11 = vcmp.gt.f32.partialorder %v1312_v48, 0.0  ;;  %v2344_v62 = vmul.f32 0.01, %v1312_v48  ;;  %1649 = vmatprep.mubr.bf16.mxu1 %v5908_v31  ;;  %1795 = vmatpush1.bf16.msra.mxu1 %v4662_v61  ;;  %v2592_v46 = vsel %vm2080_vm9, %v1308_v32, %v2336_v54  ;;  %v4678_v61 = vcombine.low %v436_v19, %v440_v1  ;;  %v5334_v19 = vld [vmem:[#allocation8 + $0x1d0] ss:$8 sps:$4 sm:$0xff]  }
 0x1e9   : > { %v2599_v22 = vsel %vm2087_vm10, %v1310_v47, %v2343_v24  ;;  %1796 = vmatprep.subr.bf16.mxu1 %v4671_v5  ;;  %3874 = vmatprep.subr.bf16.mxu0 %v5330_v60  ;;  %v4687_v5 = vcombine.high %v444_v17, %v448_v25  ;;  %v5336_v60 = vld [vmem:[#allocation8 + $0x1d4] ss:$8 sps:$4 sm:$0xff]  }
 0x1ea   : > { %v1315_v40 = vpop.f32.mrb[28].mxu1  ;;  %v2600_v43 = vsel %vm2088_vm11, %v1312_v48, %v2344_v62  ;;  %v2799_v6 = vpack.c.bf16 %v2599_v22, %v2591_v28  ;;  %v452_v24 = vld [vmem:[#allocation5 + $0x198] sm:$0xff] }
 0x1eb   : > { %v1316_v33 = vadd.f32 %v1315_v40, %v6088_v13  ;;  %v1317_v53 = vpop.f32.mrb[29].mxu1  ;;  %v2800_v31 = vpack.c.bf16 %v2600_v43, %v2592_v46  ;;  %3875 = vmatpush1.bf16.msra.mxu0 %v5328_v26  ;;  %v456_v26 = vld [vmem:[#allocation5 + $0x1b8] sm:$0xff] }
 0x1ec   : > { %v1318_v7 = vadd.f32 %v1317_v53, %v6092_v18  ;;  %v1319_v4 = vpop.f32.mrb[30].mxu1  ;;  %1797 = vmatpush1.bf16.msra.mxu1 %v4670_v21  ;;  %3876 = vmatprep.subr.bf16.mxu0 %v5333_v23  ;;  %v5339_v21 = vld [vmem:[#allocation8 + $0x1e4] ss:$8 sps:$4 sm:$0xff]   ;;  %v4695_v22 = vcombine.high %v452_v24, %v456_v26  ;;  %v464_v53 = vld [vmem:[#allocation5 + $0x1f8] sm:$0xff] }
 0x1ed   : > { %v2351_v34 = vmul.f32 0.01, %v1316_v33  ;;  %v1320_v47 = vadd.f32 %v1319_v4, %v6088_v13  ;;  %v1321_v32 = vpop.f32.mrb[31].mxu1  ;;  %3751 = vmatprep.mubr.bf16.mxu0 %v2800_v31  ;;  %1798 = vmatprep.subr.bf16.mxu1 %v4679_v39  ;;  %vm2095_vm12 = vcmp.gt.f32.partialorder %v1316_v33, 0.0  ;;  %v4686_v31 = vcombine.low %v444_v17, %v448_v25  ;;  %v5337_v17 = vld [vmem:[#allocation8 + $0x1e0] ss:$8 sps:$4 sm:$0xff]  }
 0x1ee   : > { %v2352_v54 = vmul.f32 0.01, %v1318_v7  ;;  %v1322_v48 = vadd.f32 %v1321_v32, %v6092_v18  ;;  %3752 = vmatmul.mubr.bf16.gmra.mrb[24].mxu0 %v2799_v6  ;;  %vm2096_vm13 = vcmp.gt.f32.partialorder %v1318_v7, 0.0  ;;  %v460_v6 = vld [vmem:[#allocation5 + $0x1d8] sm:$0xff] }
 0x1ef   : > { %vm2103_vm14 = vcmp.gt.f32.partialorder %v1320_v47, 0.0  ;;  %v2359_v62 = vmul.f32 0.01, %v1320_v47  ;;  %1650 = vmatmul.mubr.bf16.gmra.mrb[136].mxu1 %v5916_v44  ;;  %3877 = vmatpush1.bf16.msra.mxu0 %v5331_v3  ;;  %v2607_v23 = vsel %vm2095_vm12, %v1316_v33, %v2351_v34 }
 0x1f0   : > { %vm2104_vm15 = vcmp.gt.f32.partialorder %v1322_v48, 0.0  ;;  %v2360_v1 = vmul.f32 0.01, %v1322_v48  ;;  %1659 = vmatprep.mubr.bf16.mxu1 %v5918_v45  ;;  %1799 = vmatpush1.bf16.msra.mxu1 %v4678_v61  ;;  %v2608_v40 = vsel %vm2096_vm13, %v1318_v7, %v2352_v54  ;;  %v4694_v61 = vcombine.low %v452_v24, %v456_v26  ;;  %v5340_v24 = vld [vmem:[#allocation8 + $0x1f0] ss:$8 sps:$4 sm:$0xff]  }
 0x1f1   : > { %v2615_v28 = vsel %vm2103_vm14, %v1320_v47, %v2359_v62  ;;  %1800 = vmatprep.subr.bf16.mxu1 %v4687_v5  ;;  %3878 = vmatprep.subr.bf16.mxu0 %v5336_v60  ;;  %v4703_v5 = vcombine.high %v460_v6, %v464_v53  ;;  %v5342_v60 = vld [vmem:[#allocation8 + $0x1f4] ss:$8 sps:$4 sm:$0xff]  }
 0x1f2   : > { %v1325_v39 = vpop.f32.mrb[32].mxu1  ;;  %v2616_v46 = vsel %vm2104_vm15, %v1322_v48, %v2360_v1  ;;  %v2807_v43 = vpack.c.bf16 %v2615_v28, %v2607_v23  ;;  %v468_v62 = vld [vmem:[#allocation5 + $0x218] sm:$0xff] }
 0x1f3   : > { %v1326_v3 = vadd.f32 %v1325_v39, %v6088_v13  ;;  %v1327_v4 = vpop.f32.mrb[33].mxu1  ;;  %v2808_v32 = vpack.c.bf16 %v2616_v46, %v2608_v40  ;;  %3879 = vmatpush1.bf16.msra.mxu0 %v5334_v19  ;;  %v472_v19 = vld [vmem:[#allocation5 + $0x238] sm:$0xff] }
 0x1f4   : > { %v1328_v25 = vadd.f32 %v1327_v4, %v6092_v18  ;;  %v1329_v33 = vpop.f32.mrb[34].mxu1  ;;  %1801 = vmatpush1.bf16.msra.mxu1 %v4686_v31  ;;  %3880 = vmatprep.subr.bf16.mxu0 %v5339_v21  ;;  %v4702_v31 = vcombine.low %v460_v6, %v464_v53  ;;  %v5345_v21 = vld [vmem:[#allocation8 + $0x204] ss:$8 sps:$4 sm:$0xff]   ;;  %v476_v4 = vld [vmem:[#allocation5 + $0x258] sm:$0xff] }
 0x1f5   : > { %v2367_v34 = vmul.f32 0.01, %v1326_v3  ;;  %v1330_v47 = vadd.f32 %v1329_v33, %v6088_v13  ;;  %v1331_v7 = vpop.f32.mrb[35].mxu1  ;;  %3761 = vmatprep.mubr.bf16.mxu0 %v2808_v32  ;;  %1802 = vmatprep.subr.bf16.mxu1 %v4695_v22  ;;  %vm2111_vm0 = vcmp.gt.f32.partialorder %v1326_v3, 0.0  ;;  %v4711_v22 = vcombine.high %v468_v62, %v472_v19  ;;  %v480_v32 = vld [vmem:[#allocation5 + $0x278] sm:$0xff] }
 0x1f6   : > { %v2368_v54 = vmul.f32 0.01, %v1328_v25  ;;  %v1332_v48 = vadd.f32 %v1331_v7, %v6092_v18  ;;  %3762 = vmatmul.mubr.bf16.gmra.mrb[28].mxu0 %v2807_v43  ;;  %vm2112_vm1 = vcmp.gt.f32.partialorder %v1328_v25, 0.0 }
 0x1f7   : > { %vm2119_vm2 = vcmp.gt.f32.partialorder %v1330_v47, 0.0  ;;  %v2375_v1 = vmul.f32 0.01, %v1330_v47  ;;  %1660 = vmatmul.mubr.bf16.gmra.mrb[140].mxu1 %v5926_v58  ;;  %3881 = vmatpush1.bf16.msra.mxu0 %v5337_v17  ;;  %v2623_v23 = vsel %vm2111_vm0, %v1326_v3, %v2367_v34  ;;  %v4710_v3 = vcombine.low %v468_v62, %v472_v19 }
 0x1f8   : > { %vm2120_vm3 = vcmp.gt.f32.partialorder %v1332_v48, 0.0  ;;  %v2376_v26 = vmul.f32 0.01, %v1332_v48  ;;  %1669 = vmatprep.mubr.bf16.mxu1 %v5928_v59  ;;  %1803 = vmatpush1.bf16.msra.mxu1 %v4694_v61  ;;  %v2624_v40 = vsel %vm2112_vm1, %v1328_v25, %v2368_v54  ;;  %v4719_v25 = vcombine.high %v476_v4, %v480_v32  ;;  %v484_v54 = vld [vmem:[#allocation5 + $0x298] sm:$0xff] }
 0x1f9   : > { %v2631_v28 = vsel %vm2119_vm2, %v1330_v47, %v2375_v1  ;;  %1804 = vmatprep.subr.bf16.mxu1 %v4703_v5  ;;  %3882 = vmatprep.subr.bf16.mxu0 %v5342_v60  ;;  %v4718_v19 = vcombine.low %v476_v4, %v480_v32 }
 0x1fa   : > { %v1335_v39 = vpop.f32.mrb[36].mxu1  ;;  %v2632_v46 = vsel %vm2120_vm3, %v1332_v48, %v2376_v26  ;;  %v2815_v43 = vpack.c.bf16 %v2631_v28, %v2623_v23  ;;  %v488_v48 = vld [vmem:[#allocation5 + $0x2b8] sm:$0xff] }
 0x1fb   : > { %v1336_v17 = vadd.f32 %v1335_v39, %v6088_v13  ;;  %v1337_v33 = vpop.f32.mrb[37].mxu1  ;;  %v2816_v7 = vpack.c.bf16 %v2632_v46, %v2624_v40  ;;  %3883 = vmatpush1.bf16.msra.mxu0 %v5340_v24  ;;  %v492_v39 = vld [vmem:[#allocation5 + $0x2d8] sm:$0xff] }
 0x1fc   : > { %v1338_v6 = vadd.f32 %v1337_v33, %v6092_v18  ;;  %v1339_v53 = vpop.f32.mrb[38].mxu1  ;;  %1805 = vmatpush1.bf16.msra.mxu1 %v4702_v31  ;;  %4045 = vmatprep.subr.bf16.mxu0 %v5345_v21  ;;  %v4727_v31 = vcombine.high %v484_v54, %v488_v48  ;;  %v496_v40 = vld [vmem:[#allocation5 + $0x2f8] sm:$0xff] }
 0x1fd   : > { %v2383_v61 = vmul.f32 0.01, %v1336_v17  ;;  %v1340_v34 = vadd.f32 %v1339_v53, %v6088_v13  ;;  %v1341_v47 = vpop.f32.mrb[39].mxu1  ;;  %3771 = vmatprep.mubr.bf16.mxu0 %v2816_v7  ;;  %1806 = vmatprep.subr.bf16.mxu1 %v4711_v22  ;;  %vm2127_vm4 = vcmp.gt.f32.partialorder %v1336_v17, 0.0 }
 0x1fe   : > { %v2384_v5 = vmul.f32 0.01, %v1338_v6  ;;  %v1342_v60 = vadd.f32 %v1341_v47, %v6092_v18  ;;  %3772 = vmatmul.mubr.bf16.gmra.mrb[32].mxu0 %v2815_v43  ;;  %vm2128_vm5 = vcmp.gt.f32.partialorder %v1338_v6, 0.0  ;;  %v500_v47 = vld [vmem:[#allocation5 + $0x318] sm:$0xff] }
 0x1ff   : > { %vm2135_vm6 = vcmp.gt.f32.partialorder %v1340_v34, 0.0  ;;  %v2391_v1 = vmul.f32 0.01, %v1340_v34  ;;  %1670 = vmatmul.mubr.bf16.gmra.mrb[144].mxu1 %v5936_v9  ;;  %v2639_v24 = vsel %vm2127_vm4, %v1336_v17, %v2383_v61 }
 0x200   : > { %vm2136_vm7 = vcmp.gt.f32.partialorder %v1342_v60, 0.0  ;;  %v2392_v62 = vmul.f32 0.01, %v1342_v60  ;;  %1679 = vmatprep.mubr.bf16.mxu1 %v5938_v10  ;;  %1807 = vmatpush1.bf16.msra.mxu1 %v4710_v3  ;;  %v2640_v23 = vsel %vm2128_vm5, %v1338_v6, %v2384_v5  ;;  %v4726_v3 = vcombine.low %v484_v54, %v488_v48 }
 0x201   : > { %v2647_v26 = vsel %vm2135_vm6, %v1340_v34, %v2391_v1  ;;  %1808 = vmatprep.subr.bf16.mxu1 %v4719_v25  ;;  %v4735_v6 = vcombine.high %v492_v39, %v496_v40  ;;  %v504_v25 = vld [vmem:[#allocation5 + $0x338] sm:$0xff]  ;;  %v4734_v54 = vcombine.low %v492_v39, %v496_v40 }
 0x202   : > { %v1345_v21 = vpop.f32.mrb[40].mxu1  ;;  %v2648_v28 = vsel %vm2136_vm7, %v1342_v60, %v2392_v62  ;;  %v2823_v22 = vpack.c.bf16 %v2647_v26, %v2639_v24  ;;  %v4743_v62 = vcombine.high %v500_v47, %v504_v25 }
 0x203   : > { %v1346_v46 = vadd.f32 %v1345_v21, %v6088_v13  ;;  %v1347_v43 = vpop.f32.mrb[41].mxu1  ;;  %v2824_v33 = vpack.c.bf16 %v2648_v28, %v2640_v23  ;;  %v508_v21 = vld [vmem:[#allocation5 + $0x358] sm:$0xff] }
 0x204   : > { %v1348_v7 = vadd.f32 %v1347_v43, %v6092_v18  ;;  %v1349_v53 = vpop.f32.mrb[42].mxu1  ;;  %1809 = vmatpush1.bf16.msra.mxu1 %v4718_v19  ;;  %v512_v23 = vld [vmem:[#allocation5 + $0x378] sm:$0xff] }
 0x205   : > { %v2399_v4 = vmul.f32 0.01, %v1346_v46  ;;  %v1350_v32 = vadd.f32 %v1349_v53, %v6088_v13  ;;  %v1351_v17 = vpop.f32.mrb[43].mxu1  ;;  %3781 = vmatprep.mubr.bf16.mxu0 %v2824_v33  ;;  %1810 = vmatprep.subr.bf16.mxu1 %v4727_v31  ;;  %vm2143_vm8 = vcmp.gt.f32.partialorder %v1346_v46, 0.0 }
 0x206   : > { %v2400_v61 = vmul.f32 0.01, %v1348_v7  ;;  %v1352_v34 = vadd.f32 %v1351_v17, %v6092_v18  ;;  %3782 = vmatmul.mubr.bf16.gmra.mrb[36].mxu0 %v2823_v22  ;;  %vm2144_vm9 = vcmp.gt.f32.partialorder %v1348_v7, 0.0  ;;  %v516_v17 = vld [vmem:[#allocation5 + $0x398] sm:$0xff] }
 0x207   : > { %vm2151_vm10 = vcmp.gt.f32.partialorder %v1350_v32, 0.0  ;;  %v2407_v5 = vmul.f32 0.01, %v1350_v32  ;;  %1680 = vmatmul.mubr.bf16.gmra.mrb[148].mxu1 %v5946_v35  ;;  %v2655_v48 = vsel %vm2143_vm8, %v1346_v46, %v2399_v4 }
 0x208   : > { %vm2152_vm11 = vcmp.gt.f32.partialorder %v1352_v34, 0.0  ;;  %v2408_v60 = vmul.f32 0.01, %v1352_v34  ;;  %1689 = vmatprep.mubr.bf16.mxu1 %v5948_v36  ;;  %1811 = vmatpush1.bf16.msra.mxu1 %v4726_v3  ;;  %v2656_v24 = vsel %vm2144_vm9, %v1348_v7, %v2400_v61  ;;  %v4742_v3 = vcombine.low %v500_v47, %v504_v25 }
 0x209   : > { %v2663_v1 = vsel %vm2151_vm10, %v1350_v32, %v2407_v5  ;;  %1812 = vmatprep.subr.bf16.mxu1 %v4735_v6  ;;  %v4751_v7 = vcombine.high %v508_v21, %v512_v23  ;;  %v520_v6 = vld [vmem:[#allocation5 + $0x3b8] sm:$0xff]  ;;  %v4750_v47 = vcombine.low %v508_v21, %v512_v23 }
 0x20a   : > { %v1355_v19 = vpop.f32.mrb[44].mxu1  ;;  %v2664_v26 = vsel %vm2152_vm11, %v1352_v34, %v2408_v60  ;;  %v2831_v31 = vpack.c.bf16 %v2663_v1, %v2655_v48  ;;  %v4759_v60 = vcombine.high %v516_v17, %v520_v6 }
 0x20b   : > { %v1356_v28 = vadd.f32 %v1355_v19, %v6088_v13  ;;  %v1357_v22 = vpop.f32.mrb[45].mxu1  ;;  %v2832_v43 = vpack.c.bf16 %v2664_v26, %v2656_v24  ;;  %v524_v19 = vld [vmem:[#allocation5 + $0x3d8] sm:$0xff] }
 0x20c   : > { %v1358_v33 = vadd.f32 %v1357_v22, %v6092_v18  ;;  %v1359_v53 = vpop.f32.mrb[46].mxu1  ;;  %1813 = vmatpush1.bf16.msra.mxu1 %v4734_v54  ;;  %v528_v24 = vld [vmem:[#allocation5 + $0x3f8] sm:$0xff] }
 0x20d   : > { %v2415_v39 = vmul.f32 0.01, %v1356_v28  ;;  %v1360_v40 = vadd.f32 %v1359_v53, %v6088_v13  ;;  %v1361_v46 = vpop.f32.mrb[47].mxu1  ;;  %3791 = vmatprep.mubr.bf16.mxu0 %v2832_v43  ;;  %1814 = vmatprep.subr.bf16.mxu1 %v4743_v62  ;;  %vm2159_vm12 = vcmp.gt.f32.partialorder %v1356_v28, 0.0 }
 0x20e   : > { %v2416_v4 = vmul.f32 0.01, %v1358_v33  ;;  %v1362_v32 = vadd.f32 %v1361_v46, %v6092_v18  ;;  %3792 = vmatmul.mubr.bf16.gmra.mrb[40].mxu0 %v2831_v31  ;;  %vm2160_vm13 = vcmp.gt.f32.partialorder %v1358_v33, 0.0 }
 0x20f   : > { %vm2167_vm14 = vcmp.gt.f32.partialorder %v1360_v40, 0.0  ;;  %v2423_v61 = vmul.f32 0.01, %v1360_v40  ;;  %1690 = vmatmul.mubr.bf16.gmra.mrb[152].mxu1 %v5956_v55  ;;  %v2671_v25 = vsel %vm2159_vm12, %v1356_v28, %v2415_v39 }
 0x210   : > { %vm2168_vm15 = vcmp.gt.f32.partialorder %v1362_v32, 0.0  ;;  %v2424_v34 = vmul.f32 0.01, %v1362_v32  ;;  %1699 = vmatprep.mubr.bf16.mxu1 %v5958_v56  ;;  %1815 = vmatpush1.bf16.msra.mxu1 %v4742_v3  ;;  %v2672_v48 = vsel %vm2160_vm13, %v1358_v33, %v2416_v4  ;;  %v4758_v3 = vcombine.low %v516_v17, %v520_v6 }
 0x211   : > { %v2679_v5 = vsel %vm2167_vm14, %v1360_v40, %v2423_v61  ;;  %1816 = vmatprep.subr.bf16.mxu1 %v4751_v7  ;;  %v4767_v33 = vcombine.high %v524_v19, %v528_v24  ;;  %v4766_v4 = vcombine.low %v524_v19, %v528_v24 }
 0x212   : > { %v1365_v54 = vpop.f32.mrb[48].mxu1  ;;  %v2680_v1 = vsel %vm2168_vm15, %v1362_v32, %v2424_v34  ;;  %v2839_v62 = vpack.c.bf16 %v2679_v5, %v2671_v25 }
 0x213   : > { %v1366_v26 = vadd.f32 %v1365_v54, %v6088_v13  ;;  %v1367_v31 = vpop.f32.mrb[49].mxu1  ;;  %v2840_v22 = vpack.c.bf16 %v2680_v1, %v2672_v48 }
 0x214   : > { %v1368_v43 = vadd.f32 %v1367_v31, %v6092_v18  ;;  %v1369_v53 = vpop.f32.mrb[50].mxu1  ;;  %1817 = vmatpush1.bf16.msra.mxu1 %v4750_v47 }
 0x215   : > { %v2431_v21 = vmul.f32 0.01, %v1366_v26  ;;  %v1370_v23 = vadd.f32 %v1369_v53, %v6088_v13  ;;  %v1371_v28 = vpop.f32.mrb[51].mxu1  ;;  %3801 = vmatprep.mubr.bf16.mxu0 %v2840_v22  ;;  %1818 = vmatprep.subr.bf16.mxu1 %v4759_v60  ;;  %vm2175_vm0 = vcmp.gt.f32.partialorder %v1366_v26, 0.0 }
 0x216   : > { %v2432_v39 = vmul.f32 0.01, %v1368_v43  ;;  %v1372_v40 = vadd.f32 %v1371_v28, %v6092_v18  ;;  %3802 = vmatmul.mubr.bf16.gmra.mrb[44].mxu0 %v2839_v62  ;;  %vm2176_vm1 = vcmp.gt.f32.partialorder %v1368_v43, 0.0 }
 0x217   : > { %vm2183_vm2 = vcmp.gt.f32.partialorder %v1370_v23, 0.0  ;;  %v2439_v46 = vmul.f32 0.01, %v1370_v23  ;;  %1700 = vmatmul.mubr.bf16.gmra.mrb[156].mxu1 %v5966_v15  ;;  %v2687_v32 = vsel %vm2175_vm0, %v1366_v26, %v2431_v21 }
 0x218   : > { %vm2184_vm3 = vcmp.gt.f32.partialorder %v1372_v40, 0.0  ;;  %v2440_v7 = vmul.f32 0.01, %v1372_v40  ;;  %1709 = vmatprep.mubr.bf16.mxu1 %v5968_v16  ;;  %1819 = vmatpush1.bf16.msra.mxu1 %v4758_v3  ;;  %v2688_v61 = vsel %vm2176_vm1, %v1368_v43, %v2432_v39 }
 0x219   : > { %v2695_v17 = vsel %vm2183_vm2, %v1370_v23, %v2439_v46  ;;  %1820 = vmatprep.subr.bf16.mxu1 %v4767_v33 }
 0x21a   : > { %v1375_v6 = vpop.f32.mrb[52].mxu1  ;;  %v2696_v34 = vsel %vm2184_vm3, %v1372_v40, %v2440_v7  ;;  %v2847_v47 = vpack.c.bf16 %v2695_v17, %v2687_v32 }
 0x21b   : > { %v1376_v25 = vadd.f32 %v1375_v6, %v6088_v13  ;;  %v1377_v5 = vpop.f32.mrb[53].mxu1  ;;  %v2848_v60 = vpack.c.bf16 %v2696_v34, %v2688_v61 }
 0x21c   : > { %v1378_v54 = vadd.f32 %v1377_v5, %v6092_v18  ;;  %v1379_v48 = vpop.f32.mrb[54].mxu1  ;;  %1821 = vmatpush1.bf16.msra.mxu1 %v4766_v4 }
 0x21d   : > { %v2447_v1 = vmul.f32 0.01, %v1376_v25  ;;  %v1380_v62 = vadd.f32 %v1379_v48, %v6088_v13  ;;  %v1381_v31 = vpop.f32.mrb[55].mxu1  ;;  %3811 = vmatprep.mubr.bf16.mxu0 %v2848_v60  ;;  %vm2191_vm4 = vcmp.gt.f32.partialorder %v1376_v25, 0.0 }
 0x21e   : > { %v2448_v19 = vmul.f32 0.01, %v1378_v54  ;;  %v1382_v24 = vadd.f32 %v1381_v31, %v6092_v18  ;;  %3812 = vmatmul.mubr.bf16.gmra.mrb[48].mxu0 %v2847_v47  ;;  %vm2192_vm5 = vcmp.gt.f32.partialorder %v1378_v54, 0.0 }
 0x21f   : > { %vm2199_vm6 = vcmp.gt.f32.partialorder %v1380_v62, 0.0  ;;  %v2455_v26 = vmul.f32 0.01, %v1380_v62  ;;  %1710 = vmatmul.mubr.bf16.gmra.mrb[160].mxu1 %v5978_v37  ;;  %v2703_v43 = vsel %vm2191_vm4, %v1376_v25, %v2447_v1 }
 0x220   : > { %vm2200_vm7 = vcmp.gt.f32.partialorder %v1382_v24, 0.0  ;;  %v2456_v22 = vmul.f32 0.01, %v1382_v24  ;;  %1719 = vmatprep.mubr.bf16.mxu1 %v5980_v38  ;;  %v2704_v21 = vsel %vm2192_vm5, %v1378_v54, %v2448_v19 }
 0x221   : > { %v2711_v53 = vsel %vm2199_vm6, %v1380_v62, %v2455_v26 }
 0x222   : > { %v1385_v3 = vpop.f32.mrb[56].mxu1  ;;  %v2712_v23 = vsel %vm2200_vm7, %v1382_v24, %v2456_v22  ;;  %v2855_v28 = vpack.c.bf16 %v2711_v53, %v2703_v43  ;;  %v541_v24 = vsub.s32 2, %v6080_v2  ;;  %v545_v43 = vsub.s32 3, %v6080_v2 }
 0x223   : > { %v1386_v33 = vadd.f32 %v1385_v3, %v6088_v13  ;;  %v1387_v39 = vpop.f32.mrb[57].mxu1  ;;  %v2856_v40 = vpack.c.bf16 %v2712_v23, %v2704_v21 }
 0x224   : > { %v1388_v46 = vadd.f32 %v1387_v39, %v6092_v18  ;;  %v1389_v7 = vpop.f32.mrb[58].mxu1  ;;  %v6203_v39 = vld [vmem:[#allocation7] sm:$0xff] }
 0x225   : > { %v2463_v4 = vmul.f32 0.01, %v1386_v33  ;;  %v1390_v32 = vadd.f32 %v1389_v7, %v6088_v13  ;;  %v1391_v17 = vpop.f32.mrb[59].mxu1  ;;  %3821 = vmatprep.mubr.bf16.mxu0 %v2856_v40  ;;  %vm2207_vm8 = vcmp.gt.f32.partialorder %v1386_v33, 0.0  ;;  %v6206_v40 = vrot.slane %v6203_v39, %v541_v24 }
 0x226   : > { %v2464_v6 = vmul.f32 0.01, %v1388_v46  ;;  %v1392_v61 = vadd.f32 %v1391_v17, %v6092_v18  ;;  %3822 = vmatmul.mubr.bf16.gmra.mrb[52].mxu0 %v2855_v28  ;;  %vm2208_vm9 = vcmp.gt.f32.partialorder %v1388_v46, 0.0 }
 0x227   : > { %vm2215_vm10 = vcmp.gt.f32.partialorder %v1390_v32, 0.0  ;;  %v2471_v34 = vmul.f32 0.01, %v1390_v32  ;;  %1720 = vmatmul.mubr.bf16.gmra.mrb[164].mxu1 %v5988_v49  ;;  %v2719_v25 = vsel %vm2207_vm8, %v1386_v33, %v2463_v4 }
 0x228   : > { %vm2216_vm11 = vcmp.gt.f32.partialorder %v1392_v61, 0.0  ;;  %v2472_v47 = vmul.f32 0.01, %v1392_v61  ;;  %1729 = vmatprep.mubr.bf16.mxu1 %v5990_v50  ;;  %v2720_v54 = vsel %vm2208_vm9, %v1388_v46, %v2464_v6 }
 0x229   : > { %v2727_v5 = vsel %vm2215_vm10, %v1390_v32, %v2471_v34 }
 0x22a   : > { %v1395_v60 = vpop.f32.mrb[60].mxu1  ;;  %v2728_v48 = vsel %vm2216_vm11, %v1392_v61, %v2472_v47  ;;  %v2863_v1 = vpack.c.bf16 %v2727_v5, %v2719_v25 }
 0x22b   : > { %v1396_v62 = vadd.f32 %v1395_v60, %v6088_v13  ;;  %v1397_v31 = vpop.f32.mrb[61].mxu1  ;;  %v2864_v19 = vpack.c.bf16 %v2728_v48, %v2720_v54 }
 0x22c   : > { %v1398_v26 = vadd.f32 %v1397_v31, %v6092_v18  ;;  %v1399_v22 = vpop.f32.mrb[62].mxu1 }
 0x22d   : > { %v2479_v53 = vmul.f32 0.01, %v1396_v62  ;;  %v1400_v3 = vadd.f32 %v1399_v22, %v6088_v13  ;;  %v1401_v21 = vpop.f32.mrb[63].mxu1  ;;  %3831 = vmatprep.mubr.bf16.mxu0 %v2864_v19  ;;  %vm2223_vm12 = vcmp.gt.f32.partialorder %v1396_v62, 0.0  ;;  %v6209_v13 = vrot.slane %v6203_v39, %v545_v43 }
 0x22e   : > { %v2480_v23 = vmul.f32 0.01, %v1398_v26  ;;  %v1402_v28 = vadd.f32 %v1401_v21, %v6092_v18  ;;  %3832 = vmatmul.mubr.bf16.gmra.mrb[56].mxu0 %v2863_v1  ;;  %vm2224_vm13 = vcmp.gt.f32.partialorder %v1398_v26, 0.0 }
 0x22f   : > { %vm2231_vm14 = vcmp.gt.f32.partialorder %v1400_v3, 0.0  ;;  %v2487_v33 = vmul.f32 0.01, %v1400_v3  ;;  %1730 = vmatmul.mubr.bf16.gmra.mrb[168].mxu1 %v5998_v63  ;;  %v2735_v7 = vsel %vm2223_vm12, %v1396_v62, %v2479_v53 }
 0x230   : > { %vm2232_vm15 = vcmp.gt.f32.partialorder %v1402_v28, 0.0  ;;  %v2488_v46 = vmul.f32 0.01, %v1402_v28  ;;  %1739 = vmatprep.mubr.bf16.mxu1 %v6000_v0  ;;  %v2736_v32 = vsel %vm2224_vm13, %v1398_v26, %v2480_v23 }
 0x231   : > { %v2743_v18 = vsel %vm2231_vm14, %v1400_v3, %v2487_v33  ;;  %v5343_v33 = vld [vmem:[#allocation8 + $0x200] ss:$8 sps:$4 sm:$0xff]  }
 0x232   : > { %v1438_v4 = vpop.f32.mrb[64].mxu1  ;;  %v2744_v17 = vsel %vm2232_vm15, %v1402_v28, %v2488_v46  ;;  %v2871_v6 = vpack.c.bf16 %v2743_v18, %v2735_v7  ;;  %v5348_v18 = vld [vmem:[#allocation8 + $0x214] ss:$8 sps:$4 sm:$0xff]  }
 0x233   : > { %v1439_v61 = vadd.f32 %v1438_v4, %v6206_v40  ;;  %v1440_v34 = vpop.f32.mrb[65].mxu1  ;;  %v2872_v47 = vpack.c.bf16 %v2744_v17, %v2736_v32 }
 0x234   : > { %v1441_v25 = vadd.f32 %v1440_v34, %v6209_v13  ;;  %v1442_v5 = vpop.f32.mrb[66].mxu1 }
 0x235   : > { %v2241_v60 = vmul.f32 0.01, %v1439_v61  ;;  %v1443_v54 = vadd.f32 %v1442_v5, %v6206_v40  ;;  %v1444_v48 = vpop.f32.mrb[67].mxu1  ;;  %3841 = vmatprep.mubr.bf16.mxu0 %v2872_v47  ;;  %vm1985_vm0 = vcmp.gt.f32.partialorder %v1439_v61, 0.0  ;;  %v5346_v47 = vld [vmem:[#allocation8 + $0x210] ss:$8 sps:$4 sm:$0xff]  }
 0x236   : > { %v2242_v1 = vmul.f32 0.01, %v1441_v25  ;;  %v1445_v62 = vadd.f32 %v1444_v48, %v6209_v13  ;;  %3842 = vmatmul.mubr.bf16.gmra.mrb[60].mxu0 %v2871_v6  ;;  %vm1986_vm1 = vcmp.gt.f32.partialorder %v1441_v25, 0.0  ;;  %v5351_v5 = vld [vmem:[#allocation8 + $0x224] ss:$8 sps:$4 sm:$0xff]  }
 0x237   : > { %vm1993_vm2 = vcmp.gt.f32.partialorder %v1443_v54, 0.0  ;;  %v2249_v31 = vmul.f32 0.01, %v1443_v54  ;;  %1740 = vmatmul.mubr.bf16.gmra.mrb[172].mxu1 %v6008_v8  ;;  %v2497_v24 = vsel %vm1985_vm0, %v1439_v61, %v2241_v60 }
 0x238   : > { %vm1994_vm3 = vcmp.gt.f32.partialorder %v1445_v62, 0.0  ;;  %v2250_v19 = vmul.f32 0.01, %v1445_v62  ;;  %1749 = vmatprep.mubr.bf16.mxu1 %v6010_v11  ;;  %v2498_v53 = vsel %vm1986_vm1, %v1441_v25, %v2242_v1 }
 0x239   : > { %v2505_v26 = vsel %vm1993_vm2, %v1443_v54, %v2249_v31 }
 0x23a   : > { %v2753_v22 = vpack.c.bf16 %v2505_v26, %v2497_v24  ;;  %v1448_v43 = vpop.f32.mrb[68].mxu1  ;;  %v2506_v3 = vsel %vm1994_vm3, %v1445_v62, %v2250_v19 }
 0x23b   : > { %v1449_v21 = vadd.f32 %v1448_v43, %v6206_v40  ;;  %v1450_v23 = vpop.f32.mrb[69].mxu1  ;;  %v2754_v28 = vpack.c.bf16 %v2506_v3, %v2498_v53  ;;  %v5354_v3 = vld [vmem:[#allocation8 + $0x234] ss:$8 sps:$4 sm:$0xff]  }
 0x23c   : > { %v1451_v46 = vadd.f32 %v1450_v23, %v6209_v13  ;;  %v1452_v7 = vpop.f32.mrb[70].mxu1 }
 0x23d   : > { %v2257_v4 = vmul.f32 0.01, %v1449_v21  ;;  %v1453_v32 = vadd.f32 %v1452_v7, %v6206_v40  ;;  %v1454_v17 = vpop.f32.mrb[71].mxu1  ;;  %3884 = vmatprep.mubr.bf16.mxu0 %v2754_v28  ;;  %vm2001_vm4 = vcmp.gt.f32.partialorder %v1449_v21, 0.0 }
 0x23e   : > { %v2258_v6 = vmul.f32 0.01, %v1451_v46  ;;  %v1455_v61 = vadd.f32 %v1454_v17, %v6209_v13  ;;  %3885 = vmatmul.mubr.bf16.vlgmr.msra.gmra.mrb[0].mxu0 %v2753_v22  ;;  %vm2002_vm5 = vcmp.gt.f32.partialorder %v1451_v46, 0.0  ;;  %v5349_v22 = vld [vmem:[#allocation8 + $0x220] ss:$8 sps:$4 sm:$0xff]  }
 0x23f   : > { %vm2009_vm6 = vcmp.gt.f32.partialorder %v1453_v32, 0.0  ;;  %v2265_v34 = vmul.f32 0.01, %v1453_v32  ;;  %1750 = vmatmul.mubr.bf16.gmra.mrb[176].mxu1 %v6018_v27  ;;  %4046 = vmatpush1.bf16.msra.mxu0 %v5343_v33  ;;  %v2513_v60 = vsel %vm2001_vm4, %v1449_v21, %v2257_v4 }
 0x240   : > { %vm2010_vm7 = vcmp.gt.f32.partialorder %v1455_v61, 0.0  ;;  %v2266_v25 = vmul.f32 0.01, %v1455_v61  ;;  %1759 = vmatprep.mubr.bf16.mxu1 %v6020_v29  ;;  %4047 = vmatprep.subr.bf16.mxu0 %v5348_v18  ;;  %v2514_v1 = vsel %vm2002_vm5, %v1451_v46, %v2258_v6  ;;  %v5352_v18 = vld [vmem:[#allocation8 + $0x230] ss:$8 sps:$4 sm:$0xff]  }
 0x241   : > { %v2521_v54 = vsel %vm2009_vm6, %v1453_v32, %v2265_v34  ;;  %v5357_v32 = vld [vmem:[#allocation8 + $0x244] ss:$8 sps:$4 sm:$0xff]  }
 0x242   : > { %v1458_v48 = vpop.f32.mrb[72].mxu1  ;;  %v2522_v62 = vsel %vm2010_vm7, %v1455_v61, %v2266_v25  ;;  %v2761_v31 = vpack.c.bf16 %v2521_v54, %v2513_v60 }
 0x243   : > { %v1459_v19 = vadd.f32 %v1458_v48, %v6206_v40  ;;  %v1460_v24 = vpop.f32.mrb[73].mxu1  ;;  %v2762_v26 = vpack.c.bf16 %v2522_v62, %v2514_v1  ;;  %4048 = vmatpush1.bf16.msra.mxu0 %v5346_v47  ;;  %v5355_v48 = vld [vmem:[#allocation8 + $0x240] ss:$8 sps:$4 sm:$0xff]  }
 0x244   : > { %v1461_v43 = vadd.f32 %v1460_v24, %v6209_v13  ;;  %v1462_v53 = vpop.f32.mrb[74].mxu1  ;;  %4049 = vmatprep.subr.bf16.mxu0 %v5351_v5 }
 0x245   : > { %v2273_v23 = vmul.f32 0.01, %v1459_v19  ;;  %v1463_v28 = vadd.f32 %v1462_v53, %v6206_v40  ;;  %v1464_v21 = vpop.f32.mrb[75].mxu1  ;;  %3894 = vmatprep.mubr.bf16.mxu0 %v2762_v26  ;;  %vm2017_vm8 = vcmp.gt.f32.partialorder %v1459_v19, 0.0 }
 0x246   : > { %v2274_v33 = vmul.f32 0.01, %v1461_v43  ;;  %v1465_v46 = vadd.f32 %v1464_v21, %v6209_v13  ;;  %3895 = vmatmul.mubr.bf16.gmra.mrb[4].mxu0 %v2761_v31  ;;  %vm2018_vm9 = vcmp.gt.f32.partialorder %v1461_v43, 0.0  ;;  %v5360_v31 = vld [vmem:[#allocation8 + $0x254] ss:$8 sps:$4 sm:$0xff]  }
 0x247   : > { %vm2025_vm10 = vcmp.gt.f32.partialorder %v1463_v28, 0.0  ;;  %v2281_v7 = vmul.f32 0.01, %v1463_v28  ;;  %1760 = vmatmul.mubr.bf16.gmra.mrb[180].mxu1 %v6028_v41  ;;  %4050 = vmatpush1.bf16.msra.mxu0 %v5349_v22  ;;  %v2529_v17 = vsel %vm2017_vm8, %v1459_v19, %v2273_v23 }
 0x248   : > { %vm2026_vm11 = vcmp.gt.f32.partialorder %v1465_v46, 0.0  ;;  %v2282_v4 = vmul.f32 0.01, %v1465_v46  ;;  %1769 = vmatprep.mubr.bf16.mxu1 %v6030_v42  ;;  %4051 = vmatprep.subr.bf16.mxu0 %v5354_v3  ;;  %v2530_v34 = vsel %vm2018_vm9, %v1461_v43, %v2274_v33  ;;  %v5358_v3 = vld [vmem:[#allocation8 + $0x250] ss:$8 sps:$4 sm:$0xff]  }
 0x249   : > { %v2537_v6 = vsel %vm2025_vm10, %v1463_v28, %v2281_v7  ;;  %v5363_v28 = vld [vmem:[#allocation8 + $0x264] ss:$8 sps:$4 sm:$0xff]  }
 0x24a   : > { %v1468_v61 = vpop.f32.mrb[76].mxu1  ;;  %v2538_v47 = vsel %vm2026_vm11, %v1465_v46, %v2282_v4  ;;  %v2769_v25 = vpack.c.bf16 %v2537_v6, %v2529_v17 }
 0x24b   : > { %v1469_v5 = vadd.f32 %v1468_v61, %v6206_v40  ;;  %v1470_v60 = vpop.f32.mrb[77].mxu1  ;;  %v2770_v54 = vpack.c.bf16 %v2538_v47, %v2530_v34  ;;  %4052 = vmatpush1.bf16.msra.mxu0 %v5352_v18  ;;  %v5361_v61 = vld [vmem:[#allocation8 + $0x260] ss:$8 sps:$4 sm:$0xff]  }
 0x24c   : > { %v1471_v1 = vadd.f32 %v1470_v60, %v6209_v13  ;;  %v1472_v62 = vpop.f32.mrb[78].mxu1  ;;  %4053 = vmatprep.subr.bf16.mxu0 %v5357_v32 }
 0x24d   : > { %v2289_v24 = vmul.f32 0.01, %v1469_v5  ;;  %v1473_v26 = vadd.f32 %v1472_v62, %v6206_v40  ;;  %v1474_v19 = vpop.f32.mrb[79].mxu1  ;;  %3904 = vmatprep.mubr.bf16.mxu0 %v2770_v54  ;;  %vm2033_vm12 = vcmp.gt.f32.partialorder %v1469_v5, 0.0 }
 0x24e   : > { %v2290_v22 = vmul.f32 0.01, %v1471_v1  ;;  %v1475_v43 = vadd.f32 %v1474_v19, %v6209_v13  ;;  %3905 = vmatmul.mubr.bf16.gmra.mrb[8].mxu0 %v2769_v25  ;;  %vm2034_vm13 = vcmp.gt.f32.partialorder %v1471_v1, 0.0  ;;  %v5366_v25 = vld [vmem:[#allocation8 + $0x274] ss:$8 sps:$4 sm:$0xff]  }
 0x24f   : > { %vm2041_vm14 = vcmp.gt.f32.partialorder %v1473_v26, 0.0  ;;  %v2297_v53 = vmul.f32 0.01, %v1473_v26  ;;  %1770 = vmatmul.mubr.bf16.gmra.mrb[184].mxu1 %v6038_v51  ;;  %4054 = vmatpush1.bf16.msra.mxu0 %v5355_v48  ;;  %v2545_v21 = vsel %vm2033_vm12, %v1469_v5, %v2289_v24 }
 0x250   : > { %vm2042_vm15 = vcmp.gt.f32.partialorder %v1475_v43, 0.0  ;;  %v2298_v23 = vmul.f32 0.01, %v1475_v43  ;;  %1779 = vmatprep.mubr.bf16.mxu1 %v6040_v52  ;;  %4055 = vmatprep.subr.bf16.mxu0 %v5360_v31  ;;  %v2546_v7 = vsel %vm2034_vm13, %v1471_v1, %v2290_v22  ;;  %v5364_v31 = vld [vmem:[#allocation8 + $0x270] ss:$8 sps:$4 sm:$0xff]  }
 0x251   : > { %v2553_v33 = vsel %vm2041_vm14, %v1473_v26, %v2297_v53  ;;  %v5369_v26 = vld [vmem:[#allocation8 + $0x284] ss:$8 sps:$4 sm:$0xff]  }
 0x252   : > { %v1478_v46 = vpop.f32.mrb[80].mxu1  ;;  %v2554_v18 = vsel %vm2042_vm15, %v1475_v43, %v2298_v23  ;;  %v2777_v4 = vpack.c.bf16 %v2553_v33, %v2545_v21 }
 0x253   : > { %v1479_v32 = vadd.f32 %v1478_v46, %v6206_v40  ;;  %v1480_v17 = vpop.f32.mrb[81].mxu1  ;;  %v2778_v6 = vpack.c.bf16 %v2554_v18, %v2546_v7  ;;  %4056 = vmatpush1.bf16.msra.mxu0 %v5358_v3  ;;  %v5367_v46 = vld [vmem:[#allocation8 + $0x280] ss:$8 sps:$4 sm:$0xff]  }
 0x254   : > { %v1481_v34 = vadd.f32 %v1480_v17, %v6209_v13  ;;  %v1482_v47 = vpop.f32.mrb[82].mxu1  ;;  %4057 = vmatprep.subr.bf16.mxu0 %v5363_v28 }
 0x255   : > { %v2305_v60 = vmul.f32 0.01, %v1479_v32  ;;  %v1483_v54 = vadd.f32 %v1482_v47, %v6206_v40  ;;  %v1484_v5 = vpop.f32.mrb[83].mxu1  ;;  %3914 = vmatprep.mubr.bf16.mxu0 %v2778_v6  ;;  %vm2049_vm0 = vcmp.gt.f32.partialorder %v1479_v32, 0.0  ;;  %v5370_v47 = vld [vmem:[#allocation8 + $0x290] ss:$8 sps:$4 sm:$0xff]  }
 0x256   : > { %v2306_v48 = vmul.f32 0.01, %v1481_v34  ;;  %v1485_v1 = vadd.f32 %v1484_v5, %v6209_v13  ;;  %3915 = vmatmul.mubr.bf16.gmra.mrb[12].mxu0 %v2777_v4  ;;  %vm2050_vm1 = vcmp.gt.f32.partialorder %v1481_v34, 0.0  ;;  %v5372_v4 = vld [vmem:[#allocation8 + $0x294] ss:$8 sps:$4 sm:$0xff]  }
 0x257   : > { %vm2057_vm2 = vcmp.gt.f32.partialorder %v1483_v54, 0.0  ;;  %v2313_v62 = vmul.f32 0.01, %v1483_v54  ;;  %1780 = vmatmul.mubr.bf16.gmra.mrb[188].mxu1 %v6046_v57  ;;  %4058 = vmatpush1.bf16.msra.mxu0 %v5361_v61  ;;  %v2561_v19 = vsel %vm2049_vm0, %v1479_v32, %v2305_v60  ;;  %v5375_v60 = vld [vmem:[#allocation8 + $0x2a4] ss:$8 sps:$4 sm:$0xff]  }
 0x258   : > { %vm2058_vm3 = vcmp.gt.f32.partialorder %v1485_v1, 0.0  ;;  %v2314_v24 = vmul.f32 0.01, %v1485_v1  ;;  %1822 = vmatprep.mubr.bf16.mxu1 %v5883_v20  ;;  %4059 = vmatprep.subr.bf16.mxu0 %v5366_v25  ;;  %v2562_v53 = vsel %vm2050_vm1, %v1481_v34, %v2306_v48 }
 0x259   : > { %v2569_v22 = vsel %vm2057_vm2, %v1483_v54, %v2313_v62 }
 0x25a   : > { %v1488_v43 = vpop.f32.mrb[84].mxu1  ;;  %v2570_v3 = vsel %vm2058_vm3, %v1485_v1, %v2314_v24  ;;  %v2785_v23 = vpack.c.bf16 %v2569_v22, %v2561_v19 }
 0x25b   : > { %v1489_v28 = vadd.f32 %v1488_v43, %v6206_v40  ;;  %v1490_v21 = vpop.f32.mrb[85].mxu1  ;;  %v2786_v33 = vpack.c.bf16 %v2570_v3, %v2562_v53  ;;  %4060 = vmatpush1.bf16.msra.mxu0 %v5364_v31  ;;  %v5378_v53 = vld [vmem:[#allocation8 + $0x2b4] ss:$8 sps:$4 sm:$0xff]  }
 0x25c   : > { %v1491_v7 = vadd.f32 %v1490_v21, %v6209_v13  ;;  %v1492_v18 = vpop.f32.mrb[86].mxu1  ;;  %4061 = vmatprep.subr.bf16.mxu0 %v5369_v26 }
 0x25d   : > { %v2321_v20 = vmul.f32 0.01, %v1489_v28  ;;  %v1493_v17 = vadd.f32 %v1492_v18, %v6206_v40  ;;  %v1494_v32 = vpop.f32.mrb[87].mxu1  ;;  %3924 = vmatprep.mubr.bf16.mxu0 %v2786_v33  ;;  %vm2065_vm4 = vcmp.gt.f32.partialorder %v1489_v28, 0.0  ;;  %v6696_v18 = vld [vmem:[#allocation17_spill] sm:$0xff] }
 0x25e   : > { %v2322_v6 = vmul.f32 0.01, %v1491_v7  ;;  %v1495_v61 = vadd.f32 %v1494_v32, %v6209_v13  ;;  %3925 = vmatmul.mubr.bf16.gmra.mrb[16].mxu0 %v2785_v23  ;;  %vm2066_vm5 = vcmp.gt.f32.partialorder %v1491_v7, 0.0 }
 0x25f   : > { %vm2073_vm6 = vcmp.gt.f32.partialorder %v1493_v17, 0.0  ;;  %v2329_v34 = vmul.f32 0.01, %v1493_v17  ;;  %1823 = vmatmul.mubr.bf16.vlgmr.msra.gmra.mrb[192].mxu1 %v5890_v12  ;;  %4062 = vmatpush1.bf16.msra.mxu0 %v5367_v46  ;;  %v2577_v54 = vsel %vm2065_vm4, %v1489_v28, %v2321_v20  ;;  %v5373_v12 = vld [vmem:[#allocation8 + $0x2a0] ss:$8 sps:$4 sm:$0xff]  }
 0x260   : > { %vm2074_vm7 = vcmp.gt.f32.partialorder %v1495_v61, 0.0  ;;  %v2330_v25 = vmul.f32 0.01, %v1495_v61  ;;  %1832 = vmatprep.mubr.bf16.mxu1 %v5892_v14  ;;  %4063 = vmatprep.subr.bf16.mxu0 %v5372_v4  ;;  %v2578_v1 = vsel %vm2066_vm5, %v1491_v7, %v2322_v6  ;;  %v5376_v46 = vld [vmem:[#allocation8 + $0x2b0] ss:$8 sps:$4 sm:$0xff]  }
 0x261   : > { %v2585_v5 = vsel %vm2073_vm6, %v1493_v17, %v2329_v34  ;;  %v5381_v4 = vld [vmem:[#allocation8 + $0x2c4] ss:$8 sps:$4 sm:$0xff]  }
 0x262   : > { %v1498_v48 = vpop.f32.mrb[88].mxu1  ;;  %v2586_v62 = vsel %vm2074_vm7, %v1495_v61, %v2330_v25  ;;  %v2793_v31 = vpack.c.bf16 %v2585_v5, %v2577_v54 }
 0x263   : > { %v1499_v24 = vadd.f32 %v1498_v48, %v6206_v40  ;;  %v1500_v26 = vpop.f32.mrb[89].mxu1  ;;  %v2794_v19 = vpack.c.bf16 %v2586_v62, %v2578_v1  ;;  %4064 = vmatpush1.bf16.msra.mxu0 %v5370_v47  ;;  %v5384_v48 = vld [vmem:[#allocation8 + $0x2d4] ss:$8 sps:$4 sm:$0xff]  }
 0x264   : > { %v1501_v22 = vadd.f32 %v1500_v26, %v6209_v13  ;;  %v1502_v43 = vpop.f32.mrb[90].mxu1  ;;  %4065 = vmatprep.subr.bf16.mxu0 %v5375_v60 }
 0x265   : > { %v2337_v14 = vmul.f32 0.01, %v1499_v24  ;;  %v1503_v3 = vadd.f32 %v1502_v43, %v6206_v40  ;;  %v1504_v23 = vpop.f32.mrb[91].mxu1  ;;  %3934 = vmatprep.mubr.bf16.mxu0 %v2794_v19  ;;  %vm2081_vm8 = vcmp.gt.f32.partialorder %v1499_v24, 0.0  ;;  %v5387_v43 = vld [vmem:[#allocation8 + $0x2e4] ss:$8 sps:$4 sm:$0xff]  }
 0x266   : > { %v2338_v28 = vmul.f32 0.01, %v1501_v22  ;;  %v1505_v21 = vadd.f32 %v1504_v23, %v6209_v13  ;;  %3935 = vmatmul.mubr.bf16.gmra.mrb[20].mxu0 %v2793_v31  ;;  %vm2082_vm9 = vcmp.gt.f32.partialorder %v1501_v22, 0.0 }
 0x267   : > { %vm2089_vm10 = vcmp.gt.f32.partialorder %v1503_v3, 0.0  ;;  %v2345_v33 = vmul.f32 0.01, %v1503_v3  ;;  %1833 = vmatmul.mubr.bf16.gmra.mrb[196].mxu1 %v5906_v30  ;;  %4066 = vmatpush1.bf16.msra.mxu0 %v5373_v12  ;;  %v2593_v20 = vsel %vm2081_vm8, %v1499_v24, %v2337_v14  ;;  %v5379_v30 = vld [vmem:[#allocation8 + $0x2c0] ss:$8 sps:$4 sm:$0xff]  }
 0x268   : > { %vm2090_vm11 = vcmp.gt.f32.partialorder %v1505_v21, 0.0  ;;  %v2346_v7 = vmul.f32 0.01, %v1505_v21  ;;  %1842 = vmatprep.mubr.bf16.mxu1 %v6696_v18  ;;  %4067 = vmatprep.subr.bf16.mxu0 %v5378_v53  ;;  %v2594_v6 = vsel %vm2082_vm9, %v1501_v22, %v2338_v28  ;;  %v5382_v12 = vld [vmem:[#allocation8 + $0x2d0] ss:$8 sps:$4 sm:$0xff]  }
 0x269   : > { %v2601_v17 = vsel %vm2089_vm10, %v1503_v3, %v2345_v33 }
 0x26a   : > { %v1508_v32 = vpop.f32.mrb[92].mxu1  ;;  %v2602_v61 = vsel %vm2090_vm11, %v1505_v21, %v2346_v7  ;;  %v2801_v34 = vpack.c.bf16 %v2601_v17, %v2593_v20  ;;  %v5390_v20 = vld [vmem:[#allocation8 + $0x2f4] ss:$8 sps:$4 sm:$0xff]  }
 0x26b   : > { %v1509_v47 = vadd.f32 %v1508_v32, %v6206_v40  ;;  %v1510_v25 = vpop.f32.mrb[93].mxu1  ;;  %v2802_v60 = vpack.c.bf16 %v2602_v61, %v2594_v6  ;;  %4068 = vmatpush1.bf16.msra.mxu0 %v5376_v46 }
 0x26c   : > { %v1511_v54 = vadd.f32 %v1510_v25, %v6209_v13  ;;  %v1512_v5 = vpop.f32.mrb[94].mxu1  ;;  %4069 = vmatprep.subr.bf16.mxu0 %v5381_v4 }
 0x26d   : > { %v2353_v1 = vmul.f32 0.01, %v1509_v47  ;;  %v1513_v62 = vadd.f32 %v1512_v5, %v6206_v40  ;;  %v1514_v31 = vpop.f32.mrb[95].mxu1  ;;  %3944 = vmatprep.mubr.bf16.mxu0 %v2802_v60  ;;  %vm2097_vm12 = vcmp.gt.f32.partialorder %v1509_v47, 0.0  ;;  %v5393_v60 = vld [vmem:[#allocation8 + $0x304] ss:$8 sps:$4 sm:$0xff]  }
 0x26e   : > { %v2354_v24 = vmul.f32 0.01, %v1511_v54  ;;  %v1515_v26 = vadd.f32 %v1514_v31, %v6209_v13  ;;  %3945 = vmatmul.mubr.bf16.gmra.mrb[24].mxu0 %v2801_v34  ;;  %vm2098_vm13 = vcmp.gt.f32.partialorder %v1511_v54, 0.0 }
 0x26f   : > { %vm2105_vm14 = vcmp.gt.f32.partialorder %v1513_v62, 0.0  ;;  %v2361_v19 = vmul.f32 0.01, %v1513_v62  ;;  %1843 = vmatmul.mubr.bf16.gmra.mrb[200].mxu1 %v5916_v44  ;;  %4070 = vmatpush1.bf16.msra.mxu0 %v5379_v30  ;;  %v2609_v53 = vsel %vm2097_vm12, %v1509_v47, %v2353_v1  ;;  %v5385_v44 = vld [vmem:[#allocation8 + $0x2e0] ss:$8 sps:$4 sm:$0xff]  }
 0x270   : > { %vm2106_vm15 = vcmp.gt.f32.partialorder %v1515_v26, 0.0  ;;  %v2362_v22 = vmul.f32 0.01, %v1515_v26  ;;  %1852 = vmatprep.mubr.bf16.mxu1 %v5918_v45  ;;  %4071 = vmatprep.subr.bf16.mxu0 %v5384_v48  ;;  %v2610_v23 = vsel %vm2098_vm13, %v1511_v54, %v2354_v24  ;;  %v5388_v47 = vld [vmem:[#allocation8 + $0x2f0] ss:$8 sps:$4 sm:$0xff]  }
 0x271   : > { %v2617_v14 = vsel %vm2105_vm14, %v1513_v62, %v2361_v19 }
 0x272   : > { %v1518_v3 = vpop.f32.mrb[96].mxu1  ;;  %v2618_v28 = vsel %vm2106_vm15, %v1515_v26, %v2362_v22  ;;  %v2809_v21 = vpack.c.bf16 %v2617_v14, %v2609_v53 }
 0x273   : > { %v1519_v33 = vadd.f32 %v1518_v3, %v6206_v40  ;;  %v1520_v46 = vpop.f32.mrb[97].mxu1  ;;  %v2810_v7 = vpack.c.bf16 %v2618_v28, %v2610_v23  ;;  %4072 = vmatpush1.bf16.msra.mxu0 %v5382_v12 }
 0x274   : > { %v1521_v18 = vadd.f32 %v1520_v46, %v6209_v13  ;;  %v1522_v4 = vpop.f32.mrb[98].mxu1  ;;  %4073 = vmatprep.subr.bf16.mxu0 %v5387_v43 }
 0x275   : > { %v2369_v45 = vmul.f32 0.01, %v1519_v33  ;;  %v1523_v17 = vadd.f32 %v1522_v4, %v6206_v40  ;;  %v1524_v32 = vpop.f32.mrb[99].mxu1  ;;  %3954 = vmatprep.mubr.bf16.mxu0 %v2810_v7  ;;  %vm2113_vm0 = vcmp.gt.f32.partialorder %v1519_v33, 0.0 }
 0x276   : > { %v2370_v6 = vmul.f32 0.01, %v1521_v18  ;;  %v1525_v61 = vadd.f32 %v1524_v32, %v6209_v13  ;;  %3955 = vmatmul.mubr.bf16.gmra.mrb[28].mxu0 %v2809_v21  ;;  %vm2114_vm1 = vcmp.gt.f32.partialorder %v1521_v18, 0.0 }
 0x277   : > { %vm2121_vm2 = vcmp.gt.f32.partialorder %v1523_v17, 0.0  ;;  %v2377_v34 = vmul.f32 0.01, %v1523_v17  ;;  %1853 = vmatmul.mubr.bf16.gmra.mrb[204].mxu1 %v5926_v58  ;;  %4074 = vmatpush1.bf16.msra.mxu0 %v5385_v44  ;;  %v2625_v30 = vsel %vm2113_vm0, %v1519_v33, %v2369_v45 }
 0x278   : > { %vm2122_vm3 = vcmp.gt.f32.partialorder %v1525_v61, 0.0  ;;  %v2378_v25 = vmul.f32 0.01, %v1525_v61  ;;  %1862 = vmatprep.mubr.bf16.mxu1 %v5928_v59  ;;  %4075 = vmatprep.subr.bf16.mxu0 %v5390_v20  ;;  %v2626_v48 = vsel %vm2114_vm1, %v1521_v18, %v2370_v6 }
 0x279   : > { %v2633_v54 = vsel %vm2121_vm2, %v1523_v17, %v2377_v34 }
 0x27a   : > { %v1528_v5 = vpop.f32.mrb[100].mxu1  ;;  %v2634_v1 = vsel %vm2122_vm3, %v1525_v61, %v2378_v25  ;;  %v2817_v62 = vpack.c.bf16 %v2633_v54, %v2625_v30 }
 0x27b   : > { %v1529_v31 = vadd.f32 %v1528_v5, %v6206_v40  ;;  %v1530_v24 = vpop.f32.mrb[101].mxu1  ;;  %v2818_v26 = vpack.c.bf16 %v2634_v1, %v2626_v48  ;;  %4076 = vmatpush1.bf16.msra.mxu0 %v5388_v47 }
 0x27c   : > { %v1531_v58 = vadd.f32 %v1530_v24, %v6209_v13  ;;  %v1532_v19 = vpop.f32.mrb[102].mxu1  ;;  %4238 = vmatprep.subr.bf16.mxu0 %v5393_v60 }
 0x27d   : > { %v2385_v12 = vmul.f32 0.01, %v1529_v31  ;;  %v1533_v59 = vadd.f32 %v1532_v19, %v6206_v40  ;;  %v1534_v22 = vpop.f32.mrb[103].mxu1  ;;  %3964 = vmatprep.mubr.bf16.mxu0 %v2818_v26  ;;  %vm2129_vm4 = vcmp.gt.f32.partialorder %v1529_v31, 0.0 }
 0x27e   : > { %v2386_v43 = vmul.f32 0.01, %v1531_v58  ;;  %v1535_v53 = vadd.f32 %v1534_v22, %v6209_v13  ;;  %3965 = vmatmul.mubr.bf16.gmra.mrb[32].mxu0 %v2817_v62  ;;  %vm2130_vm5 = vcmp.gt.f32.partialorder %v1531_v58, 0.0 }
 0x27f   : > { %vm2137_vm6 = vcmp.gt.f32.partialorder %v1533_v59, 0.0  ;;  %v2393_v14 = vmul.f32 0.01, %v1533_v59  ;;  %1863 = vmatmul.mubr.bf16.gmra.mrb[208].mxu1 %v5936_v9  ;;  %v2641_v23 = vsel %vm2129_vm4, %v1529_v31, %v2385_v12 }
 0x280   : > { %vm2138_vm7 = vcmp.gt.f32.partialorder %v1535_v53, 0.0  ;;  %v2394_v3 = vmul.f32 0.01, %v1535_v53  ;;  %1872 = vmatprep.mubr.bf16.mxu1 %v5938_v10  ;;  %v2642_v33 = vsel %vm2130_vm5, %v1531_v58, %v2386_v43 }
 0x281   : > { %v2649_v28 = vsel %vm2137_vm6, %v1533_v59, %v2393_v14 }
 0x282   : > { %v1538_v21 = vpop.f32.mrb[104].mxu1  ;;  %v2650_v46 = vsel %vm2138_vm7, %v1535_v53, %v2394_v3  ;;  %v2825_v7 = vpack.c.bf16 %v2649_v28, %v2641_v23 }
 0x283   : > { %v1539_v44 = vadd.f32 %v1538_v21, %v6206_v40  ;;  %v1540_v18 = vpop.f32.mrb[105].mxu1  ;;  %v2826_v4 = vpack.c.bf16 %v2650_v46, %v2642_v33 }
 0x284   : > { %v1541_v20 = vadd.f32 %v1540_v18, %v6209_v13  ;;  %v1542_v45 = vpop.f32.mrb[106].mxu1 }
 0x285   : > { %v2401_v17 = vmul.f32 0.01, %v1539_v44  ;;  %v1543_v9 = vadd.f32 %v1542_v45, %v6206_v40  ;;  %v1544_v32 = vpop.f32.mrb[107].mxu1  ;;  %3974 = vmatprep.mubr.bf16.mxu0 %v2826_v4  ;;  %vm2145_vm8 = vcmp.gt.f32.partialorder %v1539_v44, 0.0 }
 0x286   : > { %v2402_v10 = vmul.f32 0.01, %v1541_v20  ;;  %v1545_v6 = vadd.f32 %v1544_v32, %v6209_v13  ;;  %3975 = vmatmul.mubr.bf16.gmra.mrb[36].mxu0 %v2825_v7  ;;  %vm2146_vm9 = vcmp.gt.f32.partialorder %v1541_v20, 0.0 }
 0x287   : > { %vm2153_vm10 = vcmp.gt.f32.partialorder %v1543_v9, 0.0  ;;  %v2409_v61 = vmul.f32 0.01, %v1543_v9  ;;  %1873 = vmatmul.mubr.bf16.gmra.mrb[212].mxu1 %v5946_v35  ;;  %v2657_v47 = vsel %vm2145_vm8, %v1539_v44, %v2401_v17 }
 0x288   : > { %vm2154_vm11 = vcmp.gt.f32.partialorder %v1545_v6, 0.0  ;;  %v2410_v34 = vmul.f32 0.01, %v1545_v6  ;;  %1882 = vmatprep.mubr.bf16.mxu1 %v5948_v36  ;;  %v2658_v30 = vsel %vm2146_vm9, %v1541_v20, %v2402_v10 }
 0x289   : > { %v2665_v25 = vsel %vm2153_vm10, %v1543_v9, %v2409_v61 }
 0x28a   : > { %v1548_v60 = vpop.f32.mrb[108].mxu1  ;;  %v2666_v54 = vsel %vm2154_vm11, %v1545_v6, %v2410_v34  ;;  %v2833_v5 = vpack.c.bf16 %v2665_v25, %v2657_v47 }
 0x28b   : > { %v1549_v48 = vadd.f32 %v1548_v60, %v6206_v40  ;;  %v1550_v1 = vpop.f32.mrb[109].mxu1  ;;  %v2834_v62 = vpack.c.bf16 %v2666_v54, %v2658_v30 }
 0x28c   : > { %v1551_v31 = vadd.f32 %v1550_v1, %v6209_v13  ;;  %v1552_v24 = vpop.f32.mrb[110].mxu1 }
 0x28d   : > { %v2417_v26 = vmul.f32 0.01, %v1549_v48  ;;  %v1553_v35 = vadd.f32 %v1552_v24, %v6206_v40  ;;  %v1554_v58 = vpop.f32.mrb[111].mxu1  ;;  %3984 = vmatprep.mubr.bf16.mxu0 %v2834_v62  ;;  %vm2161_vm12 = vcmp.gt.f32.partialorder %v1549_v48, 0.0 }
 0x28e   : > { %v2418_v36 = vmul.f32 0.01, %v1551_v31  ;;  %v1555_v19 = vadd.f32 %v1554_v58, %v6209_v13  ;;  %3985 = vmatmul.mubr.bf16.gmra.mrb[40].mxu0 %v2833_v5  ;;  %vm2162_vm13 = vcmp.gt.f32.partialorder %v1551_v31, 0.0 }
 0x28f   : > { %vm2169_vm14 = vcmp.gt.f32.partialorder %v1553_v35, 0.0  ;;  %v2425_v12 = vmul.f32 0.01, %v1553_v35  ;;  %1883 = vmatmul.mubr.bf16.gmra.mrb[216].mxu1 %v5956_v55  ;;  %v2673_v22 = vsel %vm2161_vm12, %v1549_v48, %v2417_v26 }
 0x290   : > { %vm2170_vm15 = vcmp.gt.f32.partialorder %v1555_v19, 0.0  ;;  %v2426_v59 = vmul.f32 0.01, %v1555_v19  ;;  %1892 = vmatprep.mubr.bf16.mxu1 %v5958_v56  ;;  %v2674_v14 = vsel %vm2162_vm13, %v1551_v31, %v2418_v36 }
 0x291   : > { %v2681_v43 = vsel %vm2169_vm14, %v1553_v35, %v2425_v12 }
 0x292   : > { %v1558_v53 = vpop.f32.mrb[112].mxu1  ;;  %v2682_v3 = vsel %vm2170_vm15, %v1555_v19, %v2426_v59  ;;  %v2841_v23 = vpack.c.bf16 %v2681_v43, %v2673_v22 }
 0x293   : > { %v1559_v28 = vadd.f32 %v1558_v53, %v6206_v40  ;;  %v1560_v21 = vpop.f32.mrb[113].mxu1  ;;  %v2842_v33 = vpack.c.bf16 %v2682_v3, %v2674_v14 }
 0x294   : > { %v1561_v46 = vadd.f32 %v1560_v21, %v6209_v13  ;;  %v1562_v7 = vpop.f32.mrb[114].mxu1 }
 0x295   : > { %v2433_v44 = vmul.f32 0.01, %v1559_v28  ;;  %v1563_v55 = vadd.f32 %v1562_v7, %v6206_v40  ;;  %v1564_v18 = vpop.f32.mrb[115].mxu1  ;;  %3994 = vmatprep.mubr.bf16.mxu0 %v2842_v33  ;;  %vm2177_vm0 = vcmp.gt.f32.partialorder %v1559_v28, 0.0 }
 0x296   : > { %v2434_v56 = vmul.f32 0.01, %v1561_v46  ;;  %v1565_v4 = vadd.f32 %v1564_v18, %v6209_v13  ;;  %3995 = vmatmul.mubr.bf16.gmra.mrb[44].mxu0 %v2841_v23  ;;  %vm2178_vm1 = vcmp.gt.f32.partialorder %v1561_v46, 0.0 }
 0x297   : > { %vm2185_vm2 = vcmp.gt.f32.partialorder %v1563_v55, 0.0  ;;  %v2441_v20 = vmul.f32 0.01, %v1563_v55  ;;  %1893 = vmatmul.mubr.bf16.gmra.mrb[220].mxu1 %v5966_v15  ;;  %v2689_v17 = vsel %vm2177_vm0, %v1559_v28, %v2433_v44 }
 0x298   : > { %vm2186_vm3 = vcmp.gt.f32.partialorder %v1565_v4, 0.0  ;;  %v2442_v45 = vmul.f32 0.01, %v1565_v4  ;;  %1902 = vmatprep.mubr.bf16.mxu1 %v5968_v16  ;;  %v2690_v10 = vsel %vm2178_vm1, %v1561_v46, %v2434_v56 }
 0x299   : > { %v2697_v9 = vsel %vm2185_vm2, %v1563_v55, %v2441_v20  ;;  %v549_v20 = vsub.s32 4, %v6080_v2 }
 0x29a   : > { %v1568_v32 = vpop.f32.mrb[116].mxu1  ;;  %v2698_v6 = vsel %vm2186_vm3, %v1565_v4, %v2442_v45  ;;  %v2849_v61 = vpack.c.bf16 %v2697_v9, %v2689_v17 }
 0x29b   : > { %v1569_v34 = vadd.f32 %v1568_v32, %v6206_v40  ;;  %v1570_v47 = vpop.f32.mrb[117].mxu1  ;;  %v2850_v25 = vpack.c.bf16 %v2698_v6, %v2690_v10 }
 0x29c   : > { %v1571_v60 = vadd.f32 %v1570_v47, %v6209_v13  ;;  %v1572_v30 = vpop.f32.mrb[118].mxu1 }
 0x29d   : > { %v2449_v54 = vmul.f32 0.01, %v1569_v34  ;;  %v1573_v15 = vadd.f32 %v1572_v30, %v6206_v40  ;;  %v1574_v5 = vpop.f32.mrb[119].mxu1  ;;  %4004 = vmatprep.mubr.bf16.mxu0 %v2850_v25  ;;  %vm2193_vm4 = vcmp.gt.f32.partialorder %v1569_v34, 0.0 }
 0x29e   : > { %v2450_v16 = vmul.f32 0.01, %v1571_v60  ;;  %v1575_v48 = vadd.f32 %v1574_v5, %v6209_v13  ;;  %4005 = vmatmul.mubr.bf16.gmra.mrb[48].mxu0 %v2849_v61  ;;  %vm2194_vm5 = vcmp.gt.f32.partialorder %v1571_v60, 0.0 }
 0x29f   : > { %vm2201_vm6 = vcmp.gt.f32.partialorder %v1573_v15, 0.0  ;;  %v2457_v1 = vmul.f32 0.01, %v1573_v15  ;;  %1903 = vmatmul.mubr.bf16.gmra.mrb[224].mxu1 %v5978_v37  ;;  %v2705_v31 = vsel %vm2193_vm4, %v1569_v34, %v2449_v54  ;;  %v6310_v34 = vrot.slane %v6203_v39, %v549_v20 }
 0x2a0   : > { %vm2202_vm7 = vcmp.gt.f32.partialorder %v1575_v48, 0.0  ;;  %v2458_v62 = vmul.f32 0.01, %v1575_v48  ;;  %1912 = vmatprep.mubr.bf16.mxu1 %v5980_v38  ;;  %v2706_v35 = vsel %vm2194_vm5, %v1571_v60, %v2450_v16 }
 0x2a1   : > { %v2713_v24 = vsel %vm2201_vm6, %v1573_v15, %v2457_v1 }
 0x2a2   : > { %v1578_v26 = vpop.f32.mrb[120].mxu1  ;;  %v2714_v58 = vsel %vm2202_vm7, %v1575_v48, %v2458_v62  ;;  %v2857_v36 = vpack.c.bf16 %v2713_v24, %v2705_v31 }
 0x2a3   : > { %v1579_v19 = vadd.f32 %v1578_v26, %v6206_v40  ;;  %v1580_v12 = vpop.f32.mrb[121].mxu1  ;;  %v2858_v59 = vpack.c.bf16 %v2714_v58, %v2706_v35 }
 0x2a4   : > { %v1581_v22 = vadd.f32 %v1580_v12, %v6209_v13  ;;  %v1582_v43 = vpop.f32.mrb[122].mxu1 }
 0x2a5   : > { %v2465_v53 = vmul.f32 0.01, %v1579_v19  ;;  %v1583_v37 = vadd.f32 %v1582_v43, %v6206_v40  ;;  %v1584_v14 = vpop.f32.mrb[123].mxu1  ;;  %4014 = vmatprep.mubr.bf16.mxu0 %v2858_v59  ;;  %vm2209_vm8 = vcmp.gt.f32.partialorder %v1579_v19, 0.0 }
 0x2a6   : > { %v2466_v38 = vmul.f32 0.01, %v1581_v22  ;;  %v1585_v3 = vadd.f32 %v1584_v14, %v6209_v13  ;;  %4015 = vmatmul.mubr.bf16.gmra.mrb[52].mxu0 %v2857_v36  ;;  %vm2210_vm9 = vcmp.gt.f32.partialorder %v1581_v22, 0.0  ;;  %v5391_v14 = vld [vmem:[#allocation8 + $0x300] ss:$8 sps:$4 sm:$0xff]  }
 0x2a7   : > { %vm2217_vm10 = vcmp.gt.f32.partialorder %v1583_v37, 0.0  ;;  %v2473_v23 = vmul.f32 0.01, %v1583_v37  ;;  %1913 = vmatmul.mubr.bf16.gmra.mrb[228].mxu1 %v5988_v49  ;;  %v2721_v21 = vsel %vm2209_vm8, %v1579_v19, %v2465_v53  ;;  %v553_v49 = vsub.s32 5, %v6080_v2 }
 0x2a8   : > { %vm2218_vm11 = vcmp.gt.f32.partialorder %v1585_v3, 0.0  ;;  %v2474_v28 = vmul.f32 0.01, %v1585_v3  ;;  %1922 = vmatprep.mubr.bf16.mxu1 %v5990_v50  ;;  %v2722_v7 = vsel %vm2210_vm9, %v1581_v22, %v2466_v38 }
 0x2a9   : > { %v2729_v33 = vsel %vm2217_vm10, %v1583_v37, %v2473_v23  ;;  %v6313_v25 = vrot.slane %v6203_v39, %v553_v49  ;;  %v5396_v23 = vld [vmem:[#allocation8 + $0x314] ss:$8 sps:$4 sm:$0xff]  }
 0x2aa   : > { %v1588_v46 = vpop.f32.mrb[124].mxu1  ;;  %v2730_v44 = vsel %vm2218_vm11, %v1585_v3, %v2474_v28  ;;  %v2865_v55 = vpack.c.bf16 %v2729_v33, %v2721_v21 }
 0x2ab   : > { %v1589_v18 = vadd.f32 %v1588_v46, %v6206_v40  ;;  %v1590_v56 = vpop.f32.mrb[125].mxu1  ;;  %v2866_v4 = vpack.c.bf16 %v2730_v44, %v2722_v7  ;;  %v5394_v7 = vld [vmem:[#allocation8 + $0x310] ss:$8 sps:$4 sm:$0xff]  }
 0x2ac   : > { %v1591_v45 = vadd.f32 %v1590_v56, %v6209_v13  ;;  %v1592_v17 = vpop.f32.mrb[126].mxu1 }
 0x2ad   : > { %v2481_v9 = vmul.f32 0.01, %v1589_v18  ;;  %v1593_v50 = vadd.f32 %v1592_v17, %v6206_v40  ;;  %v1594_v32 = vpop.f32.mrb[127].mxu1  ;;  %4024 = vmatprep.mubr.bf16.mxu0 %v2866_v4  ;;  %vm2225_vm12 = vcmp.gt.f32.partialorder %v1589_v18, 0.0 }
 0x2ae   : > { %v2482_v10 = vmul.f32 0.01, %v1591_v45  ;;  %v1595_v6 = vadd.f32 %v1594_v32, %v6209_v13  ;;  %4025 = vmatmul.mubr.bf16.gmra.mrb[56].mxu0 %v2865_v55  ;;  %vm2226_vm13 = vcmp.gt.f32.partialorder %v1591_v45, 0.0  ;;  %v5399_v55 = vld [vmem:[#allocation8 + $0x324] ss:$8 sps:$4 sm:$0xff]  }
 0x2af   : > { %vm2233_vm14 = vcmp.gt.f32.partialorder %v1593_v50, 0.0  ;;  %v2489_v61 = vmul.f32 0.01, %v1593_v50  ;;  %1923 = vmatmul.mubr.bf16.gmra.mrb[232].mxu1 %v5998_v63  ;;  %v2737_v40 = vsel %vm2225_vm12, %v1589_v18, %v2481_v9 }
 0x2b0   : > { %vm2234_vm15 = vcmp.gt.f32.partialorder %v1595_v6, 0.0  ;;  %v2490_v47 = vmul.f32 0.01, %v1595_v6  ;;  %1932 = vmatprep.mubr.bf16.mxu1 %v6000_v0  ;;  %v2738_v13 = vsel %vm2226_vm13, %v1591_v45, %v2482_v10 }
 0x2b1   : > { %v2745_v60 = vsel %vm2233_vm14, %v1593_v50, %v2489_v61 }
 0x2b2   : > { %v1631_v30 = vpop.f32.mrb[128].mxu1  ;;  %v2746_v54 = vsel %vm2234_vm15, %v1595_v6, %v2490_v47  ;;  %v2873_v15 = vpack.c.bf16 %v2745_v60, %v2737_v40  ;;  %v5402_v6 = vld [vmem:[#allocation8 + $0x334] ss:$8 sps:$4 sm:$0xff]  }
 0x2b3   : > { %v1632_v5 = vadd.f32 %v1631_v30, %v6310_v34  ;;  %v1633_v16 = vpop.f32.mrb[129].mxu1  ;;  %v2874_v63 = vpack.c.bf16 %v2746_v54, %v2738_v13  ;;  %v5400_v13 = vld [vmem:[#allocation8 + $0x330] ss:$8 sps:$4 sm:$0xff]  }
 0x2b4   : > { %v1634_v48 = vadd.f32 %v1633_v16, %v6313_v25  ;;  %v1635_v1 = vpop.f32.mrb[130].mxu1 }
 0x2b5   : > { %v2243_v62 = vmul.f32 0.01, %v1632_v5  ;;  %v1636_v31 = vadd.f32 %v1635_v1, %v6310_v34  ;;  %v1637_v39 = vpop.f32.mrb[131].mxu1  ;;  %4034 = vmatprep.mubr.bf16.mxu0 %v2874_v63  ;;  %vm1987_vm0 = vcmp.gt.f32.partialorder %v1632_v5, 0.0 }
 0x2b6   : > { %v2244_v0 = vmul.f32 0.01, %v1634_v48  ;;  %v1638_v24 = vadd.f32 %v1637_v39, %v6313_v25  ;;  %4035 = vmatmul.mubr.bf16.gmra.mrb[60].mxu0 %v2873_v15  ;;  %vm1988_vm1 = vcmp.gt.f32.partialorder %v1634_v48, 0.0  ;;  %v5405_v15 = vld [vmem:[#allocation8 + $0x344] ss:$8 sps:$4 sm:$0xff]  }
 0x2b7   : > { %vm1995_vm2 = vcmp.gt.f32.partialorder %v1636_v31, 0.0  ;;  %v2251_v26 = vmul.f32 0.01, %v1636_v31  ;;  %1933 = vmatmul.mubr.bf16.gmra.mrb[236].mxu1 %v6008_v8  ;;  %v2499_v58 = vsel %vm1987_vm0, %v1632_v5, %v2243_v62 }
 0x2b8   : > { %vm1996_vm3 = vcmp.gt.f32.partialorder %v1638_v24, 0.0  ;;  %v2252_v35 = vmul.f32 0.01, %v1638_v24  ;;  %1942 = vmatprep.mubr.bf16.mxu1 %v6010_v11  ;;  %v2500_v59 = vsel %vm1988_vm1, %v1634_v48, %v2244_v0 }
 0x2b9   : > { %v2507_v36 = vsel %vm1995_vm2, %v1636_v31, %v2251_v26 }
 0x2ba   : > { %v2755_v19 = vpack.c.bf16 %v2507_v36, %v2499_v58  ;;  %v1641_v12 = vpop.f32.mrb[132].mxu1  ;;  %v2508_v22 = vsel %vm1996_vm3, %v1638_v24, %v2252_v35  ;;  %v5408_v35 = vld [vmem:[#allocation8 + $0x354] ss:$8 sps:$4 sm:$0xff]  }
 0x2bb   : > { %v1642_v43 = vadd.f32 %v1641_v12, %v6310_v34  ;;  %v1643_v53 = vpop.f32.mrb[133].mxu1  ;;  %v2756_v37 = vpack.c.bf16 %v2508_v22, %v2500_v59  ;;  %v5406_v22 = vld [vmem:[#allocation8 + $0x350] ss:$8 sps:$4 sm:$0xff]  }
 0x2bc   : > { %v1644_v38 = vadd.f32 %v1643_v53, %v6313_v25  ;;  %v1645_v3 = vpop.f32.mrb[134].mxu1  ;;  %v5411_v53 = vld [vmem:[#allocation8 + $0x364] ss:$8 sps:$4 sm:$0xff]  }
 0x2bd   : > { %v2259_v8 = vmul.f32 0.01, %v1642_v43  ;;  %v1646_v28 = vadd.f32 %v1645_v3, %v6310_v34  ;;  %v1647_v21 = vpop.f32.mrb[135].mxu1  ;;  %4077 = vmatprep.mubr.bf16.mxu0 %v2756_v37  ;;  %vm2003_vm4 = vcmp.gt.f32.partialorder %v1642_v43, 0.0 }
 0x2be   : > { %v2260_v11 = vmul.f32 0.01, %v1644_v38  ;;  %v1648_v33 = vadd.f32 %v1647_v21, %v6313_v25  ;;  %4078 = vmatmul.mubr.bf16.vlgmr.msra.gmra.mrb[0].mxu0 %v2755_v19  ;;  %vm2004_vm5 = vcmp.gt.f32.partialorder %v1644_v38, 0.0 }
 0x2bf   : > { %vm2011_vm6 = vcmp.gt.f32.partialorder %v1646_v28, 0.0  ;;  %v2267_v46 = vmul.f32 0.01, %v1646_v28  ;;  %1943 = vmatmul.mubr.bf16.gmra.mrb[240].mxu1 %v6018_v27  ;;  %4239 = vmatpush1.bf16.msra.mxu0 %v5391_v14  ;;  %v2515_v18 = vsel %vm2003_vm4, %v1642_v43, %v2259_v8  ;;  %v5397_v27 = vld [vmem:[#allocation8 + $0x320] ss:$8 sps:$4 sm:$0xff]  }
 0x2c0   : > { %vm2012_vm7 = vcmp.gt.f32.partialorder %v1648_v33, 0.0  ;;  %v2268_v44 = vmul.f32 0.01, %v1648_v33  ;;  %1952 = vmatprep.mubr.bf16.mxu1 %v6020_v29  ;;  %4240 = vmatprep.subr.bf16.mxu0 %v5396_v23  ;;  %v2516_v20 = vsel %vm2004_vm5, %v1644_v38, %v2260_v11 }
 0x2c1   : > { %v2523_v56 = vsel %vm2011_vm6, %v1646_v28, %v2267_v46 }
 0x2c2   : > { %v1651_v4 = vpop.f32.mrb[136].mxu1  ;;  %v2524_v45 = vsel %vm2012_vm7, %v1648_v33, %v2268_v44  ;;  %v2763_v17 = vpack.c.bf16 %v2523_v56, %v2515_v18 }
 0x2c3   : > { %v1652_v49 = vadd.f32 %v1651_v4, %v6310_v34  ;;  %v1653_v9 = vpop.f32.mrb[137].mxu1  ;;  %v2764_v50 = vpack.c.bf16 %v2524_v45, %v2516_v20  ;;  %4241 = vmatpush1.bf16.msra.mxu0 %v5394_v7  ;;  %v5414_v7 = vld [vmem:[#allocation8 + $0x374] ss:$8 sps:$4 sm:$0xff]   ;;  %v5412_v20 = vld [vmem:[#allocation8 + $0x370] ss:$8 sps:$4 sm:$0xff]  }
 0x2c4   : > { %v1654_v32 = vadd.f32 %v1653_v9, %v6313_v25  ;;  %v1655_v10 = vpop.f32.mrb[138].mxu1  ;;  %4242 = vmatprep.subr.bf16.mxu0 %v5399_v55 }
 0x2c5   : > { %v2275_v29 = vmul.f32 0.01, %v1652_v49  ;;  %v1656_v61 = vadd.f32 %v1655_v10, %v6310_v34  ;;  %v1657_v47 = vpop.f32.mrb[139].mxu1  ;;  %4087 = vmatprep.mubr.bf16.mxu0 %v2764_v50  ;;  %vm2019_vm8 = vcmp.gt.f32.partialorder %v1652_v49, 0.0 }
 0x2c6   : > { %v2276_v40 = vmul.f32 0.01, %v1654_v32  ;;  %v1658_v60 = vadd.f32 %v1657_v47, %v6313_v25  ;;  %4088 = vmatmul.mubr.bf16.gmra.mrb[4].mxu0 %v2763_v17  ;;  %vm2020_vm9 = vcmp.gt.f32.partialorder %v1654_v32, 0.0  ;;  %v5417_v17 = vld [vmem:[#allocation8 + $0x384] ss:$8 sps:$4 sm:$0xff]  }
 0x2c7   : > { %vm2027_vm10 = vcmp.gt.f32.partialorder %v1656_v61, 0.0  ;;  %v2283_v30 = vmul.f32 0.01, %v1656_v61  ;;  %1953 = vmatmul.mubr.bf16.gmra.mrb[244].mxu1 %v6028_v41  ;;  %4243 = vmatpush1.bf16.msra.mxu0 %v5397_v27  ;;  %v2531_v5 = vsel %vm2019_vm8, %v1652_v49, %v2275_v29  ;;  %v5403_v41 = vld [vmem:[#allocation8 + $0x340] ss:$8 sps:$4 sm:$0xff]  }
 0x2c8   : > { %vm2028_vm11 = vcmp.gt.f32.partialorder %v1658_v60, 0.0  ;;  %v2284_v54 = vmul.f32 0.01, %v1658_v60  ;;  %1962 = vmatprep.mubr.bf16.mxu1 %v6030_v42  ;;  %4244 = vmatprep.subr.bf16.mxu0 %v5402_v6  ;;  %v2532_v48 = vsel %vm2020_vm9, %v1654_v32, %v2276_v40  ;;  %v5415_v47 = vld [vmem:[#allocation8 + $0x380] ss:$8 sps:$4 sm:$0xff]  }
 0x2c9   : > { %v2539_v16 = vsel %vm2027_vm10, %v1656_v61, %v2283_v30 }
 0x2ca   : > { %v1661_v63 = vpop.f32.mrb[140].mxu1  ;;  %v2540_v1 = vsel %vm2028_vm11, %v1658_v60, %v2284_v54  ;;  %v2771_v62 = vpack.c.bf16 %v2539_v16, %v2531_v5  ;;  %v5420_v60 = vld [vmem:[#allocation8 + $0x394] ss:$8 sps:$4 sm:$0xff]  }
 0x2cb   : > { %v1662_v31 = vadd.f32 %v1661_v63, %v6310_v34  ;;  %v1663_v39 = vpop.f32.mrb[141].mxu1  ;;  %v2772_v0 = vpack.c.bf16 %v2540_v1, %v2532_v48  ;;  %4245 = vmatpush1.bf16.msra.mxu0 %v5400_v13  ;;  %v5418_v63 = vld [vmem:[#allocation8 + $0x390] ss:$8 sps:$4 sm:$0xff]   ;;  %v5423_v1 = vld [vmem:[#allocation8 + $0x3a4] ss:$8 sps:$4 sm:$0xff]  }
 0x2cc   : > { %v1664_v24 = vadd.f32 %v1663_v39, %v6313_v25  ;;  %v1665_v26 = vpop.f32.mrb[142].mxu1  ;;  %4246 = vmatprep.subr.bf16.mxu0 %v5405_v15 }
 0x2cd   : > { %v2291_v42 = vmul.f32 0.01, %v1662_v31  ;;  %v1666_v58 = vadd.f32 %v1665_v26, %v6310_v34  ;;  %v1667_v36 = vpop.f32.mrb[143].mxu1  ;;  %4097 = vmatprep.mubr.bf16.mxu0 %v2772_v0  ;;  %vm2035_vm12 = vcmp.gt.f32.partialorder %v1662_v31, 0.0 }
 0x2ce   : > { %v2292_v19 = vmul.f32 0.01, %v1664_v24  ;;  %v1668_v12 = vadd.f32 %v1667_v36, %v6313_v25  ;;  %4098 = vmatmul.mubr.bf16.gmra.mrb[8].mxu0 %v2771_v62  ;;  %vm2036_vm13 = vcmp.gt.f32.partialorder %v1664_v24, 0.0 }
 0x2cf   : > { %vm2043_vm14 = vcmp.gt.f32.partialorder %v1666_v58, 0.0  ;;  %v2299_v59 = vmul.f32 0.01, %v1666_v58  ;;  %1963 = vmatmul.mubr.bf16.gmra.mrb[248].mxu1 %v6038_v51  ;;  %4247 = vmatpush1.bf16.msra.mxu0 %v5403_v41  ;;  %v2547_v37 = vsel %vm2035_vm12, %v1662_v31, %v2291_v42  ;;  %v5409_v51 = vld [vmem:[#allocation8 + $0x360] ss:$8 sps:$4 sm:$0xff]  }
 0x2d0   : > { %vm2044_vm15 = vcmp.gt.f32.partialorder %v1668_v12, 0.0  ;;  %v2300_v43 = vmul.f32 0.01, %v1668_v12  ;;  %1972 = vmatprep.mubr.bf16.mxu1 %v6040_v52  ;;  %4248 = vmatprep.subr.bf16.mxu0 %v5408_v35  ;;  %v2548_v3 = vsel %vm2036_vm13, %v1664_v24, %v2292_v19 }
 0x2d1   : > { %v2555_v14 = vsel %vm2043_vm14, %v1666_v58, %v2299_v59  ;;  %v5421_v58 = vld [vmem:[#allocation8 + $0x3a0] ss:$8 sps:$4 sm:$0xff]  }
 0x2d2   : > { %v1671_v38 = vpop.f32.mrb[144].mxu1  ;;  %v2556_v23 = vsel %vm2044_vm15, %v1668_v12, %v2300_v43  ;;  %v2779_v8 = vpack.c.bf16 %v2555_v14, %v2547_v37  ;;  %v5426_v12 = vld [vmem:[#allocation8 + $0x3b4] ss:$8 sps:$4 sm:$0xff]  }
 0x2d3   : > { %v1672_v28 = vadd.f32 %v1671_v38, %v6310_v34  ;;  %v1673_v21 = vpop.f32.mrb[145].mxu1  ;;  %v2780_v11 = vpack.c.bf16 %v2556_v23, %v2548_v3  ;;  %4249 = vmatpush1.bf16.msra.mxu0 %v5406_v22  ;;  %v5424_v38 = vld [vmem:[#allocation8 + $0x3b0] ss:$8 sps:$4 sm:$0xff]   ;;  %v5429_v23 = vld [vmem:[#allocation8 + $0x3c4] ss:$8 sps:$4 sm:$0xff]  }
 0x2d4   : > { %v1674_v33 = vadd.f32 %v1673_v21, %v6313_v25  ;;  %v1675_v46 = vpop.f32.mrb[146].mxu1  ;;  %4250 = vmatprep.subr.bf16.mxu0 %v5411_v53 }
 0x2d5   : > { %v2307_v52 = vmul.f32 0.01, %v1672_v28  ;;  %v1676_v44 = vadd.f32 %v1675_v46, %v6310_v34  ;;  %v1677_v55 = vpop.f32.mrb[147].mxu1  ;;  %4107 = vmatprep.mubr.bf16.mxu0 %v2780_v11  ;;  %vm2051_vm0 = vcmp.gt.f32.partialorder %v1672_v28, 0.0 }
 0x2d6   : > { %v2308_v18 = vmul.f32 0.01, %v1674_v33  ;;  %v1678_v56 = vadd.f32 %v1677_v55, %v6313_v25  ;;  %4108 = vmatmul.mubr.bf16.gmra.mrb[12].mxu0 %v2779_v8  ;;  %vm2052_vm1 = vcmp.gt.f32.partialorder %v1674_v33, 0.0 }
 0x2d7   : > { %vm2059_vm2 = vcmp.gt.f32.partialorder %v1676_v44, 0.0  ;;  %v2315_v4 = vmul.f32 0.01, %v1676_v44  ;;  %1973 = vmatmul.mubr.bf16.gmra.mrb[252].mxu1 %v6046_v57  ;;  %4251 = vmatpush1.bf16.msra.mxu0 %v5409_v51  ;;  %v2563_v49 = vsel %vm2051_vm0, %v1672_v28, %v2307_v52 }
 0x2d8   : > { %vm2060_vm3 = vcmp.gt.f32.partialorder %v1678_v56, 0.0  ;;  %v2316_v45 = vmul.f32 0.01, %v1678_v56  ;;  %4252 = vmatprep.subr.bf16.mxu0 %v5414_v7  ;;  %v2564_v27 = vsel %vm2052_vm1, %v1674_v33, %v2308_v18 }
 0x2d9   : > { %v2571_v9 = vsel %vm2059_vm2, %v1676_v44, %v2315_v4  ;;  %v5427_v44 = vld [vmem:[#allocation8 + $0x3c0] ss:$8 sps:$4 sm:$0xff]  }
 0x2da   : > { %v1681_v50 = vpop.f32.mrb[148].mxu1  ;;  %v2572_v32 = vsel %vm2060_vm3, %v1678_v56, %v2316_v45  ;;  %v2787_v10 = vpack.c.bf16 %v2571_v9, %v2563_v49  ;;  %v5432_v56 = vld [vmem:[#allocation8 + $0x3d4] ss:$8 sps:$4 sm:$0xff]  }
 0x2db   : > { %v1682_v6 = vadd.f32 %v1681_v50, %v6310_v34  ;;  %v1683_v29 = vpop.f32.mrb[149].mxu1  ;;  %v2788_v61 = vpack.c.bf16 %v2572_v32, %v2564_v27  ;;  %4253 = vmatpush1.bf16.msra.mxu0 %v5412_v20  ;;  %v5430_v50 = vld [vmem:[#allocation8 + $0x3d0] ss:$8 sps:$4 sm:$0xff]   ;;  %v5435_v32 = vld [vmem:[#allocation8 + $0x3e4] ss:$8 sps:$4 sm:$0xff]  }
 0x2dc   : > { %v1684_v57 = vadd.f32 %v1683_v29, %v6313_v25  ;;  %v1685_v40 = vpop.f32.mrb[150].mxu1  ;;  %4254 = vmatprep.subr.bf16.mxu0 %v5417_v17 }
 0x2dd   : > { %v2323_v30 = vmul.f32 0.01, %v1682_v6  ;;  %v1686_v13 = vadd.f32 %v1685_v40, %v6310_v34  ;;  %v1687_v54 = vpop.f32.mrb[151].mxu1  ;;  %4117 = vmatprep.mubr.bf16.mxu0 %v2788_v61  ;;  %vm2067_vm4 = vcmp.gt.f32.partialorder %v1682_v6, 0.0 }
 0x2de   : > { %v2324_v15 = vmul.f32 0.01, %v1684_v57  ;;  %v1688_v5 = vadd.f32 %v1687_v54, %v6313_v25  ;;  %4118 = vmatmul.mubr.bf16.gmra.mrb[16].mxu0 %v2787_v10  ;;  %vm2068_vm5 = vcmp.gt.f32.partialorder %v1684_v57, 0.0 }
 0x2df   : > { %vm2075_vm6 = vcmp.gt.f32.partialorder %v1686_v13, 0.0  ;;  %v2331_v16 = vmul.f32 0.01, %v1686_v13  ;;  %4255 = vmatpush1.bf16.msra.mxu0 %v5415_v47  ;;  %v2579_v62 = vsel %vm2067_vm4, %v1682_v6, %v2323_v30 }
 0x2e0   : > { %vm2076_vm7 = vcmp.gt.f32.partialorder %v1688_v5, 0.0  ;;  %v2332_v48 = vmul.f32 0.01, %v1688_v5  ;;  %4256 = vmatprep.subr.bf16.mxu0 %v5420_v60  ;;  %v2580_v0 = vsel %vm2068_vm5, %v1684_v57, %v2324_v15 }
 0x2e1   : > { %v2587_v31 = vsel %vm2075_vm6, %v1686_v13, %v2331_v16  ;;  %v5433_v13 = vld [vmem:[#allocation8 + $0x3e0] ss:$8 sps:$4 sm:$0xff]  }
 0x2e2   : > { %v1691_v39 = vpop.f32.mrb[152].mxu1  ;;  %v2588_v41 = vsel %vm2076_vm7, %v1688_v5, %v2332_v48  ;;  %v2795_v24 = vpack.c.bf16 %v2587_v31, %v2579_v62  ;;  %v5438_v5 = vld [vmem:[#allocation8 + $0x3f4] ss:$8 sps:$4 sm:$0xff]  }
 0x2e3   : > { %v1692_v26 = vadd.f32 %v1691_v39, %v6310_v34  ;;  %v1693_v35 = vpop.f32.mrb[153].mxu1  ;;  %v2796_v42 = vpack.c.bf16 %v2588_v41, %v2580_v0  ;;  %4257 = vmatpush1.bf16.msra.mxu0 %v5418_v63  ;;  %v5436_v39 = vld [vmem:[#allocation8 + $0x3f0] ss:$8 sps:$4 sm:$0xff]  }
 0x2e4   : > { %v1694_v36 = vadd.f32 %v1693_v35, %v6313_v25  ;;  %v1695_v19 = vpop.f32.mrb[154].mxu1  ;;  %4258 = vmatprep.subr.bf16.mxu0 %v5423_v1 }
 0x2e5   : > { %v2339_v59 = vmul.f32 0.01, %v1692_v26  ;;  %v1696_v22 = vadd.f32 %v1695_v19, %v6310_v34  ;;  %v1697_v43 = vpop.f32.mrb[155].mxu1  ;;  %4127 = vmatprep.mubr.bf16.mxu0 %v2796_v42  ;;  %vm2083_vm8 = vcmp.gt.f32.partialorder %v1692_v26, 0.0 }
 0x2e6   : > { %v2340_v53 = vmul.f32 0.01, %v1694_v36  ;;  %v1698_v37 = vadd.f32 %v1697_v43, %v6313_v25  ;;  %4128 = vmatmul.mubr.bf16.gmra.mrb[20].mxu0 %v2795_v24  ;;  %vm2084_vm9 = vcmp.gt.f32.partialorder %v1694_v36, 0.0 }
 0x2e7   : > { %vm2091_vm10 = vcmp.gt.f32.partialorder %v1696_v22, 0.0  ;;  %v2347_v14 = vmul.f32 0.01, %v1696_v22  ;;  %4259 = vmatpush1.bf16.msra.mxu0 %v5421_v58  ;;  %v2595_v8 = vsel %vm2083_vm8, %v1692_v26, %v2339_v59 }
 0x2e8   : > { %vm2092_vm11 = vcmp.gt.f32.partialorder %v1698_v37, 0.0  ;;  %v2348_v3 = vmul.f32 0.01, %v1698_v37  ;;  %4260 = vmatprep.subr.bf16.mxu0 %v5426_v12  ;;  %v2596_v11 = vsel %vm2084_vm9, %v1694_v36, %v2340_v53 }
 0x2e9   : > { %v2603_v28 = vsel %vm2091_vm10, %v1696_v22, %v2347_v14 }
 0x2ea   : > { %v1701_v21 = vpop.f32.mrb[156].mxu1  ;;  %v2604_v51 = vsel %vm2092_vm11, %v1698_v37, %v2348_v3  ;;  %v2803_v33 = vpack.c.bf16 %v2603_v28, %v2595_v8 }
 0x2eb   : > { %v1702_v46 = vadd.f32 %v1701_v21, %v6310_v34  ;;  %v1703_v7 = vpop.f32.mrb[157].mxu1  ;;  %v2804_v52 = vpack.c.bf16 %v2604_v51, %v2596_v11  ;;  %4261 = vmatpush1.bf16.msra.mxu0 %v5424_v38 }
 0x2ec   : > { %v1704_v55 = vadd.f32 %v1703_v7, %v6313_v25  ;;  %v1705_v18 = vpop.f32.mrb[158].mxu1  ;;  %4262 = vmatprep.subr.bf16.mxu0 %v5429_v23 }
 0x2ed   : > { %v2355_v4 = vmul.f32 0.01, %v1702_v46  ;;  %v1706_v20 = vadd.f32 %v1705_v18, %v6310_v34  ;;  %v1707_v45 = vpop.f32.mrb[159].mxu1  ;;  %4137 = vmatprep.mubr.bf16.mxu0 %v2804_v52  ;;  %vm2099_vm12 = vcmp.gt.f32.partialorder %v1702_v46, 0.0 }
 0x2ee   : > { %v2356_v17 = vmul.f32 0.01, %v1704_v55  ;;  %v1708_v49 = vadd.f32 %v1707_v45, %v6313_v25  ;;  %4138 = vmatmul.mubr.bf16.gmra.mrb[24].mxu0 %v2803_v33  ;;  %vm2100_vm13 = vcmp.gt.f32.partialorder %v1704_v55, 0.0 }
 0x2ef   : > { %vm2107_vm14 = vcmp.gt.f32.partialorder %v1706_v20, 0.0  ;;  %v2363_v9 = vmul.f32 0.01, %v1706_v20  ;;  %4263 = vmatpush1.bf16.msra.mxu0 %v5427_v44  ;;  %v2611_v10 = vsel %vm2099_vm12, %v1702_v46, %v2355_v4 }
 0x2f0   : > { %vm2108_vm15 = vcmp.gt.f32.partialorder %v1708_v49, 0.0  ;;  %v2364_v27 = vmul.f32 0.01, %v1708_v49  ;;  %4264 = vmatprep.subr.bf16.mxu0 %v5432_v56  ;;  %v2612_v61 = vsel %vm2100_vm13, %v1704_v55, %v2356_v17 }
 0x2f1   : > { %v2619_v6 = vsel %vm2107_vm14, %v1706_v20, %v2363_v9 }
 0x2f2   : > { %v1711_v29 = vpop.f32.mrb[160].mxu1  ;;  %v2620_v47 = vsel %vm2108_vm15, %v1708_v49, %v2364_v27  ;;  %v2811_v57 = vpack.c.bf16 %v2619_v6, %v2611_v10 }
 0x2f3   : > { %v1712_v40 = vadd.f32 %v1711_v29, %v6310_v34  ;;  %v1713_v60 = vpop.f32.mrb[161].mxu1  ;;  %v2812_v30 = vpack.c.bf16 %v2620_v47, %v2612_v61  ;;  %4265 = vmatpush1.bf16.msra.mxu0 %v5430_v50 }
 0x2f4   : > { %v1714_v54 = vadd.f32 %v1713_v60, %v6313_v25  ;;  %v1715_v15 = vpop.f32.mrb[162].mxu1  ;;  %4266 = vmatprep.subr.bf16.mxu0 %v5435_v32 }
 0x2f5   : > { %v2371_v16 = vmul.f32 0.01, %v1712_v40  ;;  %v1716_v63 = vadd.f32 %v1715_v15, %v6310_v34  ;;  %v1717_v48 = vpop.f32.mrb[163].mxu1  ;;  %4147 = vmatprep.mubr.bf16.mxu0 %v2812_v30  ;;  %vm2115_vm0 = vcmp.gt.f32.partialorder %v1712_v40, 0.0 }
 0x2f6   : > { %v2372_v1 = vmul.f32 0.01, %v1714_v54  ;;  %v1718_v62 = vadd.f32 %v1717_v48, %v6313_v25  ;;  %4148 = vmatmul.mubr.bf16.gmra.mrb[28].mxu0 %v2811_v57  ;;  %vm2116_vm1 = vcmp.gt.f32.partialorder %v1714_v54, 0.0 }
 0x2f7   : > { %vm2123_vm2 = vcmp.gt.f32.partialorder %v1716_v63, 0.0  ;;  %v2379_v31 = vmul.f32 0.01, %v1716_v63  ;;  %4267 = vmatpush1.bf16.msra.mxu0 %v5433_v13  ;;  %v2627_v41 = vsel %vm2115_vm0, %v1712_v40, %v2371_v16 }
 0x2f8   : > { %vm2124_vm3 = vcmp.gt.f32.partialorder %v1718_v62, 0.0  ;;  %v2380_v0 = vmul.f32 0.01, %v1718_v62  ;;  %4268 = vmatprep.subr.bf16.mxu0 %v5438_v5  ;;  %v2628_v35 = vsel %vm2116_vm1, %v1714_v54, %v2372_v1 }
 0x2f9   : > { %v2635_v24 = vsel %vm2123_vm2, %v1716_v63, %v2379_v31 }
 0x2fa   : > { %v1721_v26 = vpop.f32.mrb[164].mxu1  ;;  %v2636_v42 = vsel %vm2124_vm3, %v1718_v62, %v2380_v0  ;;  %v2819_v58 = vpack.c.bf16 %v2635_v24, %v2627_v41 }
 0x2fb   : > { %v1722_v36 = vadd.f32 %v1721_v26, %v6310_v34  ;;  %v1723_v19 = vpop.f32.mrb[165].mxu1  ;;  %v2820_v12 = vpack.c.bf16 %v2636_v42, %v2628_v35  ;;  %4269 = vmatpush1.bf16.msra.mxu0 %v5436_v39 }
 0x2fc   : > { %v1724_v59 = vadd.f32 %v1723_v19, %v6313_v25  ;;  %v1725_v22 = vpop.f32.mrb[166].mxu1 }
 0x2fd   : > { %v2387_v43 = vmul.f32 0.01, %v1722_v36  ;;  %v1726_v53 = vadd.f32 %v1725_v22, %v6310_v34  ;;  %v1727_v37 = vpop.f32.mrb[167].mxu1  ;;  %4157 = vmatprep.mubr.bf16.mxu0 %v2820_v12  ;;  %vm2131_vm4 = vcmp.gt.f32.partialorder %v1722_v36, 0.0 }
 0x2fe   : > { %v2388_v14 = vmul.f32 0.01, %v1724_v59  ;;  %v1728_v38 = vadd.f32 %v1727_v37, %v6313_v25  ;;  %4158 = vmatmul.mubr.bf16.gmra.mrb[32].mxu0 %v2819_v58  ;;  %vm2132_vm5 = vcmp.gt.f32.partialorder %v1724_v59, 0.0 }
 0x2ff   : > { %vm2139_vm6 = vcmp.gt.f32.partialorder %v1726_v53, 0.0  ;;  %v2395_v3 = vmul.f32 0.01, %v1726_v53  ;;  %v2643_v8 = vsel %vm2131_vm4, %v1722_v36, %v2387_v43 }
 0x300   : > { %vm2140_vm7 = vcmp.gt.f32.partialorder %v1728_v38, 0.0  ;;  %v2396_v23 = vmul.f32 0.01, %v1728_v38  ;;  %v2644_v11 = vsel %vm2132_vm5, %v1724_v59, %v2388_v14 }
 0x301   : > { %v2651_v28 = vsel %vm2139_vm6, %v1726_v53, %v2395_v3 }
 0x302   : > { %v1731_v21 = vpop.f32.mrb[168].mxu1  ;;  %v2652_v51 = vsel %vm2140_vm7, %v1728_v38, %v2396_v23  ;;  %v2827_v33 = vpack.c.bf16 %v2651_v28, %v2643_v8 }
 0x303   : > { %v1732_v46 = vadd.f32 %v1731_v21, %v6310_v34  ;;  %v1733_v7 = vpop.f32.mrb[169].mxu1  ;;  %v2828_v52 = vpack.c.bf16 %v2652_v51, %v2644_v11 }
 0x304   : > { %v1734_v44 = vadd.f32 %v1733_v7, %v6313_v25  ;;  %v1735_v55 = vpop.f32.mrb[170].mxu1 }
 0x305   : > { %v2403_v18 = vmul.f32 0.01, %v1732_v46  ;;  %v1736_v56 = vadd.f32 %v1735_v55, %v6310_v34  ;;  %v1737_v4 = vpop.f32.mrb[171].mxu1  ;;  %4167 = vmatprep.mubr.bf16.mxu0 %v2828_v52  ;;  %vm2147_vm8 = vcmp.gt.f32.partialorder %v1732_v46, 0.0 }
 0x306   : > { %v2404_v20 = vmul.f32 0.01, %v1734_v44  ;;  %v1738_v45 = vadd.f32 %v1737_v4, %v6313_v25  ;;  %4168 = vmatmul.mubr.bf16.gmra.mrb[36].mxu0 %v2827_v33  ;;  %vm2148_vm9 = vcmp.gt.f32.partialorder %v1734_v44, 0.0 }
 0x307   : > { %vm2155_vm10 = vcmp.gt.f32.partialorder %v1736_v56, 0.0  ;;  %v2411_v17 = vmul.f32 0.01, %v1736_v56  ;;  %v2659_v9 = vsel %vm2147_vm8, %v1732_v46, %v2403_v18 }
 0x308   : > { %vm2156_vm11 = vcmp.gt.f32.partialorder %v1738_v45, 0.0  ;;  %v2412_v49 = vmul.f32 0.01, %v1738_v45  ;;  %v2660_v32 = vsel %vm2148_vm9, %v1734_v44, %v2404_v20 }
 0x309   : > { %v2667_v50 = vsel %vm2155_vm10, %v1736_v56, %v2411_v17 }
 0x30a   : > { %v1741_v27 = vpop.f32.mrb[172].mxu1  ;;  %v2668_v10 = vsel %vm2156_vm11, %v1738_v45, %v2412_v49  ;;  %v2835_v6 = vpack.c.bf16 %v2667_v50, %v2659_v9 }
 0x30b   : > { %v1742_v29 = vadd.f32 %v1741_v27, %v6310_v34  ;;  %v1743_v61 = vpop.f32.mrb[173].mxu1  ;;  %v2836_v47 = vpack.c.bf16 %v2668_v10, %v2660_v32 }
 0x30c   : > { %v1744_v57 = vadd.f32 %v1743_v61, %v6313_v25  ;;  %v1745_v40 = vpop.f32.mrb[174].mxu1 }
 0x30d   : > { %v2419_v60 = vmul.f32 0.01, %v1742_v29  ;;  %v1746_v30 = vadd.f32 %v1745_v40, %v6310_v34  ;;  %v1747_v13 = vpop.f32.mrb[175].mxu1  ;;  %4177 = vmatprep.mubr.bf16.mxu0 %v2836_v47  ;;  %vm2163_vm12 = vcmp.gt.f32.partialorder %v1742_v29, 0.0 }
 0x30e   : > { %v2420_v54 = vmul.f32 0.01, %v1744_v57  ;;  %v1748_v15 = vadd.f32 %v1747_v13, %v6313_v25  ;;  %4178 = vmatmul.mubr.bf16.gmra.mrb[40].mxu0 %v2835_v6  ;;  %vm2164_vm13 = vcmp.gt.f32.partialorder %v1744_v57, 0.0 }
 0x30f   : > { %vm2171_vm14 = vcmp.gt.f32.partialorder %v1746_v30, 0.0  ;;  %v2427_v5 = vmul.f32 0.01, %v1746_v30  ;;  %v2675_v63 = vsel %vm2163_vm12, %v1742_v29, %v2419_v60 }
 0x310   : > { %vm2172_vm15 = vcmp.gt.f32.partialorder %v1748_v15, 0.0  ;;  %v2428_v16 = vmul.f32 0.01, %v1748_v15  ;;  %v2676_v62 = vsel %vm2164_vm13, %v1744_v57, %v2420_v54 }
 0x311   : > { %v2683_v48 = vsel %vm2171_vm14, %v1746_v30, %v2427_v5 }
 0x312   : > { %v1751_v1 = vpop.f32.mrb[176].mxu1  ;;  %v2684_v31 = vsel %vm2172_vm15, %v1748_v15, %v2428_v16  ;;  %v2843_v39 = vpack.c.bf16 %v2683_v48, %v2675_v63 }
 0x313   : > { %v1752_v0 = vadd.f32 %v1751_v1, %v6310_v34  ;;  %v1753_v41 = vpop.f32.mrb[177].mxu1  ;;  %v2844_v24 = vpack.c.bf16 %v2684_v31, %v2676_v62  ;;  %v557_v1 = vsub.s32 6, %v6080_v2 }
 0x314   : > { %v1754_v26 = vadd.f32 %v1753_v41, %v6313_v25  ;;  %v1755_v35 = vpop.f32.mrb[178].mxu1 }
 0x315   : > { %v2435_v42 = vmul.f32 0.01, %v1752_v0  ;;  %v1756_v58 = vadd.f32 %v1755_v35, %v6310_v34  ;;  %v1757_v36 = vpop.f32.mrb[179].mxu1  ;;  %4187 = vmatprep.mubr.bf16.mxu0 %v2844_v24  ;;  %vm2179_vm0 = vcmp.gt.f32.partialorder %v1752_v0, 0.0 }
 0x316   : > { %v2436_v19 = vmul.f32 0.01, %v1754_v26  ;;  %v1758_v12 = vadd.f32 %v1757_v36, %v6313_v25  ;;  %4188 = vmatmul.mubr.bf16.gmra.mrb[44].mxu0 %v2843_v39  ;;  %vm2180_vm1 = vcmp.gt.f32.partialorder %v1754_v26, 0.0  ;;  %v561_v39 = vsub.s32 7, %v6080_v2 }
 0x317   : > { %vm2187_vm2 = vcmp.gt.f32.partialorder %v1756_v58, 0.0  ;;  %v2443_v59 = vmul.f32 0.01, %v1756_v58  ;;  %v2691_v43 = vsel %vm2179_vm0, %v1752_v0, %v2435_v42 }
 0x318   : > { %vm2188_vm3 = vcmp.gt.f32.partialorder %v1758_v12, 0.0  ;;  %v2444_v22 = vmul.f32 0.01, %v1758_v12  ;;  %v2692_v14 = vsel %vm2180_vm1, %v1754_v26, %v2436_v19 }
 0x319   : > { %v2699_v53 = vsel %vm2187_vm2, %v1756_v58, %v2443_v59  ;;  %v5440_v58 = vld [vmem:[#allocation7] sm:$0xff] }
 0x31a   : > { %v1761_v37 = vpop.f32.mrb[180].mxu1  ;;  %v2700_v38 = vsel %vm2188_vm3, %v1758_v12, %v2444_v22  ;;  %v2851_v3 = vpack.c.bf16 %v2699_v53, %v2691_v43  ;;  %v6391_v36 = vrot.slane %v5440_v58, %v557_v1  ;;  %v6393_v12 = vrot.slane %v5440_v58, %v561_v39 }
 0x31b   : > { %v1762_v23 = vadd.f32 %v1761_v37, %v6310_v34  ;;  %v1763_v8 = vpop.f32.mrb[181].mxu1  ;;  %v2852_v28 = vpack.c.bf16 %v2700_v38, %v2692_v14 }
 0x31c   : > { %v1764_v21 = vadd.f32 %v1763_v8, %v6313_v25  ;;  %v1765_v11 = vpop.f32.mrb[182].mxu1 }
 0x31d   : > { %v2451_v51 = vmul.f32 0.01, %v1762_v23  ;;  %v1766_v33 = vadd.f32 %v1765_v11, %v6310_v34  ;;  %v1767_v46 = vpop.f32.mrb[183].mxu1  ;;  %4197 = vmatprep.mubr.bf16.mxu0 %v2852_v28  ;;  %vm2195_vm4 = vcmp.gt.f32.partialorder %v1762_v23, 0.0 }
 0x31e   : > { %v2452_v7 = vmul.f32 0.01, %v1764_v21  ;;  %v1768_v52 = vadd.f32 %v1767_v46, %v6313_v25  ;;  %4198 = vmatmul.mubr.bf16.gmra.mrb[48].mxu0 %v2851_v3  ;;  %vm2196_vm5 = vcmp.gt.f32.partialorder %v1764_v21, 0.0 }
 0x31f   : > { %vm2203_vm6 = vcmp.gt.f32.partialorder %v1766_v33, 0.0  ;;  %v2459_v44 = vmul.f32 0.01, %v1766_v33  ;;  %v2707_v18 = vsel %vm2195_vm4, %v1762_v23, %v2451_v51 }
 0x320   : > { %vm2204_vm7 = vcmp.gt.f32.partialorder %v1768_v52, 0.0  ;;  %v2460_v55 = vmul.f32 0.01, %v1768_v52  ;;  %v2708_v20 = vsel %vm2196_vm5, %v1764_v21, %v2452_v7 }
 0x321   : > { %v2715_v56 = vsel %vm2203_vm6, %v1766_v33, %v2459_v44 }
 0x322   : > { %v1771_v4 = vpop.f32.mrb[184].mxu1  ;;  %v2716_v45 = vsel %vm2204_vm7, %v1768_v52, %v2460_v55  ;;  %v2859_v17 = vpack.c.bf16 %v2715_v56, %v2707_v18 }
 0x323   : > { %v1772_v49 = vadd.f32 %v1771_v4, %v6310_v34  ;;  %v1773_v9 = vpop.f32.mrb[185].mxu1  ;;  %v2860_v50 = vpack.c.bf16 %v2716_v45, %v2708_v20 }
 0x324   : > { %v1774_v27 = vadd.f32 %v1773_v9, %v6313_v25  ;;  %v1775_v32 = vpop.f32.mrb[186].mxu1 }
 0x325   : > { %v2467_v10 = vmul.f32 0.01, %v1772_v49  ;;  %v1776_v6 = vadd.f32 %v1775_v32, %v6310_v34  ;;  %v1777_v29 = vpop.f32.mrb[187].mxu1  ;;  %4207 = vmatprep.mubr.bf16.mxu0 %v2860_v50  ;;  %vm2211_vm8 = vcmp.gt.f32.partialorder %v1772_v49, 0.0 }
 0x326   : > { %v2468_v61 = vmul.f32 0.01, %v1774_v27  ;;  %v1778_v47 = vadd.f32 %v1777_v29, %v6313_v25  ;;  %4208 = vmatmul.mubr.bf16.gmra.mrb[52].mxu0 %v2859_v17  ;;  %vm2212_vm9 = vcmp.gt.f32.partialorder %v1774_v27, 0.0 }
 0x327   : > { %vm2219_vm10 = vcmp.gt.f32.partialorder %v1776_v6, 0.0  ;;  %v2475_v57 = vmul.f32 0.01, %v1776_v6  ;;  %v2723_v60 = vsel %vm2211_vm8, %v1772_v49, %v2467_v10 }
 0x328   : > { %vm2220_vm11 = vcmp.gt.f32.partialorder %v1778_v47, 0.0  ;;  %v2476_v40 = vmul.f32 0.01, %v1778_v47  ;;  %v2724_v54 = vsel %vm2212_vm9, %v1774_v27, %v2468_v61 }
 0x329   : > { %v2731_v30 = vsel %vm2219_vm10, %v1776_v6, %v2475_v57 }
 0x32a   : > { %v1781_v13 = vpop.f32.mrb[188].mxu1  ;;  %v2732_v15 = vsel %vm2220_vm11, %v1778_v47, %v2476_v40  ;;  %v2867_v5 = vpack.c.bf16 %v2731_v30, %v2723_v60 }
 0x32b   : > { %v1782_v16 = vadd.f32 %v1781_v13, %v6310_v34  ;;  %v1783_v63 = vpop.f32.mrb[189].mxu1  ;;  %v2868_v48 = vpack.c.bf16 %v2732_v15, %v2724_v54 }
 0x32c   : > { %v1784_v62 = vadd.f32 %v1783_v63, %v6313_v25  ;;  %v1785_v31 = vpop.f32.mrb[190].mxu1 }
 0x32d   : > { %v2483_v0 = vmul.f32 0.01, %v1782_v16  ;;  %v1786_v41 = vadd.f32 %v1785_v31, %v6310_v34  ;;  %v1787_v24 = vpop.f32.mrb[191].mxu1  ;;  %4217 = vmatprep.mubr.bf16.mxu0 %v2868_v48  ;;  %vm2227_vm12 = vcmp.gt.f32.partialorder %v1782_v16, 0.0 }
 0x32e   : > { %v2484_v26 = vmul.f32 0.01, %v1784_v62  ;;  %v1788_v35 = vadd.f32 %v1787_v24, %v6313_v25  ;;  %4218 = vmatmul.mubr.bf16.gmra.mrb[56].mxu0 %v2867_v5  ;;  %vm2228_vm13 = vcmp.gt.f32.partialorder %v1784_v62, 0.0 }
 0x32f   : > { %vm2235_vm14 = vcmp.gt.f32.partialorder %v1786_v41, 0.0  ;;  %v2491_v42 = vmul.f32 0.01, %v1786_v41  ;;  %v2739_v59 = vsel %vm2227_vm12, %v1782_v16, %v2483_v0 }
 0x330   : > { %vm2236_vm15 = vcmp.gt.f32.partialorder %v1788_v35, 0.0  ;;  %v2492_v19 = vmul.f32 0.01, %v1788_v35  ;;  %v2740_v43 = vsel %vm2228_vm13, %v1784_v62, %v2484_v26 }
 0x331   : > { %v2747_v22 = vsel %vm2235_vm14, %v1786_v41, %v2491_v42 }
 0x332   : > { %v1824_v34 = vpop.f32.mrb[192].mxu1  ;;  %v2748_v53 = vsel %vm2236_vm15, %v1788_v35, %v2492_v19  ;;  %v2875_v37 = vpack.c.bf16 %v2747_v22, %v2739_v59 }
 0x333   : > { %v1825_v14 = vadd.f32 %v1824_v34, %v6391_v36  ;;  %v1826_v25 = vpop.f32.mrb[193].mxu1  ;;  %v2876_v38 = vpack.c.bf16 %v2748_v53, %v2740_v43 }
 0x334   : > { %v1827_v3 = vadd.f32 %v1826_v25, %v6393_v12  ;;  %v1828_v23 = vpop.f32.mrb[194].mxu1 }
 0x335   : > { %v2245_v8 = vmul.f32 0.01, %v1825_v14  ;;  %v1829_v28 = vadd.f32 %v1828_v23, %v6391_v36  ;;  %v1830_v21 = vpop.f32.mrb[195].mxu1  ;;  %4227 = vmatprep.mubr.bf16.mxu0 %v2876_v38  ;;  %vm1989_vm0 = vcmp.gt.f32.partialorder %v1825_v14, 0.0 }
 0x336   : > { %v2246_v11 = vmul.f32 0.01, %v1827_v3  ;;  %v1831_v51 = vadd.f32 %v1830_v21, %v6393_v12  ;;  %4228 = vmatmul.mubr.bf16.gmra.mrb[60].mxu0 %v2875_v37  ;;  %vm1990_vm1 = vcmp.gt.f32.partialorder %v1827_v3, 0.0 }
 0x337   : > { %vm1997_vm2 = vcmp.gt.f32.partialorder %v1829_v28, 0.0  ;;  %v2253_v33 = vmul.f32 0.01, %v1829_v28  ;;  %v2501_v7 = vsel %vm1989_vm0, %v1825_v14, %v2245_v8 }
 0x338   : > { %vm1998_vm3 = vcmp.gt.f32.partialorder %v1831_v51, 0.0  ;;  %v2254_v46 = vmul.f32 0.01, %v1831_v51  ;;  %v2502_v18 = vsel %vm1990_vm1, %v1827_v3, %v2246_v11 }
 0x339   : > { %v2509_v52 = vsel %vm1997_vm2, %v1829_v28, %v2253_v33 }
 0x33a   : > { %v2757_v44 = vpack.c.bf16 %v2509_v52, %v2501_v7  ;;  %v1834_v55 = vpop.f32.mrb[196].mxu1  ;;  %v2510_v56 = vsel %vm1998_vm3, %v1831_v51, %v2254_v46 }
 0x33b   : > { %v1835_v4 = vadd.f32 %v1834_v55, %v6391_v36  ;;  %v1836_v20 = vpop.f32.mrb[197].mxu1  ;;  %v2758_v45 = vpack.c.bf16 %v2510_v56, %v2502_v18 }
 0x33c   : > { %v1837_v17 = vadd.f32 %v1836_v20, %v6393_v12  ;;  %v1838_v49 = vpop.f32.mrb[198].mxu1 }
 0x33d   : > { %v2261_v9 = vmul.f32 0.01, %v1835_v4  ;;  %v1839_v50 = vadd.f32 %v1838_v49, %v6391_v36  ;;  %v1840_v27 = vpop.f32.mrb[199].mxu1  ;;  %4270 = vmatprep.mubr.bf16.mxu0 %v2758_v45  ;;  %vm2005_vm4 = vcmp.gt.f32.partialorder %v1835_v4, 0.0 }
 0x33e   : > { %v2262_v32 = vmul.f32 0.01, %v1837_v17  ;;  %v1841_v10 = vadd.f32 %v1840_v27, %v6393_v12  ;;  %4271 = vmatmul.mubr.bf16.vlgmr.msra.gmra.mrb[0].mxu0 %v2757_v44  ;;  %vm2006_vm5 = vcmp.gt.f32.partialorder %v1837_v17, 0.0 }
 0x33f   : > { %vm2013_vm6 = vcmp.gt.f32.partialorder %v1839_v50, 0.0  ;;  %v2269_v6 = vmul.f32 0.01, %v1839_v50  ;;  %v2517_v61 = vsel %vm2005_vm4, %v1835_v4, %v2261_v9 }
 0x340   : > { %vm2014_vm7 = vcmp.gt.f32.partialorder %v1841_v10, 0.0  ;;  %v2270_v29 = vmul.f32 0.01, %v1841_v10  ;;  %v2518_v40 = vsel %vm2006_vm5, %v1837_v17, %v2262_v32 }
 0x341   : > { %v2525_v47 = vsel %vm2013_vm6, %v1839_v50, %v2269_v6 }
 0x342   : > { %v1844_v57 = vpop.f32.mrb[200].mxu1  ;;  %v2526_v60 = vsel %vm2014_vm7, %v1841_v10, %v2270_v29  ;;  %v2765_v30 = vpack.c.bf16 %v2525_v47, %v2517_v61 }
 0x343   : > { %v1845_v13 = vadd.f32 %v1844_v57, %v6391_v36  ;;  %v1846_v54 = vpop.f32.mrb[201].mxu1  ;;  %v2766_v15 = vpack.c.bf16 %v2526_v60, %v2518_v40 }
 0x344   : > { %v1847_v5 = vadd.f32 %v1846_v54, %v6393_v12  ;;  %v1848_v16 = vpop.f32.mrb[202].mxu1 }
 0x345   : > { %v2277_v63 = vmul.f32 0.01, %v1845_v13  ;;  %v1849_v48 = vadd.f32 %v1848_v16, %v6391_v36  ;;  %v1850_v1 = vpop.f32.mrb[203].mxu1  ;;  %4280 = vmatprep.mubr.bf16.mxu0 %v2766_v15  ;;  %vm2021_vm8 = vcmp.gt.f32.partialorder %v1845_v13, 0.0 }
 0x346   : > { %v2278_v62 = vmul.f32 0.01, %v1847_v5  ;;  %v1851_v31 = vadd.f32 %v1850_v1, %v6393_v12  ;;  %4281 = vmatmul.mubr.bf16.gmra.mrb[4].mxu0 %v2765_v30  ;;  %vm2022_vm9 = vcmp.gt.f32.partialorder %v1847_v5, 0.0 }
 0x347   : > { %vm2029_vm10 = vcmp.gt.f32.partialorder %v1849_v48, 0.0  ;;  %v2285_v39 = vmul.f32 0.01, %v1849_v48  ;;  %v2533_v41 = vsel %vm2021_vm8, %v1845_v13, %v2277_v63 }
 0x348   : > { %vm2030_vm11 = vcmp.gt.f32.partialorder %v1851_v31, 0.0  ;;  %v2286_v0 = vmul.f32 0.01, %v1851_v31  ;;  %v2534_v35 = vsel %vm2022_vm9, %v1847_v5, %v2278_v62 }
 0x349   : > { %v2541_v24 = vsel %vm2029_vm10, %v1849_v48, %v2285_v39 }
 0x34a   : > { %v1854_v26 = vpop.f32.mrb[204].mxu1  ;;  %v2542_v42 = vsel %vm2030_vm11, %v1851_v31, %v2286_v0  ;;  %v2773_v58 = vpack.c.bf16 %v2541_v24, %v2533_v41 }
 0x34b   : > { %v1855_v19 = vadd.f32 %v1854_v26, %v6391_v36  ;;  %v1856_v59 = vpop.f32.mrb[205].mxu1  ;;  %v2774_v22 = vpack.c.bf16 %v2542_v42, %v2534_v35 }
 0x34c   : > { %v1857_v34 = vadd.f32 %v1856_v59, %v6393_v12  ;;  %v1858_v43 = vpop.f32.mrb[206].mxu1 }
 0x34d   : > { %v2293_v53 = vmul.f32 0.01, %v1855_v19  ;;  %v1859_v37 = vadd.f32 %v1858_v43, %v6391_v36  ;;  %v1860_v14 = vpop.f32.mrb[207].mxu1  ;;  %4290 = vmatprep.mubr.bf16.mxu0 %v2774_v22  ;;  %vm2037_vm12 = vcmp.gt.f32.partialorder %v1855_v19, 0.0 }
 0x34e   : > { %v2294_v25 = vmul.f32 0.01, %v1857_v34  ;;  %v1861_v38 = vadd.f32 %v1860_v14, %v6393_v12  ;;  %4291 = vmatmul.mubr.bf16.gmra.mrb[8].mxu0 %v2773_v58  ;;  %vm2038_vm13 = vcmp.gt.f32.partialorder %v1857_v34, 0.0 }
 0x34f   : > { %vm2045_vm14 = vcmp.gt.f32.partialorder %v1859_v37, 0.0  ;;  %v2301_v3 = vmul.f32 0.01, %v1859_v37  ;;  %v2549_v8 = vsel %vm2037_vm12, %v1855_v19, %v2293_v53 }
 0x350   : > { %vm2046_vm15 = vcmp.gt.f32.partialorder %v1861_v38, 0.0  ;;  %v2302_v23 = vmul.f32 0.01, %v1861_v38  ;;  %v2550_v11 = vsel %vm2038_vm13, %v1857_v34, %v2294_v25 }
 0x351   : > { %v2557_v28 = vsel %vm2045_vm14, %v1859_v37, %v2301_v3 }
 0x352   : > { %v1864_v21 = vpop.f32.mrb[208].mxu1  ;;  %v2558_v51 = vsel %vm2046_vm15, %v1861_v38, %v2302_v23  ;;  %v2781_v33 = vpack.c.bf16 %v2557_v28, %v2549_v8 }
 0x353   : > { %v1865_v46 = vadd.f32 %v1864_v21, %v6391_v36  ;;  %v1866_v7 = vpop.f32.mrb[209].mxu1  ;;  %v2782_v52 = vpack.c.bf16 %v2558_v51, %v2550_v11 }
 0x354   : > { %v1867_v44 = vadd.f32 %v1866_v7, %v6393_v12  ;;  %v1868_v55 = vpop.f32.mrb[210].mxu1 }
 0x355   : > { %v2309_v18 = vmul.f32 0.01, %v1865_v46  ;;  %v1869_v56 = vadd.f32 %v1868_v55, %v6391_v36  ;;  %v1870_v4 = vpop.f32.mrb[211].mxu1  ;;  %4300 = vmatprep.mubr.bf16.mxu0 %v2782_v52  ;;  %vm2053_vm0 = vcmp.gt.f32.partialorder %v1865_v46, 0.0 }
 0x356   : > { %v2310_v20 = vmul.f32 0.01, %v1867_v44  ;;  %v1871_v45 = vadd.f32 %v1870_v4, %v6393_v12  ;;  %4301 = vmatmul.mubr.bf16.gmra.mrb[12].mxu0 %v2781_v33  ;;  %vm2054_vm1 = vcmp.gt.f32.partialorder %v1867_v44, 0.0 }
 0x357   : > { %vm2061_vm2 = vcmp.gt.f32.partialorder %v1869_v56, 0.0  ;;  %v2317_v17 = vmul.f32 0.01, %v1869_v56  ;;  %v2565_v9 = vsel %vm2053_vm0, %v1865_v46, %v2309_v18 }
 0x358   : > { %vm2062_vm3 = vcmp.gt.f32.partialorder %v1871_v45, 0.0  ;;  %v2318_v49 = vmul.f32 0.01, %v1871_v45  ;;  %v2566_v32 = vsel %vm2054_vm1, %v1867_v44, %v2310_v20 }
 0x359   : > { %v2573_v50 = vsel %vm2061_vm2, %v1869_v56, %v2317_v17 }
 0x35a   : > { %v1874_v27 = vpop.f32.mrb[212].mxu1  ;;  %v2574_v10 = vsel %vm2062_vm3, %v1871_v45, %v2318_v49  ;;  %v2789_v6 = vpack.c.bf16 %v2573_v50, %v2565_v9 }
 0x35b   : > { %v1875_v29 = vadd.f32 %v1874_v27, %v6391_v36  ;;  %v1876_v61 = vpop.f32.mrb[213].mxu1  ;;  %v2790_v47 = vpack.c.bf16 %v2574_v10, %v2566_v32 }
 0x35c   : > { %v1877_v57 = vadd.f32 %v1876_v61, %v6393_v12  ;;  %v1878_v40 = vpop.f32.mrb[214].mxu1 }
 0x35d   : > { %v2325_v60 = vmul.f32 0.01, %v1875_v29  ;;  %v1879_v30 = vadd.f32 %v1878_v40, %v6391_v36  ;;  %v1880_v13 = vpop.f32.mrb[215].mxu1  ;;  %4310 = vmatprep.mubr.bf16.mxu0 %v2790_v47  ;;  %vm2069_vm4 = vcmp.gt.f32.partialorder %v1875_v29, 0.0 }
 0x35e   : > { %v2326_v54 = vmul.f32 0.01, %v1877_v57  ;;  %v1881_v15 = vadd.f32 %v1880_v13, %v6393_v12  ;;  %4311 = vmatmul.mubr.bf16.gmra.mrb[16].mxu0 %v2789_v6  ;;  %vm2070_vm5 = vcmp.gt.f32.partialorder %v1877_v57, 0.0 }
 0x35f   : > { %vm2077_vm6 = vcmp.gt.f32.partialorder %v1879_v30, 0.0  ;;  %v2333_v5 = vmul.f32 0.01, %v1879_v30  ;;  %v2581_v63 = vsel %vm2069_vm4, %v1875_v29, %v2325_v60 }
 0x360   : > { %vm2078_vm7 = vcmp.gt.f32.partialorder %v1881_v15, 0.0  ;;  %v2334_v16 = vmul.f32 0.01, %v1881_v15  ;;  %v2582_v62 = vsel %vm2070_vm5, %v1877_v57, %v2326_v54 }
 0x361   : > { %v2589_v48 = vsel %vm2077_vm6, %v1879_v30, %v2333_v5 }
 0x362   : > { %v1884_v1 = vpop.f32.mrb[216].mxu1  ;;  %v2590_v31 = vsel %vm2078_vm7, %v1881_v15, %v2334_v16  ;;  %v2797_v39 = vpack.c.bf16 %v2589_v48, %v2581_v63 }
 0x363   : > { %v1885_v0 = vadd.f32 %v1884_v1, %v6391_v36  ;;  %v1886_v41 = vpop.f32.mrb[217].mxu1  ;;  %v2798_v24 = vpack.c.bf16 %v2590_v31, %v2582_v62 }
 0x364   : > { %v1887_v26 = vadd.f32 %v1886_v41, %v6393_v12  ;;  %v1888_v35 = vpop.f32.mrb[218].mxu1 }
 0x365   : > { %v2341_v42 = vmul.f32 0.01, %v1885_v0  ;;  %v1889_v58 = vadd.f32 %v1888_v35, %v6391_v36  ;;  %v1890_v19 = vpop.f32.mrb[219].mxu1  ;;  %4320 = vmatprep.mubr.bf16.mxu0 %v2798_v24  ;;  %vm2085_vm8 = vcmp.gt.f32.partialorder %v1885_v0, 0.0 }
 0x366   : > { %v2342_v59 = vmul.f32 0.01, %v1887_v26  ;;  %v1891_v22 = vadd.f32 %v1890_v19, %v6393_v12  ;;  %4321 = vmatmul.mubr.bf16.gmra.mrb[20].mxu0 %v2797_v39  ;;  %vm2086_vm9 = vcmp.gt.f32.partialorder %v1887_v26, 0.0 }
 0x367   : > { %vm2093_vm10 = vcmp.gt.f32.partialorder %v1889_v58, 0.0  ;;  %v2349_v34 = vmul.f32 0.01, %v1889_v58  ;;  %v2597_v53 = vsel %vm2085_vm8, %v1885_v0, %v2341_v42 }
 0x368   : > { %vm2094_vm11 = vcmp.gt.f32.partialorder %v1891_v22, 0.0  ;;  %v2350_v43 = vmul.f32 0.01, %v1891_v22  ;;  %v2598_v25 = vsel %vm2086_vm9, %v1887_v26, %v2342_v59 }
 0x369   : > { %v2605_v37 = vsel %vm2093_vm10, %v1889_v58, %v2349_v34 }
 0x36a   : > { %v1894_v14 = vpop.f32.mrb[220].mxu1  ;;  %v2606_v38 = vsel %vm2094_vm11, %v1891_v22, %v2350_v43  ;;  %v2805_v3 = vpack.c.bf16 %v2605_v37, %v2597_v53 }
 0x36b   : > { %v1895_v23 = vadd.f32 %v1894_v14, %v6391_v36  ;;  %v1896_v8 = vpop.f32.mrb[221].mxu1  ;;  %v2806_v28 = vpack.c.bf16 %v2606_v38, %v2598_v25 }
 0x36c   : > { %v1897_v21 = vadd.f32 %v1896_v8, %v6393_v12  ;;  %v1898_v11 = vpop.f32.mrb[222].mxu1 }
 0x36d   : > { %v2357_v51 = vmul.f32 0.01, %v1895_v23  ;;  %v1899_v33 = vadd.f32 %v1898_v11, %v6391_v36  ;;  %v1900_v46 = vpop.f32.mrb[223].mxu1  ;;  %4330 = vmatprep.mubr.bf16.mxu0 %v2806_v28  ;;  %vm2101_vm12 = vcmp.gt.f32.partialorder %v1895_v23, 0.0 }
 0x36e   : > { %v2358_v7 = vmul.f32 0.01, %v1897_v21  ;;  %v1901_v52 = vadd.f32 %v1900_v46, %v6393_v12  ;;  %4331 = vmatmul.mubr.bf16.gmra.mrb[24].mxu0 %v2805_v3  ;;  %vm2102_vm13 = vcmp.gt.f32.partialorder %v1897_v21, 0.0 }
 0x36f   : > { %vm2109_vm14 = vcmp.gt.f32.partialorder %v1899_v33, 0.0  ;;  %v2365_v44 = vmul.f32 0.01, %v1899_v33  ;;  %v2613_v18 = vsel %vm2101_vm12, %v1895_v23, %v2357_v51 }
 0x370   : > { %vm2110_vm15 = vcmp.gt.f32.partialorder %v1901_v52, 0.0  ;;  %v2366_v55 = vmul.f32 0.01, %v1901_v52  ;;  %v2614_v20 = vsel %vm2102_vm13, %v1897_v21, %v2358_v7 }
 0x371   : > { %v2621_v56 = vsel %vm2109_vm14, %v1899_v33, %v2365_v44 }
 0x372   : > { %v1904_v4 = vpop.f32.mrb[224].mxu1  ;;  %v2622_v45 = vsel %vm2110_vm15, %v1901_v52, %v2366_v55  ;;  %v2813_v17 = vpack.c.bf16 %v2621_v56, %v2613_v18 }
 0x373   : > { %v1905_v49 = vadd.f32 %v1904_v4, %v6391_v36  ;;  %v1906_v9 = vpop.f32.mrb[225].mxu1  ;;  %v2814_v50 = vpack.c.bf16 %v2622_v45, %v2614_v20 }
 0x374   : > { %v1907_v27 = vadd.f32 %v1906_v9, %v6393_v12  ;;  %v1908_v32 = vpop.f32.mrb[226].mxu1 }
 0x375   : > { %v2373_v10 = vmul.f32 0.01, %v1905_v49  ;;  %v1909_v6 = vadd.f32 %v1908_v32, %v6391_v36  ;;  %v1910_v29 = vpop.f32.mrb[227].mxu1  ;;  %4340 = vmatprep.mubr.bf16.mxu0 %v2814_v50  ;;  %vm2117_vm0 = vcmp.gt.f32.partialorder %v1905_v49, 0.0 }
 0x376   : > { %v2374_v61 = vmul.f32 0.01, %v1907_v27  ;;  %v1911_v47 = vadd.f32 %v1910_v29, %v6393_v12  ;;  %4341 = vmatmul.mubr.bf16.gmra.mrb[28].mxu0 %v2813_v17  ;;  %vm2118_vm1 = vcmp.gt.f32.partialorder %v1907_v27, 0.0 }
 0x377   : > { %vm2125_vm2 = vcmp.gt.f32.partialorder %v1909_v6, 0.0  ;;  %v2381_v57 = vmul.f32 0.01, %v1909_v6  ;;  %v2629_v60 = vsel %vm2117_vm0, %v1905_v49, %v2373_v10 }
 0x378   : > { %vm2126_vm3 = vcmp.gt.f32.partialorder %v1911_v47, 0.0  ;;  %v2382_v40 = vmul.f32 0.01, %v1911_v47  ;;  %v2630_v54 = vsel %vm2118_vm1, %v1907_v27, %v2374_v61 }
 0x379   : > { %v2637_v30 = vsel %vm2125_vm2, %v1909_v6, %v2381_v57 }
 0x37a   : > { %v1914_v13 = vpop.f32.mrb[228].mxu1  ;;  %v2638_v15 = vsel %vm2126_vm3, %v1911_v47, %v2382_v40  ;;  %v2821_v5 = vpack.c.bf16 %v2637_v30, %v2629_v60 }
 0x37b   : > { %v1915_v16 = vadd.f32 %v1914_v13, %v6391_v36  ;;  %v1916_v63 = vpop.f32.mrb[229].mxu1  ;;  %v2822_v48 = vpack.c.bf16 %v2638_v15, %v2630_v54 }
 0x37c   : > { %v1917_v1 = vadd.f32 %v1916_v63, %v6393_v12  ;;  %v1918_v62 = vpop.f32.mrb[230].mxu1 }
 0x37d   : > { %v2389_v31 = vmul.f32 0.01, %v1915_v16  ;;  %v1919_v39 = vadd.f32 %v1918_v62, %v6391_v36  ;;  %v1920_v0 = vpop.f32.mrb[231].mxu1  ;;  %4350 = vmatprep.mubr.bf16.mxu0 %v2822_v48  ;;  %vm2133_vm4 = vcmp.gt.f32.partialorder %v1915_v16, 0.0 }
 0x37e   : > { %v2390_v41 = vmul.f32 0.01, %v1917_v1  ;;  %v1921_v24 = vadd.f32 %v1920_v0, %v6393_v12  ;;  %4351 = vmatmul.mubr.bf16.gmra.mrb[32].mxu0 %v2821_v5  ;;  %vm2134_vm5 = vcmp.gt.f32.partialorder %v1917_v1, 0.0 }
 0x37f   : > { %vm2141_vm6 = vcmp.gt.f32.partialorder %v1919_v39, 0.0  ;;  %v2397_v26 = vmul.f32 0.01, %v1919_v39  ;;  %v2645_v42 = vsel %vm2133_vm4, %v1915_v16, %v2389_v31 }
 0x380   : > { %vm2142_vm7 = vcmp.gt.f32.partialorder %v1921_v24, 0.0  ;;  %v2398_v35 = vmul.f32 0.01, %v1921_v24  ;;  %v2646_v59 = vsel %vm2134_vm5, %v1917_v1, %v2390_v41 }
 0x381   : > { %v2653_v58 = vsel %vm2141_vm6, %v1919_v39, %v2397_v26 }
 0x382   : > { %v1924_v19 = vpop.f32.mrb[232].mxu1  ;;  %v2654_v22 = vsel %vm2142_vm7, %v1921_v24, %v2398_v35  ;;  %v2829_v34 = vpack.c.bf16 %v2653_v58, %v2645_v42 }
 0x383   : > { %v1925_v43 = vadd.f32 %v1924_v19, %v6391_v36  ;;  %v1926_v53 = vpop.f32.mrb[233].mxu1  ;;  %v2830_v37 = vpack.c.bf16 %v2654_v22, %v2646_v59 }
 0x384   : > { %v1927_v14 = vadd.f32 %v1926_v53, %v6393_v12  ;;  %v1928_v25 = vpop.f32.mrb[234].mxu1 }
 0x385   : > { %v2405_v38 = vmul.f32 0.01, %v1925_v43  ;;  %v1929_v3 = vadd.f32 %v1928_v25, %v6391_v36  ;;  %v1930_v23 = vpop.f32.mrb[235].mxu1  ;;  %4360 = vmatprep.mubr.bf16.mxu0 %v2830_v37  ;;  %vm2149_vm8 = vcmp.gt.f32.partialorder %v1925_v43, 0.0 }
 0x386   : > { %v2406_v8 = vmul.f32 0.01, %v1927_v14  ;;  %v1931_v28 = vadd.f32 %v1930_v23, %v6393_v12  ;;  %4361 = vmatmul.mubr.bf16.gmra.mrb[36].mxu0 %v2829_v34  ;;  %vm2150_vm9 = vcmp.gt.f32.partialorder %v1927_v14, 0.0 }
 0x387   : > { %vm2157_vm10 = vcmp.gt.f32.partialorder %v1929_v3, 0.0  ;;  %v2413_v21 = vmul.f32 0.01, %v1929_v3  ;;  %v2661_v51 = vsel %vm2149_vm8, %v1925_v43, %v2405_v38 }
 0x388   : > { %vm2158_vm11 = vcmp.gt.f32.partialorder %v1931_v28, 0.0  ;;  %v2414_v11 = vmul.f32 0.01, %v1931_v28  ;;  %v2662_v7 = vsel %vm2150_vm9, %v1927_v14, %v2406_v8 }
 0x389   : > { %v2669_v33 = vsel %vm2157_vm10, %v1929_v3, %v2413_v21 }
 0x38a   : > { %v1934_v46 = vpop.f32.mrb[236].mxu1  ;;  %v2670_v52 = vsel %vm2158_vm11, %v1931_v28, %v2414_v11  ;;  %v2837_v44 = vpack.c.bf16 %v2669_v33, %v2661_v51 }
 0x38b   : > { %v1935_v55 = vadd.f32 %v1934_v46, %v6391_v36  ;;  %v1936_v18 = vpop.f32.mrb[237].mxu1  ;;  %v2838_v56 = vpack.c.bf16 %v2670_v52, %v2662_v7 }
 0x38c   : > { %v1937_v4 = vadd.f32 %v1936_v18, %v6393_v12  ;;  %v1938_v20 = vpop.f32.mrb[238].mxu1 }
 0x38d   : > { %v2421_v45 = vmul.f32 0.01, %v1935_v55  ;;  %v1939_v17 = vadd.f32 %v1938_v20, %v6391_v36  ;;  %v1940_v49 = vpop.f32.mrb[239].mxu1  ;;  %4370 = vmatprep.mubr.bf16.mxu0 %v2838_v56  ;;  %vm2165_vm12 = vcmp.gt.f32.partialorder %v1935_v55, 0.0 }
 0x38e   : > { %v2422_v9 = vmul.f32 0.01, %v1937_v4  ;;  %v1941_v50 = vadd.f32 %v1940_v49, %v6393_v12  ;;  %4371 = vmatmul.mubr.bf16.gmra.mrb[40].mxu0 %v2837_v44  ;;  %vm2166_vm13 = vcmp.gt.f32.partialorder %v1937_v4, 0.0 }
 0x38f   : > { %vm2173_vm14 = vcmp.gt.f32.partialorder %v1939_v17, 0.0  ;;  %v2429_v27 = vmul.f32 0.01, %v1939_v17  ;;  %v2677_v10 = vsel %vm2165_vm12, %v1935_v55, %v2421_v45 }
 0x390   : > { %vm2174_vm15 = vcmp.gt.f32.partialorder %v1941_v50, 0.0  ;;  %v2430_v32 = vmul.f32 0.01, %v1941_v50  ;;  %v2678_v61 = vsel %vm2166_vm13, %v1937_v4, %v2422_v9 }
 0x391   : > { %v2685_v6 = vsel %vm2173_vm14, %v1939_v17, %v2429_v27 }
 0x392   : > { %v1944_v29 = vpop.f32.mrb[240].mxu1  ;;  %v2686_v47 = vsel %vm2174_vm15, %v1941_v50, %v2430_v32  ;;  %v2845_v57 = vpack.c.bf16 %v2685_v6, %v2677_v10 }
 0x393   : > { %v1945_v40 = vadd.f32 %v1944_v29, %v6391_v36  ;;  %v1946_v60 = vpop.f32.mrb[241].mxu1  ;;  %v2846_v30 = vpack.c.bf16 %v2686_v47, %v2678_v61 }
 0x394   : > { %v1947_v13 = vadd.f32 %v1946_v60, %v6393_v12  ;;  %v1948_v54 = vpop.f32.mrb[242].mxu1 }
 0x395   : > { %v2437_v15 = vmul.f32 0.01, %v1945_v40  ;;  %v1949_v5 = vadd.f32 %v1948_v54, %v6391_v36  ;;  %v1950_v16 = vpop.f32.mrb[243].mxu1  ;;  %4380 = vmatprep.mubr.bf16.mxu0 %v2846_v30  ;;  %vm2181_vm0 = vcmp.gt.f32.partialorder %v1945_v40, 0.0 }
 0x396   : > { %v2438_v63 = vmul.f32 0.01, %v1947_v13  ;;  %v1951_v48 = vadd.f32 %v1950_v16, %v6393_v12  ;;  %4381 = vmatmul.mubr.bf16.gmra.mrb[44].mxu0 %v2845_v57  ;;  %vm2182_vm1 = vcmp.gt.f32.partialorder %v1947_v13, 0.0 }
 0x397   : > { %vm2189_vm2 = vcmp.gt.f32.partialorder %v1949_v5, 0.0  ;;  %v2445_v1 = vmul.f32 0.01, %v1949_v5  ;;  %v2693_v31 = vsel %vm2181_vm0, %v1945_v40, %v2437_v15 }
 0x398   : > { %vm2190_vm3 = vcmp.gt.f32.partialorder %v1951_v48, 0.0  ;;  %v2446_v62 = vmul.f32 0.01, %v1951_v48  ;;  %v2694_v41 = vsel %vm2182_vm1, %v1947_v13, %v2438_v63 }
 0x399   : > { %v2701_v39 = vsel %vm2189_vm2, %v1949_v5, %v2445_v1 }
 0x39a   : > { %v1954_v0 = vpop.f32.mrb[244].mxu1  ;;  %v2702_v24 = vsel %vm2190_vm3, %v1951_v48, %v2446_v62  ;;  %v2853_v26 = vpack.c.bf16 %v2701_v39, %v2693_v31  ;;  %v6698_v31 = vsub.s32 1, %v6080_v2 }
 0x39b   : > { %v1955_v35 = vadd.f32 %v1954_v0, %v6391_v36  ;;  %v1956_v42 = vpop.f32.mrb[245].mxu1  ;;  %v2854_v58 = vpack.c.bf16 %v2702_v24, %v2694_v41 }
 0x39c   : > { %v1957_v19 = vadd.f32 %v1956_v42, %v6393_v12  ;;  %v1958_v59 = vpop.f32.mrb[246].mxu1 }
 0x39d   : > { %v2453_v22 = vmul.f32 0.01, %v1955_v35  ;;  %v1959_v34 = vadd.f32 %v1958_v59, %v6391_v36  ;;  %v1960_v43 = vpop.f32.mrb[247].mxu1  ;;  %4390 = vmatprep.mubr.bf16.mxu0 %v2854_v58  ;;  %vm2197_vm4 = vcmp.gt.f32.partialorder %v1955_v35, 0.0 }
 0x39e   : > { %v2454_v53 = vmul.f32 0.01, %v1957_v19  ;;  %v1961_v37 = vadd.f32 %v1960_v43, %v6393_v12  ;;  %4391 = vmatmul.mubr.bf16.gmra.mrb[48].mxu0 %v2853_v26  ;;  %vm2198_vm5 = vcmp.gt.f32.partialorder %v1957_v19, 0.0 }
 0x39f   : > { %vm2205_vm6 = vcmp.gt.f32.partialorder %v1959_v34, 0.0  ;;  %v2461_v14 = vmul.f32 0.01, %v1959_v34  ;;  %v2709_v38 = vsel %vm2197_vm4, %v1955_v35, %v2453_v22 }
 0x3a0   : > { %vm2206_vm7 = vcmp.gt.f32.partialorder %v1961_v37, 0.0  ;;  %v2462_v25 = vmul.f32 0.01, %v1961_v37  ;;  %v2710_v8 = vsel %vm2198_vm5, %v1957_v19, %v2454_v53 }
 0x3a1   : > { %v2717_v3 = vsel %vm2205_vm6, %v1959_v34, %v2461_v14 }
 0x3a2   : > { %v1964_v23 = vpop.f32.mrb[248].mxu1  ;;  %v2718_v28 = vsel %vm2206_vm7, %v1961_v37, %v2462_v25  ;;  %v2861_v21 = vpack.c.bf16 %v2717_v3, %v2709_v38 }
 0x3a3   : > { %v1965_v11 = vadd.f32 %v1964_v23, %v6391_v36  ;;  %v1966_v51 = vpop.f32.mrb[249].mxu1  ;;  %v2862_v33 = vpack.c.bf16 %v2718_v28, %v2710_v8 }
 0x3a4   : > { %v1967_v46 = vadd.f32 %v1966_v51, %v6393_v12  ;;  %v1968_v7 = vpop.f32.mrb[250].mxu1 }
 0x3a5   : > { %v2469_v52 = vmul.f32 0.01, %v1965_v11  ;;  %v1969_v44 = vadd.f32 %v1968_v7, %v6391_v36  ;;  %v1970_v55 = vpop.f32.mrb[251].mxu1  ;;  %4400 = vmatprep.mubr.bf16.mxu0 %v2862_v33  ;;  %vm2213_vm8 = vcmp.gt.f32.partialorder %v1965_v11, 0.0 }
 0x3a6   : > { %v2470_v18 = vmul.f32 0.01, %v1967_v46  ;;  %v1971_v56 = vadd.f32 %v1970_v55, %v6393_v12  ;;  %4401 = vmatmul.mubr.bf16.gmra.mrb[52].mxu0 %v2861_v21  ;;  %vm2214_vm9 = vcmp.gt.f32.partialorder %v1967_v46, 0.0 }
 0x3a7   : > { %vm2221_vm10 = vcmp.gt.f32.partialorder %v1969_v44, 0.0  ;;  %v2477_v4 = vmul.f32 0.01, %v1969_v44  ;;  %v2725_v45 = vsel %vm2213_vm8, %v1965_v11, %v2469_v52 }
 0x3a8   : > { %vm2222_vm11 = vcmp.gt.f32.partialorder %v1971_v56, 0.0  ;;  %v2478_v20 = vmul.f32 0.01, %v1971_v56  ;;  %v2726_v9 = vsel %vm2214_vm9, %v1967_v46, %v2470_v18 }
 0x3a9   : > { %v2733_v17 = vsel %vm2221_vm10, %v1969_v44, %v2477_v4 }
 0x3aa   : > { %v1974_v49 = vpop.f32.mrb[252].mxu1  ;;  %v2734_v50 = vsel %vm2222_vm11, %v1971_v56, %v2478_v20  ;;  %v2869_v27 = vpack.c.bf16 %v2733_v17, %v2725_v45 }
 0x3ab   : > { %v1975_v32 = vadd.f32 %v1974_v49, %v6391_v36  ;;  %v1976_v10 = vpop.f32.mrb[253].mxu1  ;;  %v2870_v6 = vpack.c.bf16 %v2734_v50, %v2726_v9 }
 0x3ac   : > { %v1977_v29 = vadd.f32 %v1976_v10, %v6393_v12  ;;  %v1978_v61 = vpop.f32.mrb[254].mxu1 }
 0x3ad   : > { %v2485_v47 = vmul.f32 0.01, %v1975_v32  ;;  %v1979_v57 = vadd.f32 %v1978_v61, %v6391_v36  ;;  %v1980_v40 = vpop.f32.mrb[255].mxu1  ;;  %4410 = vmatprep.mubr.bf16.mxu0 %v2870_v6  ;;  %vm2229_vm12 = vcmp.gt.f32.partialorder %v1975_v32, 0.0  ;;  %v3007_v36 = vld [vmem:[%s6669_s4] sm:$0x3] }
 0x3ae   : > { %v2486_v60 = vmul.f32 0.01, %v1977_v29  ;;  %v1981_v30 = vadd.f32 %v1980_v40, %v6393_v12  ;;  %4411 = vmatmul.mubr.bf16.gmra.mrb[56].mxu0 %v2869_v27  ;;  %vm2230_vm13 = vcmp.gt.f32.partialorder %v1977_v29, 0.0  ;;  %v6697_v12 = vsub.s32 0, %v6080_v2 }
 0x3af   : > { %vm2237_vm14 = vcmp.gt.f32.partialorder %v1979_v57, 0.0  ;;  %v2493_v13 = vmul.f32 0.01, %v1979_v57  ;;  %v2741_v15 = vsel %vm2229_vm12, %v1975_v32, %v2485_v47  ;;  %v6468_v39 = vrot.slane %v3007_v36, %v6698_v31 }
 0x3b0   : > { %vm2238_vm15 = vcmp.gt.f32.partialorder %v1981_v30, 0.0  ;;  %v2494_v54 = vmul.f32 0.01, %v1981_v30  ;;  %v2742_v16 = vsel %vm2230_vm13, %v1977_v29, %v2486_v60  ;;  %v6464_v62 = vrot.slane %v3007_v36, %v6697_v12 }
 0x3b1   : > { %v2749_v5 = vsel %vm2237_vm14, %v1979_v57, %v2493_v13 }
 0x3b2   : > { %v2750_v63 = vsel %vm2238_vm15, %v1981_v30, %v2494_v54  ;;  %v2877_v48 = vpack.c.bf16 %v2749_v5, %v2741_v15 }
 0x3b3   : > { %v2878_v1 = vpack.c.bf16 %v2750_v63, %v2742_v16 }
 0x3b5   : > { %4420 = vmatprep.mubr.bf16.mxu0 %v2878_v1 }
 0x3b6   : > { %4421 = vmatmul.mubr.bf16.gmra.mrb[60].mxu0 %v2877_v48 }
 0x411   : > { %v4272_v0 = vpop.f32.mrb[0].mxu0 }
 0x412   : > { %v4913_v41 = vadd.f32 %v4272_v0, %v6464_v62  ;;  %v4274_v24 = vpop.f32.mrb[1].mxu0 }
 0x413   : > { %v4914_v26 = vadd.f32 %v4274_v24, %v6468_v39  ;;  %v4276_v35 = vpop.f32.mrb[2].mxu0 }
 0x414   : > { %4431 = vst [vmem:[%s6474_s10] sm:$0xff] %v4913_v41  ;;  %v4915_v2 = vadd.f32 %v4276_v35, %v6464_v62  ;;  %v4278_v42 = vpop.f32.mrb[3].mxu0 }
 0x415   : > { %4432 = vst [vmem:[%s6474_s10 + $0x8] sm:$0xff] %v4914_v26  ;;  %v4916_v58 = vadd.f32 %v4278_v42, %v6468_v39 }
 0x416   : > { %4433 = vst [vmem:[%s6474_s10 + $0x10] sm:$0xff] %v4915_v2 }
 0x417   : > { %4434 = vst [vmem:[%s6474_s10 + $0x18] sm:$0xff] %v4916_v58 }
 0x419   : > { %v4282_v19 = vpop.f32.mrb[4].mxu0 }
 0x41a   : > { %v4917_v59 = vadd.f32 %v4282_v19, %v6464_v62  ;;  %v4284_v22 = vpop.f32.mrb[5].mxu0 }
 0x41b   : > { %v4918_v34 = vadd.f32 %v4284_v22, %v6468_v39  ;;  %v4286_v43 = vpop.f32.mrb[6].mxu0 }
 0x41c   : > { %4435 = vst [vmem:[%s6474_s10 + $0x20] sm:$0xff] %v4917_v59  ;;  %v4919_v53 = vadd.f32 %v4286_v43, %v6464_v62  ;;  %v4288_v37 = vpop.f32.mrb[7].mxu0 }
 0x41d   : > { %4436 = vst [vmem:[%s6474_s10 + $0x28] sm:$0xff] %v4918_v34  ;;  %v4920_v14 = vadd.f32 %v4288_v37, %v6468_v39 }
 0x41e   : > { %4437 = vst [vmem:[%s6474_s10 + $0x30] sm:$0xff] %v4919_v53 }
 0x41f   : > { %4438 = vst [vmem:[%s6474_s10 + $0x38] sm:$0xff] %v4920_v14 }
 0x421   : > { %v4292_v25 = vpop.f32.mrb[8].mxu0 }
 0x422   : > { %v4921_v38 = vadd.f32 %v4292_v25, %v6464_v62  ;;  %v4294_v3 = vpop.f32.mrb[9].mxu0 }
 0x423   : > { %v4922_v23 = vadd.f32 %v4294_v3, %v6468_v39  ;;  %v4296_v8 = vpop.f32.mrb[10].mxu0 }
 0x424   : > { %4439 = vst [vmem:[%s6474_s10 + $0x40] sm:$0xff] %v4921_v38  ;;  %v4923_v28 = vadd.f32 %v4296_v8, %v6464_v62  ;;  %v4298_v21 = vpop.f32.mrb[11].mxu0 }
 0x425   : > { %4440 = vst [vmem:[%s6474_s10 + $0x48] sm:$0xff] %v4922_v23  ;;  %v4924_v11 = vadd.f32 %v4298_v21, %v6468_v39 }
 0x426   : > { %4441 = vst [vmem:[%s6474_s10 + $0x50] sm:$0xff] %v4923_v28 }
 0x427   : > { %4442 = vst [vmem:[%s6474_s10 + $0x58] sm:$0xff] %v4924_v11 }
 0x429   : > { %v4302_v51 = vpop.f32.mrb[12].mxu0 }
 0x42a   : > { %v4925_v33 = vadd.f32 %v4302_v51, %v6464_v62  ;;  %v4304_v46 = vpop.f32.mrb[13].mxu0 }
 0x42b   : > { %v4926_v7 = vadd.f32 %v4304_v46, %v6468_v39  ;;  %v4306_v52 = vpop.f32.mrb[14].mxu0 }
 0x42c   : > { %4443 = vst [vmem:[%s6474_s10 + $0x60] sm:$0xff] %v4925_v33  ;;  %v4927_v44 = vadd.f32 %v4306_v52, %v6464_v62  ;;  %v4308_v55 = vpop.f32.mrb[15].mxu0 }
 0x42d   : > { %4444 = vst [vmem:[%s6474_s10 + $0x68] sm:$0xff] %v4926_v7  ;;  %v4928_v18 = vadd.f32 %v4308_v55, %v6468_v39 }
 0x42e   : > { %4445 = vst [vmem:[%s6474_s10 + $0x70] sm:$0xff] %v4927_v44 }
 0x42f   : > { %4446 = vst [vmem:[%s6474_s10 + $0x78] sm:$0xff] %v4928_v18 }
 0x431   : > { %v4312_v56 = vpop.f32.mrb[16].mxu0 }
 0x432   : > { %v4929_v4 = vadd.f32 %v4312_v56, %v6464_v62  ;;  %v4314_v20 = vpop.f32.mrb[17].mxu0 }
 0x433   : > { %v4930_v45 = vadd.f32 %v4314_v20, %v6468_v39  ;;  %v4316_v17 = vpop.f32.mrb[18].mxu0 }
 0x434   : > { %4447 = vst [vmem:[%s6474_s10 + $0x80] sm:$0xff] %v4929_v4  ;;  %v4931_v49 = vadd.f32 %v4316_v17, %v6464_v62  ;;  %v4318_v9 = vpop.f32.mrb[19].mxu0 }
 0x435   : > { %4448 = vst [vmem:[%s6474_s10 + $0x88] sm:$0xff] %v4930_v45  ;;  %v4932_v50 = vadd.f32 %v4318_v9, %v6468_v39 }
 0x436   : > { %4449 = vst [vmem:[%s6474_s10 + $0x90] sm:$0xff] %v4931_v49 }
 0x437   : > { %4450 = vst [vmem:[%s6474_s10 + $0x98] sm:$0xff] %v4932_v50 }
 0x439   : > { %v4322_v27 = vpop.f32.mrb[20].mxu0 }
 0x43a   : > { %v4933_v32 = vadd.f32 %v4322_v27, %v6464_v62  ;;  %v4324_v10 = vpop.f32.mrb[21].mxu0 }
 0x43b   : > { %v4934_v6 = vadd.f32 %v4324_v10, %v6468_v39  ;;  %v4326_v29 = vpop.f32.mrb[22].mxu0 }
 0x43c   : > { %4451 = vst [vmem:[%s6474_s10 + $0xa0] sm:$0xff] %v4933_v32  ;;  %v4935_v61 = vadd.f32 %v4326_v29, %v6464_v62  ;;  %v4328_v47 = vpop.f32.mrb[23].mxu0 }
 0x43d   : > { %4452 = vst [vmem:[%s6474_s10 + $0xa8] sm:$0xff] %v4934_v6  ;;  %v4936_v57 = vadd.f32 %v4328_v47, %v6468_v39 }
 0x43e   : > { %4453 = vst [vmem:[%s6474_s10 + $0xb0] sm:$0xff] %v4935_v61 }
 0x43f   : > { %4454 = vst [vmem:[%s6474_s10 + $0xb8] sm:$0xff] %v4936_v57 }
 0x441   : > { %v4332_v40 = vpop.f32.mrb[24].mxu0 }
 0x442   : > { %v4937_v60 = vadd.f32 %v4332_v40, %v6464_v62  ;;  %v4334_v30 = vpop.f32.mrb[25].mxu0 }
 0x443   : > { %v4938_v13 = vadd.f32 %v4334_v30, %v6468_v39  ;;  %v4336_v54 = vpop.f32.mrb[26].mxu0 }
 0x444   : > { %4455 = vst [vmem:[%s6474_s10 + $0xc0] sm:$0xff] %v4937_v60  ;;  %v4939_v15 = vadd.f32 %v4336_v54, %v6464_v62  ;;  %v4338_v5 = vpop.f32.mrb[27].mxu0 }
 0x445   : > { %4456 = vst [vmem:[%s6474_s10 + $0xc8] sm:$0xff] %v4938_v13  ;;  %v4940_v16 = vadd.f32 %v4338_v5, %v6468_v39 }
 0x446   : > { %4457 = vst [vmem:[%s6474_s10 + $0xd0] sm:$0xff] %v4939_v15 }
 0x447   : > { %4458 = vst [vmem:[%s6474_s10 + $0xd8] sm:$0xff] %v4940_v16 }
 0x449   : > { %v4342_v63 = vpop.f32.mrb[28].mxu0 }
 0x44a   : > { %v4941_v48 = vadd.f32 %v4342_v63, %v6464_v62  ;;  %v4344_v1 = vpop.f32.mrb[29].mxu0 }
 0x44b   : > { %v4942_v36 = vadd.f32 %v4344_v1, %v6468_v39  ;;  %v4346_v12 = vpop.f32.mrb[30].mxu0 }
 0x44c   : > { %4459 = vst [vmem:[%s6474_s10 + $0xe0] sm:$0xff] %v4941_v48  ;;  %v4943_v31 = vadd.f32 %v4346_v12, %v6464_v62  ;;  %v4348_v0 = vpop.f32.mrb[31].mxu0 }
 0x44d   : > { %4460 = vst [vmem:[%s6474_s10 + $0xe8] sm:$0xff] %v4942_v36  ;;  %v4944_v41 = vadd.f32 %v4348_v0, %v6468_v39 }
 0x44e   : > { %4461 = vst [vmem:[%s6474_s10 + $0xf0] sm:$0xff] %v4943_v31 }
 0x44f   : > { %4462 = vst [vmem:[%s6474_s10 + $0xf8] sm:$0xff] %v4944_v41 }
 0x451   : > { %v4352_v24 = vpop.f32.mrb[32].mxu0 }
 0x452   : > { %v4945_v26 = vadd.f32 %v4352_v24, %v6464_v62  ;;  %v4354_v35 = vpop.f32.mrb[33].mxu0 }
 0x453   : > { %v4946_v2 = vadd.f32 %v4354_v35, %v6468_v39  ;;  %v4356_v42 = vpop.f32.mrb[34].mxu0 }
 0x454   : > { %4463 = vst [vmem:[%s6474_s10 + $0x100] sm:$0xff] %v4945_v26  ;;  %v4947_v58 = vadd.f32 %v4356_v42, %v6464_v62  ;;  %v4358_v19 = vpop.f32.mrb[35].mxu0 }
 0x455   : > { %4464 = vst [vmem:[%s6474_s10 + $0x108] sm:$0xff] %v4946_v2  ;;  %v4948_v59 = vadd.f32 %v4358_v19, %v6468_v39 }
 0x456   : > { %4465 = vst [vmem:[%s6474_s10 + $0x110] sm:$0xff] %v4947_v58 }
 0x457   : > { %4466 = vst [vmem:[%s6474_s10 + $0x118] sm:$0xff] %v4948_v59 }
 0x459   : > { %v4362_v22 = vpop.f32.mrb[36].mxu0 }
 0x45a   : > { %v4949_v34 = vadd.f32 %v4362_v22, %v6464_v62  ;;  %v4364_v43 = vpop.f32.mrb[37].mxu0 }
 0x45b   : > { %v4950_v53 = vadd.f32 %v4364_v43, %v6468_v39  ;;  %v4366_v37 = vpop.f32.mrb[38].mxu0 }
 0x45c   : > { %4467 = vst [vmem:[%s6474_s10 + $0x120] sm:$0xff] %v4949_v34  ;;  %v4951_v14 = vadd.f32 %v4366_v37, %v6464_v62  ;;  %v4368_v25 = vpop.f32.mrb[39].mxu0 }
 0x45d   : > { %4468 = vst [vmem:[%s6474_s10 + $0x128] sm:$0xff] %v4950_v53  ;;  %v4952_v38 = vadd.f32 %v4368_v25, %v6468_v39 }
 0x45e   : > { %4469 = vst [vmem:[%s6474_s10 + $0x130] sm:$0xff] %v4951_v14 }
 0x45f   : > { %4470 = vst [vmem:[%s6474_s10 + $0x138] sm:$0xff] %v4952_v38 }
 0x461   : > { %v4372_v3 = vpop.f32.mrb[40].mxu0 }
 0x462   : > { %v4953_v23 = vadd.f32 %v4372_v3, %v6464_v62  ;;  %v4374_v8 = vpop.f32.mrb[41].mxu0 }
 0x463   : > { %v4954_v28 = vadd.f32 %v4374_v8, %v6468_v39  ;;  %v4376_v21 = vpop.f32.mrb[42].mxu0 }
 0x464   : > { %4471 = vst [vmem:[%s6474_s10 + $0x140] sm:$0xff] %v4953_v23  ;;  %v4955_v11 = vadd.f32 %v4376_v21, %v6464_v62  ;;  %v4378_v51 = vpop.f32.mrb[43].mxu0 }
 0x465   : > { %4472 = vst [vmem:[%s6474_s10 + $0x148] sm:$0xff] %v4954_v28  ;;  %v4956_v33 = vadd.f32 %v4378_v51, %v6468_v39 }
 0x466   : > { %4473 = vst [vmem:[%s6474_s10 + $0x150] sm:$0xff] %v4955_v11 }
 0x467   : > { %4474 = vst [vmem:[%s6474_s10 + $0x158] sm:$0xff] %v4956_v33 }
 0x469   : > { %v4382_v46 = vpop.f32.mrb[44].mxu0 }
 0x46a   : > { %v4957_v7 = vadd.f32 %v4382_v46, %v6464_v62  ;;  %v4384_v52 = vpop.f32.mrb[45].mxu0 }
 0x46b   : > { %v4958_v44 = vadd.f32 %v4384_v52, %v6468_v39  ;;  %v4386_v55 = vpop.f32.mrb[46].mxu0 }
 0x46c   : > { %4475 = vst [vmem:[%s6474_s10 + $0x160] sm:$0xff] %v4957_v7  ;;  %v4959_v18 = vadd.f32 %v4386_v55, %v6464_v62  ;;  %v4388_v56 = vpop.f32.mrb[47].mxu0 }
 0x46d   : > { %4476 = vst [vmem:[%s6474_s10 + $0x168] sm:$0xff] %v4958_v44  ;;  %v4960_v4 = vadd.f32 %v4388_v56, %v6468_v39 }
 0x46e   : > { %4477 = vst [vmem:[%s6474_s10 + $0x170] sm:$0xff] %v4959_v18 }
 0x46f   : > { %4478 = vst [vmem:[%s6474_s10 + $0x178] sm:$0xff] %v4960_v4 }
 0x471   : > { %v4392_v20 = vpop.f32.mrb[48].mxu0 }
 0x472   : > { %v4961_v45 = vadd.f32 %v4392_v20, %v6464_v62  ;;  %v4394_v17 = vpop.f32.mrb[49].mxu0 }
 0x473   : > { %v4962_v49 = vadd.f32 %v4394_v17, %v6468_v39  ;;  %v4396_v9 = vpop.f32.mrb[50].mxu0 }
 0x474   : > { %4479 = vst [vmem:[%s6474_s10 + $0x180] sm:$0xff] %v4961_v45  ;;  %v4963_v50 = vadd.f32 %v4396_v9, %v6464_v62  ;;  %v4398_v27 = vpop.f32.mrb[51].mxu0 }
 0x475   : > { %4480 = vst [vmem:[%s6474_s10 + $0x188] sm:$0xff] %v4962_v49  ;;  %v4964_v32 = vadd.f32 %v4398_v27, %v6468_v39 }
 0x476   : > { %4481 = vst [vmem:[%s6474_s10 + $0x190] sm:$0xff] %v4963_v50 }
 0x477   : > { %4482 = vst [vmem:[%s6474_s10 + $0x198] sm:$0xff] %v4964_v32 }
 0x479   : > { %v4402_v10 = vpop.f32.mrb[52].mxu0 }
 0x47a   : > { %v4965_v6 = vadd.f32 %v4402_v10, %v6464_v62  ;;  %v4404_v29 = vpop.f32.mrb[53].mxu0 }
 0x47b   : > { %v4966_v61 = vadd.f32 %v4404_v29, %v6468_v39  ;;  %v4406_v47 = vpop.f32.mrb[54].mxu0 }
 0x47c   : > { %4483 = vst [vmem:[%s6474_s10 + $0x1a0] sm:$0xff] %v4965_v6  ;;  %v4967_v57 = vadd.f32 %v4406_v47, %v6464_v62  ;;  %v4408_v40 = vpop.f32.mrb[55].mxu0 }
 0x47d   : > { %4484 = vst [vmem:[%s6474_s10 + $0x1a8] sm:$0xff] %v4966_v61  ;;  %v4968_v60 = vadd.f32 %v4408_v40, %v6468_v39 }
 0x47e   : > { %4485 = vst [vmem:[%s6474_s10 + $0x1b0] sm:$0xff] %v4967_v57 }
 0x47f   : > { %4486 = vst [vmem:[%s6474_s10 + $0x1b8] sm:$0xff] %v4968_v60 }
 0x481   : > { %v4412_v30 = vpop.f32.mrb[56].mxu0 }
 0x482   : > { %v4969_v13 = vadd.f32 %v4412_v30, %v6464_v62  ;;  %v4414_v54 = vpop.f32.mrb[57].mxu0 }
 0x483   : > { %v4970_v15 = vadd.f32 %v4414_v54, %v6468_v39  ;;  %v4416_v5 = vpop.f32.mrb[58].mxu0 }
 0x484   : > { %4487 = vst [vmem:[%s6474_s10 + $0x1c0] sm:$0xff] %v4969_v13  ;;  %v4971_v16 = vadd.f32 %v4416_v5, %v6464_v62  ;;  %v4418_v63 = vpop.f32.mrb[59].mxu0 }
 0x485   : > { %4488 = vst [vmem:[%s6474_s10 + $0x1c8] sm:$0xff] %v4970_v15  ;;  %v4972_v48 = vadd.f32 %v4418_v63, %v6468_v39 }
 0x486   : > { %4489 = vst [vmem:[%s6474_s10 + $0x1d0] sm:$0xff] %v4971_v16 }
 0x487   : > { %4490 = vst [vmem:[%s6474_s10 + $0x1d8] sm:$0xff] %v4972_v48 }
 0x489   : > { %v4422_v1 = vpop.f32.mrb[60].mxu0  ;;  %4502 = sbr.rel (!%p6699_p1) target bundleno = 1196 (0x4ac), region = 60 }
 0x48a   : > { %v4973_v36 = vadd.f32 %v4422_v1, %v6464_v62  ;;  %v4424_v12 = vpop.f32.mrb[61].mxu0 }
 0x48b   : > { %v4974_v31 = vadd.f32 %v4424_v12, %v6468_v39  ;;  %v4426_v0 = vpop.f32.mrb[62].mxu0 }
 0x48c   : > { %4491 = vst [vmem:[%s6474_s10 + $0x1e0] sm:$0xff] %v4973_v36  ;;  %v4975_v41 = vadd.f32 %v4426_v0, %v6464_v62  ;;  %v4428_v24 = vpop.f32.mrb[63].mxu0 }
 0x48d   : > { %4492 = vst [vmem:[%s6474_s10 + $0x1e8] sm:$0xff] %v4974_v31  ;;  %v4976_v26 = vadd.f32 %v4428_v24, %v6468_v39 }
 0x48e   : > { %4493 = vst [vmem:[%s6474_s10 + $0x1f0] sm:$0xff] %v4975_v41 }
 0x48f   : > { %4494 = vst [vmem:[%s6474_s10 + $0x1f8] sm:$0xff] %v4976_v26 }
 0x490   : > { %s6709_s9 = smov (!%p4505_p3, %s4504_s9), 32 }
 0x491   : > { %s6606_s14 = sshll.u32 %s6709_s9, 8 }
 0x492   : > { %s4510_s15 = ssub.s32 8192, %s6606_s14 }
 0x493   : > { %4511 = vsyncadd %s4496_s17, %s4510_s15  ;;  %p4900_p6 = scmp.ne.s32.totalorder %s6606_s14, 0  ;;  %s4912_s30 = sshll.u32 %s5693_s22, 13 }
 0x494   : > { %s6616_s25 = scalar_lea.hbm %s6670_s5, %s4912_s30  ;;  %s4517_s28 = sshll.u32 %s6474_s10, 4  ;;  %s6619_s28 = int_to_ptr.vmem [resolvable:$true] %s4517_s28 }
 0x495   : > { %s5553_s26 = scalar_lea.vmem %s6619_s28, %s6606_s14  ;;  %s5639_s8 = smov [#allocation10]  }
 0x496   : > { %p5554_p5 = scmp.ne.s32.totalorder %s6619_s28, %s5553_s26  ;;  %s5557_s27 = sshll.u32 %s5639_s8, 4  ;;  %s5558_s27 = int_to_ptr.vmem [resolvable:$false] %s5557_s27 }
 0x497   : > { %s5559_s22 = scalar_lea.vmem %s5558_s27, 16384  ;;  %p5560_p0 = scmp.lt.s32.totalorder %s6619_s28, %s5558_s27 }
 0x498   : > { %p5555_p11 = pnand %p5554_p5, %p4900_p6  ;;  %p5561_p12 = scmp.lt.s32.totalorder %s5559_s22, %s5553_s26 }
 0x49a   : > { %p5556_p13 = pneg %p5555_p11  ;;  %p5562_p7 = por %p5561_p12, %p5560_p0 }
 0x49c   : > { %p5563_p2 = pnand %p5562_p7, %p5556_p13 }
 0x49e   : > { %5566 = shalt.err (!%p5563_p2)
}
 0x49f   : > { %s5567_s11 = scalar_lea.hbm %s6616_s25, %s6606_s14  ;;  %s5571_s7 = scalar_lea.hbm %s6670_s5, 12800 }
 0x4a0   : > { %p5568_p8 = scmp.ne.s32.totalorder %s6616_s25, %s5567_s11  ;;  %p5572_p1 = scmp.lt.u32.totalorder %s6616_s25, %s6670_s5 }
 0x4a1   : > { %p5573_p3 = scmp.lt.u32.totalorder %s5571_s7, %s5567_s11  ;;  %p5575_p11 = scmp.lt.u32.totalorder %s5567_s11, %s6616_s25 }
 0x4a2   : > { %p5569_p9 = pnand %p5568_p8, %p4900_p6 }
 0x4a3   : > { %p5574_p5 = por %p5573_p3, %p5572_p1 }
 0x4a4   : > { %p5570_p10 = pneg %p5569_p9 }
 0x4a5   : > { %p5576_p13 = por %p5575_p11, %p5574_p5 }
 0x4a7   : > { %p5577_p0 = pnand %p5576_p13, %p5570_p10 }
 0x4a9   : > { %5580 = shalt.err (!%p5577_p0)
}
 0x4aa   : > { %s5640_s9 = smov 256   ;;  %s5641_s15 = smov 16  }
 0x4ab   : > { %4523 = dma.vmem_to_hbm [thread:$0]  (%p4900_p6), %s6619_s28, %s6606_s14, %s6616_s25, %s4496_s17, %s5640_s9, %s5640_s9, %s5641_s15  }
 0x4ac PF: > { %s4532_s30 = sand.u32 1, %s5615_s18   ;;  %p6700_p12 = scmp.ne.s32.totalorder %s6684_s6, 0 }
 0x4ad   : > { %s4533_s16 = scalar_lea.sflag [#allocation4], %s4532_s30 }
 0x4ae   : > { %p5194_p7 = pnand %p4624_p4, %p6700_p12 }
 0x4b0   : > { %5610 = dma.done.wait (!%p5194_p7), %s4533_s16, 8192  }
 0x4b1   : > { %5612 = vsyncadd (!%p5194_p7), %s4533_s16, 4294959104  ;;  %s6701_s21 = sld [smem:[#allocation15_spill]]  ;;  %s6702_s13 = sld [smem:[#allocation16_spill]] }
 0x4b2   : > { %s6703_s18 = smov %s5619_s19  ;;  %s6704_s19 = smov %s5623_s20 }
 0x4b7   : > { %p20_p2 = scmp.ge.s32.totalorder %s6701_s21, 4   ;;  %s6705_s20 = smov %s6702_s13 }
 0x4b9   :  { %22 = sbr.rel (!%p20_p2) target bundleno = 7 (0x7), region = 97 }
 0x4c0   :  { %4538 = vsyncpa [#allocation3], 1 }
 0x4c1   :  { %4540 = vsyncpa [#allocation3 + $0x1], 1 }
 0x4c2   :  { %4541 = vsyncpa [#allocation6], 1 }
 0x4c3   :  { %4542 = vsyncpa [#allocation9], 1 }
 0x4c4   :  { %4543 = vsyncpa [#allocation4], 1 }
 0x4c5   :  { %4545 = vsyncpa [#allocation4 + $0x1], 1 }

</bundles_post_ra>
